<compile_context>
chip_gen: v5e
topology: v5e:2x2
jax: 0.10.0
libtpu: 0.0.40
codegen_flags: <defaults>
</compile_context>

<pallas_src>
import functools
import math

import jax
import jax.numpy as jnp
from jax import lax
from jax.experimental import pallas as pl
from jax.experimental.pallas import tpu as pltpu

F32 = jnp.float32
BF16 = jnp.bfloat16
EPS = 1e-5                      # nn.LayerNorm default

TQ = 256                        # Q-row tile  (<=256 keeps v7x 64 MiB VMEM safe)
TK = 512                        # K/V chunk length inside the attention loop
TR = 512                        # row tile for KV-projection / LN+fc_out kernels
VMEM_LIMIT = 48 * 1024 * 1024   # explicit scoped-VMEM cap (headroom on v7x)


def _tile(total, pref):
    """Preferred tile if it divides the axis, else the full axis (toy shapes)."""
    return pref if total % pref == 0 else total


def _single_buffer_kwargs():
    # Weight blocks never change across the grid -> single-buffer them (saves
    # a full weight set of VMEM per layer call) when this JAX supports
    # pipeline_mode on BlockSpec; otherwise fall back to the default.
    try:
        mode = pl.Buffered(buffer_count=1)
        pl.BlockSpec((8, 128), lambda *_: (0, 0), pipeline_mode=mode)
        return {"pipeline_mode": mode}
    except Exception:
        return {}


_SINGLE_BUF = _single_buffer_kwargs()


def _const_spec(a):
    """Full-array block whose index never changes (weights / biases / LN params)."""
    n = a.ndim
    return pl.BlockSpec(a.shape, lambda *_, _n=n: (0,) * _n, **_SINGLE_BUF)


def _cparams(*sem):
    return pltpu.CompilerParams(dimension_semantics=sem,
                                vmem_limit_bytes=VMEM_LIMIT)


# ---------------------------------------------------------------------------
# In-kernel helpers (traced inside the Pallas kernels; operands live in VMEM).
# ---------------------------------------------------------------------------
def _proj(x, w, b):
    # x [M,K] f32, w [K,N] bf16, b [1,N] f32 -> [M,N] f32 (MXU, f32 accum).
    return jnp.dot(x.astype(BF16), w, preferred_element_type=F32) + b


def _ln(h, g, b):
    mu = jnp.mean(h, axis=-1, keepdims=True)
    var = jnp.mean(jnp.square(h - mu), axis=-1, keepdims=True)
    return (h - mu) * lax.rsqrt(var + EPS) * g + b


def _ffn(h, w1, b1, w2, b2):
    # Intermediate is only [Tq, FF]: the FFN is tiled over the same Q rows.
    f = jnp.maximum(_proj(h, w1, b1), 0.0)          # ReLU (nn.Transformer default)
    return _proj(f, w2, b2)


_TRANS_B = (((1,), (1,)), ((), ()))                 # q @ k.T dimension numbers


def _flash_attend(q, kv, out_scr, nhead, tk):
    """Online-softmax attention over K/V chunks of length `tk`.

    q       : [Tq, E]  f32, unscaled (1/sqrt(Dh) folded into q here, once).
    kv      : [Sk, 2E] bf16 (K | V), pre-projected by the kv_proj kernel.
    out_scr : [Tq, E]  bf16 VMEM scratch; per-head outputs are scattered into
              their lane offsets so the caller applies Wo with ONE K=E matmul.
    Scores never exceed [Tq, tk] f32; per-head m/l/acc carried as values.
    """
    Tq, E = q.shape
    Sk = kv.shape[0]
    Dh = E // nhead
    qb = (q * (1.0 / math.sqrt(Dh))).astype(BF16)   # scale folded into q
    nchunks = -(-Sk // tk)

    m = [jnp.full((Tq, 1), -jnp.inf, F32) for _ in range(nhead)]
    l = [jnp.zeros((Tq, 1), F32) for _ in range(nhead)]
    acc = [jnp.zeros((Tq, Dh), F32) for _ in range(nhead)]

    for c in range(nchunks):
        r0 = c * tk
        r1 = min(r0 + tk, Sk)
        kc = kv[r0:r1, :E]                          # [tc, E] bf16
        vc = kv[r0:r1, E:]                          # [tc, E] bf16
        for h in range(nhead):
            lo, hi = h * Dh, (h + 1) * Dh
            # TODO(synk): if a bundle dump shows a per-head vxpose here, emit K
            # pre-transposed from the kv_proj kernel; trans-B dot_general below
            # matches the reference Pallas TPU flash kernel.
            s = lax.dot_general(qb[:, lo:hi], kc[:, lo:hi], _TRANS_B,
                                preferred_element_type=F32)      # [Tq, tc]
            m_new = jnp.maximum(m[h], jnp.max(s, axis=-1, keepdims=True))
            alpha = jnp.exp(m[h] - m_new)
            p = jnp.exp(s - m_new)
            l[h] = alpha * l[h] + jnp.sum(p, axis=-1, keepdims=True)
            acc[h] = alpha * acc[h] + jnp.dot(p.astype(BF16), vc[:, lo:hi],
                                              preferred_element_type=F32)
            m[h] = m_new

    for h in range(nhead):
        lo = h * Dh
        o_h = acc[h] * pl.reciprocal(l[h], approx=True)
        out_scr[:, lo:lo + Dh] = o_h.astype(BF16)


# ---------------------------------------------------------------------------
# Kernels.
# ---------------------------------------------------------------------------
def _kv_proj_kernel(x_ref, wkv_ref, bkv_ref, o_ref):
    # Fused K/V projection for a row tile, emitted in bf16.
    o_ref[0] = _proj(x_ref[0], wkv_ref[...], bkv_ref[...]).astype(BF16)


def _encoder_layer_kernel(*refs, nhead, tk, fuse_final_ln):
    if fuse_final_ln:
        (xq_ref, kv_ref, wq, bq, wo, bo, g1, b1, w_ff1, b_ff1, w_ff2, b_ff2,
         g2, b2, gf, bf, o_ref, attn_scr) = refs
    else:
        (xq_ref, kv_ref, wq, bq, wo, bo, g1, b1, w_ff1, b_ff1, w_ff2, b_ff2,
         g2, b2, o_ref, attn_scr) = refs
        gf = bf = None

    x = xq_ref[0]                                          # [Tq, E] f32
    q = _proj(x, wq[...], bq[...])                         # [Tq, E] f32
    _flash_attend(q, kv_ref[0], attn_scr, nhead, tk)
    sa = jnp.dot(attn_scr[...], wo[...],                   # ONE K=E out-proj
                 preferred_element_type=F32) + bo[...]
    h = _ln(x + sa, g1[...], b1[...])
    ff = _ffn(h, w_ff1[...], b_ff1[...], w_ff2[...], b_ff2[...])
    y = _ln(h + ff, g2[...], b2[...])
    if fuse_final_ln:                                      # final encoder norm
        y = _ln(y, gf[...], bf[...])
    o_ref[0] = y


def _decoder_layer_kernel(*refs, nhead, tk_self, tk_cross):
    (xq_ref, kvs_ref, kvc_ref,
     sa_wq, sa_bq, sa_wo, sa_bo, g1, b1,
     ca_wq, ca_bq, ca_wo, ca_bo, g2, b2,
     w_ff1, b_ff1, w_ff2, b_ff2, g3, b3,
     o_ref, attn_scr) = refs

    x = xq_ref[0]                                          # [Tq, E] f32
    # Self-attention (no causal mask: reference forward uses tgt_mask=None).
    q = _proj(x, sa_wq[...], sa_bq[...])
    _flash_attend(q, kvs_ref[0], attn_scr, nhead, tk_self)
    sa = jnp.dot(attn_scr[...], sa_wo[...],
                 preferred_element_type=F32) + sa_bo[...]
    h = _ln(x + sa, g1[...], b1[...])
    # Cross-attention over encoder memory.
    q = _proj(h, ca_wq[...], ca_bq[...])
    _flash_attend(q, kvc_ref[0], attn_scr, nhead, tk_cross)
    ca = jnp.dot(attn_scr[...], ca_wo[...],
                 preferred_element_type=F32) + ca_bo[...]
    h = _ln(h + ca, g2[...], b2[...])
    ff = _ffn(h, w_ff1[...], b_ff1[...], w_ff2[...], b_ff2[...])
    o_ref[0] = _ln(h + ff, g3[...], b3[...])


def _ln_fc_kernel(x_ref, g_ref, b_ref, w_ref, bw_ref, o_ref):
    # Final decoder LayerNorm fused with fc_out; the output width is padded to
    # a 128-lane multiple so the logits stores are lane-dense.
    h = _ln(x_ref[...], g_ref[...], b_ref[...])
    o_ref[...] = _proj(h, w_ref[...], bw_ref[...])


# ---------------------------------------------------------------------------
# pallas_call wrappers.
# ---------------------------------------------------------------------------
def kv_proj(x, wkv, bkv):
    B, S, E = x.shape
    N = wkv.shape[1]
    tr = _tile(S, TR)
    return pl.pallas_call(
        _kv_proj_kernel,
        grid=(B, S // tr),
        in_specs=[pl.BlockSpec((1, tr, E), lambda b, r: (b, r, 0)),
                  _const_spec(wkv), _const_spec(bkv)],
        out_specs=pl.BlockSpec((1, tr, N), lambda b, r: (b, r, 0)),
        out_shape=jax.ShapeDtypeStruct((B, S, N), BF16),
        compiler_params=_cparams("parallel", "parallel"),
    )(x, wkv, bkv)


def encoder_layer(x, kv, p, nhead, *, final_ln=False, fg=None, fb=None):
    B, S, E = x.shape
    tq = _tile(S, TQ)
    ws = [p["wq"], p["bq"], p["wo"], p["bo"], p["ln1_g"], p["ln1_b"],
          p["w1"], p["b1"], p["w2"], p["b2"], p["ln2_g"], p["ln2_b"]]
    if final_ln:
        ws += [fg, fb]
    return pl.pallas_call(
        functools.partial(_encoder_layer_kernel, nhead=nhead, tk=min(TK, S),
                          fuse_final_ln=final_ln),
        grid=(B, S // tq),
        in_specs=([pl.BlockSpec((1, tq, E), lambda b, r: (b, r, 0)),
                   pl.BlockSpec((1, S, 2 * E), lambda b, r: (b, 0, 0))]
                  + [_const_spec(w) for w in ws]),
        out_specs=pl.BlockSpec((1, tq, E), lambda b, r: (b, r, 0)),
        out_shape=jax.ShapeDtypeStruct((B, S, E), F32),
        scratch_shapes=[pltpu.VMEM((tq, E), BF16)],
        compiler_params=_cparams("parallel", "parallel"),
    )(x, kv, *ws)


def decoder_layer(x, kv_self, kv_cross, p, nhead):
    B, St, E = x.shape
    Ss = kv_cross.shape[1]
    tq = _tile(St, TQ)
    ws = [p["sa_wq"], p["sa_bq"], p["sa_wo"], p["sa_bo"], p["ln1_g"], p["ln1_b"],
          p["ca_wq"], p["ca_bq"], p["ca_wo"], p["ca_bo"], p["ln2_g"], p["ln2_b"],
          p["w1"], p["b1"], p["w2"], p["b2"], p["ln3_g"], p["ln3_b"]]
    return pl.pallas_call(
        functools.partial(_decoder_layer_kernel, nhead=nhead,
                          tk_self=min(TK, St), tk_cross=min(TK, Ss)),
        grid=(B, St // tq),
        in_specs=([pl.BlockSpec((1, tq, E), lambda b, r: (b, r, 0)),
                   pl.BlockSpec((1, St, 2 * E), lambda b, r: (b, 0, 0)),
                   pl.BlockSpec((1, Ss, 2 * E), lambda b, r: (b, 0, 0))]
                  + [_const_spec(w) for w in ws]),
        out_specs=pl.BlockSpec((1, tq, E), lambda b, r: (b, r, 0)),
        out_shape=jax.ShapeDtypeStruct((B, St, E), F32),
        scratch_shapes=[pltpu.VMEM((tq, E), BF16)],
        compiler_params=_cparams("parallel", "parallel"),
    )(x, kv_self, kv_cross, *ws)


def layer_norm_fc(x2d, g, b, w, bw):
    M, E = x2d.shape
    N = w.shape[1]                    # already padded to a multiple of 128
    tr = _tile(M, TR)
    return pl.pallas_call(
        _ln_fc_kernel,
        grid=(M // tr,),
        in_specs=[pl.BlockSpec((tr, E), lambda r: (r, 0)),
                  _const_spec(g), _const_spec(b), _const_spec(w), _const_spec(bw)],
        out_specs=pl.BlockSpec((tr, N), lambda r: (r, 0)),
        out_shape=jax.ShapeDtypeStruct((M, N), F32),
        compiler_params=_cparams("parallel"),
    )(x2d, g, b, w, bw)


# ---------------------------------------------------------------------------
# Model composition.
# ---------------------------------------------------------------------------
def forward(params, src_ids, tgt_ids, *, nhead, out_vocab):
    E = params["in_emb"].shape[1]
    assert E % nhead == 0
    Ss, St = src_ids.shape[1], tgt_ids.shape[1]

    # TODO(synk): embedding lookup is a tiny gather; kept in XLA glue and
    # fused there with the positional add.
    src = (params["in_emb"][src_ids] + params["pos"][:, :Ss, :]).astype(F32)
    tgt = (params["out_emb"][tgt_ids] + params["pos"][:, :St, :]).astype(F32)

    mem = src
    n_enc = len(params["enc_layers"])
    for i, lp in enumerate(params["enc_layers"]):
        kv = kv_proj(mem, lp["wkv"], lp["bkv"])
        mem = encoder_layer(mem, kv, lp, nhead,
                            final_ln=(i == n_enc - 1),
                            fg=params["enc_ln_g"], fb=params["enc_ln_b"])

    x = tgt
    for lp in params["dec_layers"]:
        kv_s = kv_proj(x, lp["sa_wkv"], lp["sa_bkv"])
        kv_c = kv_proj(mem, lp["ca_wkv"], lp["ca_bkv"])
        x = decoder_layer(x, kv_s, kv_c, lp, nhead)

    B = x.shape[0]
    y = layer_norm_fc(x.reshape(B * St, E), params["dec_ln_g"],
                      params["dec_ln_b"], params["fc_w"], params["fc_b"])
    return y[:, :out_vocab].reshape(B, St, out_vocab)   # strip lane padding


# ---------------------------------------------------------------------------
# Deterministic synthetic parameters (shapes follow the PyTorch __init__;
# matmul weights stored bf16, biases / LN params / embeddings f32).
# ---------------------------------------------------------------------------
def init_params(key, in_vocab, out_vocab, E, num_layers, seq_len, ff):
    keys = iter(jax.random.split(key, 512))

    def w(shape, scale=0.02):
        return (scale * jax.random.normal(next(keys), shape)).astype(BF16)

    def b(shape, scale=0.02):
        return (scale * jax.random.normal(next(keys), shape)).astype(F32)

    def ln_pair(n):
        return jnp.ones((1, n), F32), jnp.zeros((1, n), F32)

    def enc_layer():
        g1, bt1 = ln_pair(E)
        g2, bt2 = ln_pair(E)
        return {
            "wq": w((E, E)), "bq": b((1, E)),
            "wkv": w((E, 2 * E)), "bkv": b((1, 2 * E)),
            "wo": w((E, E)), "bo": b((1, E)),
            "ln1_g": g1, "ln1_b": bt1,
            "w1": w((E, ff)), "b1": b((1, ff)),
            "w2": w((ff, E)), "b2": b((1, E)),
            "ln2_g": g2, "ln2_b": bt2,
        }

    def dec_layer():
        g1, bt1 = ln_pair(E)
        g2, bt2 = ln_pair(E)
        g3, bt3 = ln_pair(E)
        return {
            "sa_wq": w((E, E)), "sa_bq": b((1, E)),
            "sa_wkv": w((E, 2 * E)), "sa_bkv": b((1, 2 * E)),
            "sa_wo": w((E, E)), "sa_bo": b((1, E)),
            "ln1_g": g1, "ln1_b": bt1,
            "ca_wq": w((E, E)), "ca_bq": b((1, E)),
            "ca_wkv": w((E, 2 * E)), "ca_bkv": b((1, 2 * E)),
            "ca_wo": w((E, E)), "ca_bo": b((1, E)),
            "ln2_g": g2, "ln2_b": bt2,
            "w1": w((E, ff)), "b1": b((1, ff)),
            "w2": w((ff, E)), "b2": b((1, E)),
            "ln3_g": g3, "ln3_b": bt3,
        }

    vpad = ((out_vocab + 127) // 128) * 128     # lane-dense logits output
    fc_w = jnp.pad(w((E, out_vocab)), ((0, 0), (0, vpad - out_vocab)))
    fc_b = jnp.pad(b((1, out_vocab)), ((0, 0), (0, vpad - out_vocab)))

    enc_g, enc_b = ln_pair(E)
    dec_g, dec_b = ln_pair(E)
    return {
        "in_emb": (0.1 * jax.random.normal(next(keys), (in_vocab, E))).astype(F32),
        "out_emb": (0.1 * jax.random.normal(next(keys), (out_vocab, E))).astype(F32),
        "pos": (0.1 * jax.random.normal(next(keys), (1, seq_len, E))).astype(F32),
        "enc_layers": [enc_layer() for _ in range(num_layers)],
        "dec_layers": [dec_layer() for _ in range(num_layers)],
        "enc_ln_g": enc_g, "enc_ln_b": enc_b,
        "dec_ln_g": dec_g, "dec_ln_b": dec_b,
        "fc_w": fc_w, "fc_b": fc_b,
    }


if __name__ == "__main__":
    IN_VOCAB, OUT_VOCAB = 16, 18
    EMB, NHEAD, LAYERS, SEQ, FF = 32, 2, 2, 8, 64
    BATCH = 2

    key = jax.random.PRNGKey(0)
    k_param, k_src, k_tgt = jax.random.split(key, 3)
    params = init_params(k_param, IN_VOCAB, OUT_VOCAB, EMB, LAYERS, SEQ, FF)

    src_ids = jax.random.randint(k_src, (BATCH, SEQ), 0, IN_VOCAB, dtype=jnp.int32)
    tgt_ids = jax.random.randint(k_tgt, (BATCH, SEQ), 0, OUT_VOCAB, dtype=jnp.int32)

    fwd = jax.jit(functools.partial(forward, nhead=NHEAD, out_vocab=OUT_VOCAB))
    logits = fwd(params, src_ids, tgt_ids)
    jax.block_until_ready(logits)

    assert logits.shape == (BATCH, SEQ, OUT_VOCAB)
    assert logits.dtype == jnp.float32
    assert bool(jnp.all(jnp.isfinite(logits)))
    print("KERNEL_OK")
</pallas_src>

<mosaic_0001>
module attributes {stable_mosaic.version = 11 : i64} {
  func.func @_kv_proj_kernel(%arg0: i32, %arg1: i32, %arg2: memref<1x8x32xf32, #tpu.memory_space<vmem>>, %arg3: memref<32x64xbf16, #tpu.memory_space<vmem>>, %arg4: memref<1x64xf32, #tpu.memory_space<vmem>>, %arg5: memref<1x8x64xbf16, #tpu.memory_space<vmem>>) attributes {dimension_semantics = [#tpu.dimension_semantics<parallel>, #tpu.dimension_semantics<parallel>], iteration_bounds = array<i64: 2, 1>, scalar_prefetch = 0 : i64, scratch_operands = 0 : i64, tpu.core_type = #tpu.core_type<tc>, window_params = [{transform_indices = @transform_0, window_bounds = array<i64: 1, 8, 32>}, {pipeline_mode = #tpu.pipeline_mode<synchronous>, transform_indices = @transform_1, window_bounds = array<i64: 32, 64>}, {pipeline_mode = #tpu.pipeline_mode<synchronous>, transform_indices = @transform_2, window_bounds = array<i64: 1, 64>}, {transform_indices = @transform_3, window_bounds = array<i64: 1, 8, 64>}]} {
    %c0 = arith.constant 0 : index
    %c0_0 = arith.constant 0 : index
    %c0_1 = arith.constant 0 : index
    %0 = vector.load %arg2[%c0, %c0_0, %c0_1] : memref<1x8x32xf32, #tpu.memory_space<vmem>>, vector<1x8x32xf32>
    %1 = vector.shape_cast %0 : vector<1x8x32xf32> to vector<8x32xf32>
    %c0_2 = arith.constant 0 : index
    %c0_3 = arith.constant 0 : index
    %2 = vector.load %arg3[%c0_2, %c0_3] : memref<32x64xbf16, #tpu.memory_space<vmem>>, vector<32x64xbf16>
    %c0_4 = arith.constant 0 : index
    %c0_5 = arith.constant 0 : index
    %3 = vector.load %arg4[%c0_4, %c0_5] : memref<1x64xf32, #tpu.memory_space<vmem>>, vector<1x64xf32>
    %4 = arith.truncf %1 : vector<8x32xf32> to vector<8x32xbf16>
    %cst = arith.constant dense<0.000000e+00> : vector<8x64xf32>
    %5 = tpu.matmul %4, %2, %cst {dimension_numbers = #tpu.dot_dimension_numbers<[1], [0], [0], [1], [0, 0, 1, 1], [], []>} : vector<8x32xbf16>, vector<32x64xbf16>, vector<8x64xf32> -> vector<8x64xf32>
    %6 = vector.broadcast %3 : vector<1x64xf32> to vector<8x64xf32>
    %7 = arith.addf %5, %6 : vector<8x64xf32>
    %8 = arith.truncf %7 : vector<8x64xf32> to vector<8x64xbf16>
    %c0_6 = arith.constant 0 : index
    %c0_7 = arith.constant 0 : index
    %c0_8 = arith.constant 0 : index
    %9 = vector.load %arg5[%c0_6, %c0_7, %c0_8] : memref<1x8x64xbf16, #tpu.memory_space<vmem>>, vector<1x8x64xbf16>
    %10 = vector.shape_cast %9 : vector<1x8x64xbf16> to vector<8x64xbf16>
    %11 = vector.shape_cast %8 : vector<8x64xbf16> to vector<1x8x64xbf16>
    tpu.vector_store %arg5[%c0_6, %c0_7, %c0_8], %11 {strides = array<i32>} : memref<1x8x64xbf16, #tpu.memory_space<vmem>>, vector<1x8x64xbf16>,
    return
  }
  func.func @transform_0(%arg0: i32, %arg1: i32) -> (i32, i32, i32) {
    %c0_i32 = arith.constant 0 : i32
    %c0_i32_0 = arith.constant 0 : i32
    return %arg0, %arg1, %c0_i32 : i32, i32, i32
  }
  func.func @transform_1(%arg0: i32, %arg1: i32) -> (i32, i32) {
    %c0_i32 = arith.constant 0 : i32
    %c0_i32_0 = arith.constant 0 : i32
    %c0_i32_1 = arith.constant 0 : i32
    return %c0_i32, %c0_i32_0 : i32, i32
  }
  func.func @transform_2(%arg0: i32, %arg1: i32) -> (i32, i32) {
    %c0_i32 = arith.constant 0 : i32
    %c0_i32_0 = arith.constant 0 : i32
    %c0_i32_1 = arith.constant 0 : i32
    return %c0_i32, %c0_i32_0 : i32, i32
  }
  func.func @transform_3(%arg0: i32, %arg1: i32) -> (i32, i32, i32) {
    %c0_i32 = arith.constant 0 : i32
    %c0_i32_0 = arith.constant 0 : i32
    return %arg0, %arg1, %c0_i32 : i32, i32, i32
  }
}

module attributes {stable_mosaic.version = 11 : i64} {
  func.func @_encoder_layer_kernel(%arg0: i32, %arg1: i32, %arg2: memref<1x8x32xf32, #tpu.memory_space<vmem>>, %arg3: memref<1x8x64xbf16, #tpu.memory_space<vmem>>, %arg4: memref<32x32xbf16, #tpu.memory_space<vmem>>, %arg5: memref<1x32xf32, #tpu.memory_space<vmem>>, %arg6: memref<32x32xbf16, #tpu.memory_space<vmem>>, %arg7: memref<1x32xf32, #tpu.memory_space<vmem>>, %arg8: memref<1x32xf32, #tpu.memory_space<vmem>>, %arg9: memref<1x32xf32, #tpu.memory_space<vmem>>, %arg10: memref<32x64xbf16, #tpu.memory_space<vmem>>, %arg11: memref<1x64xf32, #tpu.memory_space<vmem>>, %arg12: memref<64x32xbf16, #tpu.memory_space<vmem>>, %arg13: memref<1x32xf32, #tpu.memory_space<vmem>>, %arg14: memref<1x32xf32, #tpu.memory_space<vmem>>, %arg15: memref<1x32xf32, #tpu.memory_space<vmem>>, %arg16: memref<1x8x32xf32, #tpu.memory_space<vmem>>, %arg17: memref<8x32xbf16, #tpu.memory_space<vmem>>) attributes {dimension_semantics = [#tpu.dimension_semantics<parallel>, #tpu.dimension_semantics<parallel>], iteration_bounds = array<i64: 2, 1>, scalar_prefetch = 0 : i64, scratch_operands = 1 : i64, tpu.core_type = #tpu.core_type<tc>, window_params = [{transform_indices = @transform_0, window_bounds = array<i64: 1, 8, 32>}, {transform_indices = @transform_1, window_bounds = array<i64: 1, 8, 64>}, {pipeline_mode = #tpu.pipeline_mode<synchronous>, transform_indices = @transform_2, window_bounds = array<i64: 32, 32>}, {pipeline_mode = #tpu.pipeline_mode<synchronous>, transform_indices = @transform_3, window_bounds = array<i64: 1, 32>}, {pipeline_mode = #tpu.pipeline_mode<synchronous>, transform_indices = @transform_4, window_bounds = array<i64: 32, 32>}, {pipeline_mode = #tpu.pipeline_mode<synchronous>, transform_indices = @transform_5, window_bounds = array<i64: 1, 32>}, {pipeline_mode = #tpu.pipeline_mode<synchronous>, transform_indices = @transform_6, window_bounds = array<i64: 1, 32>}, {pipeline_mode = #tpu.pipeline_mode<synchronous>, transform_indices = @transform_7, window_bounds = array<i64: 1, 32>}, {pipeline_mode = #tpu.pipeline_mode<synchronous>, transform_indices = @transform_8, window_bounds = array<i64: 32, 64>}, {pipeline_mode = #tpu.pipeline_mode<synchronous>, transform_indices = @transform_9, window_bounds = array<i64: 1, 64>}, {pipeline_mode = #tpu.pipeline_mode<synchronous>, transform_indices = @transform_10, window_bounds = array<i64: 64, 32>}, {pipeline_mode = #tpu.pipeline_mode<synchronous>, transform_indices = @transform_11, window_bounds = array<i64: 1, 32>}, {pipeline_mode = #tpu.pipeline_mode<synchronous>, transform_indices = @transform_12, window_bounds = array<i64: 1, 32>}, {pipeline_mode = #tpu.pipeline_mode<synchronous>, transform_indices = @transform_13, window_bounds = array<i64: 1, 32>}, {transform_indices = @transform_14, window_bounds = array<i64: 1, 8, 32>}]} {
    %c0 = arith.constant 0 : index
    %c0_0 = arith.constant 0 : index
    %c0_1 = arith.constant 0 : index
    %0 = vector.load %arg2[%c0, %c0_0, %c0_1] : memref<1x8x32xf32, #tpu.memory_space<vmem>>, vector<1x8x32xf32>
    %1 = vector.shape_cast %0 : vector<1x8x32xf32> to vector<8x32xf32>
    %c0_2 = arith.constant 0 : index
    %c0_3 = arith.constant 0 : index
    %2 = vector.load %arg4[%c0_2, %c0_3] : memref<32x32xbf16, #tpu.memory_space<vmem>>, vector<32x32xbf16>
    %c0_4 = arith.constant 0 : index
    %c0_5 = arith.constant 0 : index
    %3 = vector.load %arg5[%c0_4, %c0_5] : memref<1x32xf32, #tpu.memory_space<vmem>>, vector<1x32xf32>
    %4 = arith.truncf %1 : vector<8x32xf32> to vector<8x32xbf16>
    %cst = arith.constant dense<0.000000e+00> : vector<8x32xf32>
    %5 = tpu.matmul %4, %2, %cst {dimension_numbers = #tpu.dot_dimension_numbers<[1], [0], [0], [1], [0, 0, 1, 1], [], []>} : vector<8x32xbf16>, vector<32x32xbf16>, vector<8x32xf32> -> vector<8x32xf32>
    %6 = vector.broadcast %3 : vector<1x32xf32> to vector<8x32xf32>
    %7 = arith.addf %5, %6 : vector<8x32xf32>
    %c0_6 = arith.constant 0 : index
    %c0_7 = arith.constant 0 : index
    %c0_8 = arith.constant 0 : index
    %8 = vector.load %arg3[%c0_6, %c0_7, %c0_8] : memref<1x8x64xbf16, #tpu.memory_space<vmem>>, vector<1x8x64xbf16>
    %9 = vector.shape_cast %8 : vector<1x8x64xbf16> to vector<8x64xbf16>
    %cst_9 = arith.constant 2.500000e-01 : f32
    %10 = vector.broadcast %cst_9 : f32 to vector<8x32xf32>
    %11 = arith.mulf %7, %10 : vector<8x32xf32>
    %12 = arith.truncf %11 : vector<8x32xf32> to vector<8x32xbf16>
    %cst_10 = arith.constant 0xFF800000 : f32
    %13 = vector.broadcast %cst_10 : f32 to vector<8x1xf32>
    %cst_11 = arith.constant 0xFF800000 : f32
    %14 = vector.broadcast %cst_11 : f32 to vector<8x1xf32>
    %cst_12 = arith.constant 0.000000e+00 : f32
    %15 = vector.broadcast %cst_12 : f32 to vector<8x1xf32>
    %cst_13 = arith.constant 0.000000e+00 : f32
    %16 = vector.broadcast %cst_13 : f32 to vector<8x1xf32>
    %cst_14 = arith.constant 0.000000e+00 : f32
    %17 = vector.broadcast %cst_14 : f32 to vector<8x16xf32>
    %cst_15 = arith.constant 0.000000e+00 : f32
    %18 = vector.broadcast %cst_15 : f32 to vector<8x16xf32>
    %19 = vector.extract_strided_slice %9 {offsets = [0, 0], sizes = [8, 32], strides = [1, 1]} : vector<8x64xbf16> to vector<8x32xbf16>
    %20 = vector.extract_strided_slice %9 {offsets = [0, 32], sizes = [8, 32], strides = [1, 1]} : vector<8x64xbf16> to vector<8x32xbf16>
    %21 = vector.extract_strided_slice %12 {offsets = [0, 0], sizes = [8, 16], strides = [1, 1]} : vector<8x32xbf16> to vector<8x16xbf16>
    %22 = vector.extract_strided_slice %19 {offsets = [0, 0], sizes = [8, 16], strides = [1, 1]} : vector<8x32xbf16> to vector<8x16xbf16>
    %cst_16 = arith.constant dense<0.000000e+00> : vector<8x8xf32>
    %23 = tpu.matmul %21, %22, %cst_16 {dimension_numbers = #tpu.dot_dimension_numbers<[1], [1], [0], [0], [0, 0, 1, 0], [], []>} : vector<8x16xbf16>, vector<8x16xbf16>, vector<8x8xf32> -> vector<8x8xf32>
    %cst_17 = arith.constant dense<0xFF800000> : vector<8xf32>
    %24 = vector.multi_reduction <maximumf>, %23, %cst_17 [1] : vector<8x8xf32> to vector<8xf32>
    %25 = vector.shape_cast %24 : vector<8xf32> to vector<8x1xf32>
    %26 = arith.maximumf %13, %25 : vector<8x1xf32>
    %27 = arith.subf %13, %26 : vector<8x1xf32>
    %28 = math.exp %27 : vector<8x1xf32>
    %29 = vector.broadcast %26 : vector<8x1xf32> to vector<8x8xf32>
    %30 = arith.subf %23, %29 : vector<8x8xf32>
    %31 = math.exp %30 : vector<8x8xf32>
    %32 = arith.mulf %28, %15 : vector<8x1xf32>
    %cst_18 = arith.constant dense<0.000000e+00> : vector<8xf32>
    %33 = vector.multi_reduction <add>, %31, %cst_18 [1] : vector<8x8xf32> to vector<8xf32>
    %34 = vector.shape_cast %33 : vector<8xf32> to vector<8x1xf32>
    %35 = arith.addf %32, %34 : vector<8x1xf32>
    %36 = vector.broadcast %28 : vector<8x1xf32> to vector<8x16xf32>
    %37 = arith.mulf %36, %17 : vector<8x16xf32>
    %38 = arith.truncf %31 : vector<8x8xf32> to vector<8x8xbf16>
    %39 = vector.extract_strided_slice %20 {offsets = [0, 0], sizes = [8, 16], strides = [1, 1]} : vector<8x32xbf16> to vector<8x16xbf16>
    %cst_19 = arith.constant dense<0.000000e+00> : vector<8x16xf32>
    %40 = tpu.matmul %38, %39, %cst_19 {dimension_numbers = #tpu.dot_dimension_numbers<[1], [0], [0], [1], [0, 0, 1, 1], [], []>} : vector<8x8xbf16>, vector<8x16xbf16>, vector<8x16xf32> -> vector<8x16xf32>
    %41 = arith.addf %37, %40 : vector<8x16xf32>
    %42 = vector.extract_strided_slice %12 {offsets = [0, 16], sizes = [8, 16], strides = [1, 1]} : vector<8x32xbf16> to vector<8x16xbf16>
    %43 = vector.extract_strided_slice %19 {offsets = [0, 16], sizes = [8, 16], strides = [1, 1]} : vector<8x32xbf16> to vector<8x16xbf16>
    %cst_20 = arith.constant dense<0.000000e+00> : vector<8x8xf32>
    %44 = tpu.matmul %42, %43, %cst_20 {dimension_numbers = #tpu.dot_dimension_numbers<[1], [1], [0], [0], [0, 0, 1, 0], [], []>} : vector<8x16xbf16>, vector<8x16xbf16>, vector<8x8xf32> -> vector<8x8xf32>
    %cst_21 = arith.constant dense<0xFF800000> : vector<8xf32>
    %45 = vector.multi_reduction <maximumf>, %44, %cst_21 [1] : vector<8x8xf32> to vector<8xf32>
    %46 = vector.shape_cast %45 : vector<8xf32> to vector<8x1xf32>
    %47 = arith.maximumf %14, %46 : vector<8x1xf32>
    %48 = arith.subf %14, %47 : vector<8x1xf32>
    %49 = math.exp %48 : vector<8x1xf32>
    %50 = vector.broadcast %47 : vector<8x1xf32> to vector<8x8xf32>
    %51 = arith.subf %44, %50 : vector<8x8xf32>
    %52 = math.exp %51 : vector<8x8xf32>
    %53 = arith.mulf %49, %16 : vector<8x1xf32>
    %cst_22 = arith.constant dense<0.000000e+00> : vector<8xf32>
    %54 = vector.multi_reduction <add>, %52, %cst_22 [1] : vector<8x8xf32> to vector<8xf32>
    %55 = vector.shape_cast %54 : vector<8xf32> to vector<8x1xf32>
    %56 = arith.addf %53, %55 : vector<8x1xf32>
    %57 = vector.broadcast %49 : vector<8x1xf32> to vector<8x16xf32>
    %58 = arith.mulf %57, %18 : vector<8x16xf32>
    %59 = arith.truncf %52 : vector<8x8xf32> to vector<8x8xbf16>
    %60 = vector.extract_strided_slice %20 {offsets = [0, 16], sizes = [8, 16], strides = [1, 1]} : vector<8x32xbf16> to vector<8x16xbf16>
    %cst_23 = arith.constant dense<0.000000e+00> : vector<8x16xf32>
    %61 = tpu.matmul %59, %60, %cst_23 {dimension_numbers = #tpu.dot_dimension_numbers<[1], [0], [0], [1], [0, 0, 1, 1], [], []>} : vector<8x8xbf16>, vector<8x16xbf16>, vector<8x16xf32> -> vector<8x16xf32>
    %62 = arith.addf %58, %61 : vector<8x16xf32>
    %63 = tpu.reciprocal %35 {approx = true} : vector<8x1xf32> -> vector<8x1xf32>
    %64 = vector.broadcast %63 : vector<8x1xf32> to vector<8x16xf32>
    %65 = arith.mulf %41, %64 : vector<8x16xf32>
    %66 = arith.truncf %65 : vector<8x16xf32> to vector<8x16xbf16>
    %c0_24 = arith.constant 0 : index
    %c0_25 = arith.constant 0 : index
    %67 = vector.load %arg17[%c0_24, %c0_25] : memref<8x32xbf16, #tpu.memory_space<vmem>>, vector<8x16xbf16>
    tpu.vector_store %arg17[%c0_24, %c0_25], %66 {strides = array<i32>} : memref<8x32xbf16, #tpu.memory_space<vmem>>, vector<8x16xbf16>,
    %68 = tpu.reciprocal %56 {approx = true} : vector<8x1xf32> -> vector<8x1xf32>
    %69 = vector.broadcast %68 : vector<8x1xf32> to vector<8x16xf32>
    %70 = arith.mulf %62, %69 : vector<8x16xf32>
    %71 = arith.truncf %70 : vector<8x16xf32> to vector<8x16xbf16>
    %c0_26 = arith.constant 0 : index
    %c16 = arith.constant 16 : index
    %72 = vector.load %arg17[%c0_26, %c16] : memref<8x32xbf16, #tpu.memory_space<vmem>>, vector<8x16xbf16>
    tpu.vector_store %arg17[%c0_26, %c16], %71 {strides = array<i32>} : memref<8x32xbf16, #tpu.memory_space<vmem>>, vector<8x16xbf16>,
    %c0_27 = arith.constant 0 : index
    %c0_28 = arith.constant 0 : index
    %73 = vector.load %arg17[%c0_27, %c0_28] : memref<8x32xbf16, #tpu.memory_space<vmem>>, vector<8x32xbf16>
    %c0_29 = arith.constant 0 : index
    %c0_30 = arith.constant 0 : index
    %74 = vector.load %arg6[%c0_29, %c0_30] : memref<32x32xbf16, #tpu.memory_space<vmem>>, vector<32x32xbf16>
    %cst_31 = arith.constant dense<0.000000e+00> : vector<8x32xf32>
    %75 = tpu.matmul %73, %74, %cst_31 {dimension_numbers = #tpu.dot_dimension_numbers<[1], [0], [0], [1], [0, 0, 1, 1], [], []>} : vector<8x32xbf16>, vector<32x32xbf16>, vector<8x32xf32> -> vector<8x32xf32>
    %c0_32 = arith.constant 0 : index
    %c0_33 = arith.constant 0 : index
    %76 = vector.load %arg7[%c0_32, %c0_33] : memref<1x32xf32, #tpu.memory_space<vmem>>, vector<1x32xf32>
    %77 = vector.broadcast %76 : vector<1x32xf32> to vector<8x32xf32>
    %78 = arith.addf %75, %77 : vector<8x32xf32>
    %79 = arith.addf %1, %78 : vector<8x32xf32>
    %c0_34 = arith.constant 0 : index
    %c0_35 = arith.constant 0 : index
    %80 = vector.load %arg8[%c0_34, %c0_35] : memref<1x32xf32, #tpu.memory_space<vmem>>, vector<1x32xf32>
    %c0_36 = arith.constant 0 : index
    %c0_37 = arith.constant 0 : index
    %81 = vector.load %arg9[%c0_36, %c0_37] : memref<1x32xf32, #tpu.memory_space<vmem>>, vector<1x32xf32>
    %cst_38 = arith.constant dense<0.000000e+00> : vector<8xf32>
    %82 = vector.multi_reduction <add>, %79, %cst_38 [1] : vector<8x32xf32> to vector<8xf32>
    %83 = vector.shape_cast %82 : vector<8xf32> to vector<8x1xf32>
    %cst_39 = arith.constant 3.200000e+01 : f32
    %84 = vector.broadcast %cst_39 : f32 to vector<8x1xf32>
    %85 = arith.divf %83, %84 : vector<8x1xf32>
    %86 = vector.broadcast %85 : vector<8x1xf32> to vector<8x32xf32>
    %87 = arith.subf %79, %86 : vector<8x32xf32>
    %88 = arith.mulf %87, %87 : vector<8x32xf32>
    %cst_40 = arith.constant dense<0.000000e+00> : vector<8xf32>
    %89 = vector.multi_reduction <add>, %88, %cst_40 [1] : vector<8x32xf32> to vector<8xf32>
    %90 = vector.shape_cast %89 : vector<8xf32> to vector<8x1xf32>
    %cst_41 = arith.constant 3.200000e+01 : f32
    %91 = vector.broadcast %cst_41 : f32 to vector<8x1xf32>
    %92 = arith.divf %90, %91 : vector<8x1xf32>
    %93 = vector.broadcast %85 : vector<8x1xf32> to vector<8x32xf32>
    %94 = arith.subf %79, %93 : vector<8x32xf32>
    %cst_42 = arith.constant 9.99999974E-6 : f32
    %95 = vector.broadcast %cst_42 : f32 to vector<8x1xf32>
    %96 = arith.addf %92, %95 : vector<8x1xf32>
    %97 = math.rsqrt %96 : vector<8x1xf32>
    %98 = vector.broadcast %97 : vector<8x1xf32> to vector<8x32xf32>
    %99 = arith.mulf %94, %98 : vector<8x32xf32>
    %100 = vector.broadcast %80 : vector<1x32xf32> to vector<8x32xf32>
    %101 = arith.mulf %99, %100 : vector<8x32xf32>
    %102 = vector.broadcast %81 : vector<1x32xf32> to vector<8x32xf32>
    %103 = arith.addf %101, %102 : vector<8x32xf32>
    %c0_43 = arith.constant 0 : index
    %c0_44 = arith.constant 0 : index
    %104 = vector.load %arg10[%c0_43, %c0_44] : memref<32x64xbf16, #tpu.memory_space<vmem>>, vector<32x64xbf16>
    %c0_45 = arith.constant 0 : index
    %c0_46 = arith.constant 0 : index
    %105 = vector.load %arg11[%c0_45, %c0_46] : memref<1x64xf32, #tpu.memory_space<vmem>>, vector<1x64xf32>
    %c0_47 = arith.constant 0 : index
    %c0_48 = arith.constant 0 : index
    %106 = vector.load %arg12[%c0_47, %c0_48] : memref<64x32xbf16, #tpu.memory_space<vmem>>, vector<64x32xbf16>
    %c0_49 = arith.constant 0 : index
    %c0_50 = arith.constant 0 : index
    %107 = vector.load %arg13[%c0_49, %c0_50] : memref<1x32xf32, #tpu.memory_space<vmem>>, vector<1x32xf32>
    %108 = arith.truncf %103 : vector<8x32xf32> to vector<8x32xbf16>
    %cst_51 = arith.constant dense<0.000000e+00> : vector<8x64xf32>
    %109 = tpu.matmul %108, %104, %cst_51 {dimension_numbers = #tpu.dot_dimension_numbers<[1], [0], [0], [1], [0, 0, 1, 1], [], []>} : vector<8x32xbf16>, vector<32x64xbf16>, vector<8x64xf32> -> vector<8x64xf32>
    %110 = vector.broadcast %105 : vector<1x64xf32> to vector<8x64xf32>
    %111 = arith.addf %109, %110 : vector<8x64xf32>
    %cst_52 = arith.constant 0.000000e+00 : f32
    %112 = vector.broadcast %cst_52 : f32 to vector<8x64xf32>
    %113 = arith.maximumf %111, %112 : vector<8x64xf32>
    %114 = arith.truncf %113 : vector<8x64xf32> to vector<8x64xbf16>
    %cst_53 = arith.constant dense<0.000000e+00> : vector<8x32xf32>
    %115 = tpu.matmul %114, %106, %cst_53 {dimension_numbers = #tpu.dot_dimension_numbers<[1], [0], [0], [1], [0, 0, 1, 1], [], []>} : vector<8x64xbf16>, vector<64x32xbf16>, vector<8x32xf32> -> vector<8x32xf32>
    %116 = vector.broadcast %107 : vector<1x32xf32> to vector<8x32xf32>
    %117 = arith.addf %115, %116 : vector<8x32xf32>
    %118 = arith.addf %103, %117 : vector<8x32xf32>
    %c0_54 = arith.constant 0 : index
    %c0_55 = arith.constant 0 : index
    %119 = vector.load %arg14[%c0_54, %c0_55] : memref<1x32xf32, #tpu.memory_space<vmem>>, vector<1x32xf32>
    %c0_56 = arith.constant 0 : index
    %c0_57 = arith.constant 0 : index
    %120 = vector.load %arg15[%c0_56, %c0_57] : memref<1x32xf32, #tpu.memory_space<vmem>>, vector<1x32xf32>
    %cst_58 = arith.constant dense<0.000000e+00> : vector<8xf32>
    %121 = vector.multi_reduction <add>, %118, %cst_58 [1] : vector<8x32xf32> to vector<8xf32>
    %122 = vector.shape_cast %121 : vector<8xf32> to vector<8x1xf32>
    %cst_59 = arith.constant 3.200000e+01 : f32
    %123 = vector.broadcast %cst_59 : f32 to vector<8x1xf32>
    %124 = arith.divf %122, %123 : vector<8x1xf32>
    %125 = vector.broadcast %124 : vector<8x1xf32> to vector<8x32xf32>
    %126 = arith.subf %118, %125 : vector<8x32xf32>
    %127 = arith.mulf %126, %126 : vector<8x32xf32>
    %cst_60 = arith.constant dense<0.000000e+00> : vector<8xf32>
    %128 = vector.multi_reduction <add>, %127, %cst_60 [1] : vector<8x32xf32> to vector<8xf32>
    %129 = vector.shape_cast %128 : vector<8xf32> to vector<8x1xf32>
    %cst_61 = arith.constant 3.200000e+01 : f32
    %130 = vector.broadcast %cst_61 : f32 to vector<8x1xf32>
    %131 = arith.divf %129, %130 : vector<8x1xf32>
    %132 = vector.broadcast %124 : vector<8x1xf32> to vector<8x32xf32>
    %133 = arith.subf %118, %132 : vector<8x32xf32>
    %cst_62 = arith.constant 9.99999974E-6 : f32
    %134 = vector.broadcast %cst_62 : f32 to vector<8x1xf32>
    %135 = arith.addf %131, %134 : vector<8x1xf32>
    %136 = math.rsqrt %135 : vector<8x1xf32>
    %137 = vector.broadcast %136 : vector<8x1xf32> to vector<8x32xf32>
    %138 = arith.mulf %133, %137 : vector<8x32xf32>
    %139 = vector.broadcast %119 : vector<1x32xf32> to vector<8x32xf32>
    %140 = arith.mulf %138, %139 : vector<8x32xf32>
    %141 = vector.broadcast %120 : vector<1x32xf32> to vector<8x32xf32>
    %142 = arith.addf %140, %141 : vector<8x32xf32>
    %c0_63 = arith.constant 0 : index
    %c0_64 = arith.constant 0 : index
    %c0_65 = arith.constant 0 : index
    %143 = vector.load %arg16[%c0_63, %c0_64, %c0_65] : memref<1x8x32xf32, #tpu.memory_space<vmem>>, vector<1x8x32xf32>
    %144 = vector.shape_cast %143 : vector<1x8x32xf32> to vector<8x32xf32>
    %145 = vector.shape_cast %142 : vector<8x32xf32> to vector<1x8x32xf32>
    tpu.vector_store %arg16[%c0_63, %c0_64, %c0_65], %145 {strides = array<i32>} : memref<1x8x32xf32, #tpu.memory_space<vmem>>, vector<1x8x32xf32>,
    return
  }
  func.func @transform_0(%arg0: i32, %arg1: i32) -> (i32, i32, i32) {
    %c0_i32 = arith.constant 0 : i32
    %c0_i32_0 = arith.constant 0 : i32
    return %arg0, %arg1, %c0_i32 : i32, i32, i32
  }
  func.func @transform_1(%arg0: i32, %arg1: i32) -> (i32, i32, i32) {
    %c0_i32 = arith.constant 0 : i32
    %c0_i32_0 = arith.constant 0 : i32
    %c0_i32_1 = arith.constant 0 : i32
    return %arg0, %c0_i32, %c0_i32_0 : i32, i32, i32
  }
  func.func @transform_2(%arg0: i32, %arg1: i32) -> (i32, i32) {
    %c0_i32 = arith.constant 0 : i32
    %c0_i32_0 = arith.constant 0 : i32
    %c0_i32_1 = arith.constant 0 : i32
    return %c0_i32, %c0_i32_0 : i32, i32
  }
  func.func @transform_3(%arg0: i32, %arg1: i32) -> (i32, i32) {
    %c0_i32 = arith.constant 0 : i32
    %c0_i32_0 = arith.constant 0 : i32
    %c0_i32_1 = arith.constant 0 : i32
    return %c0_i32, %c0_i32_0 : i32, i32
  }
  func.func @transform_4(%arg0: i32, %arg1: i32) -> (i32, i32) {
    %c0_i32 = arith.constant 0 : i32
    %c0_i32_0 = arith.constant 0 : i32
    %c0_i32_1 = arith.constant 0 : i32
    return %c0_i32, %c0_i32_0 : i32, i32
  }
  func.func @transform_5(%arg0: i32, %arg1: i32) -> (i32, i32) {
    %c0_i32 = arith.constant 0 : i32
    %c0_i32_0 = arith.constant 0 : i32
    %c0_i32_1 = arith.constant 0 : i32
    return %c0_i32, %c0_i32_0 : i32, i32
  }
  func.func @transform_6(%arg0: i32, %arg1: i32) -> (i32, i32) {
    %c0_i32 = arith.constant 0 : i32
    %c0_i32_0 = arith.constant 0 : i32
    %c0_i32_1 = arith.constant 0 : i32
    return %c0_i32, %c0_i32_0 : i32, i32
  }
  func.func @transform_7(%arg0: i32, %arg1: i32) -> (i32, i32) {
    %c0_i32 = arith.constant 0 : i32
    %c0_i32_0 = arith.constant 0 : i32
    %c0_i32_1 = arith.constant 0 : i32
    return %c0_i32, %c0_i32_0 : i32, i32
  }
  func.func @transform_8(%arg0: i32, %arg1: i32) -> (i32, i32) {
    %c0_i32 = arith.constant 0 : i32
    %c0_i32_0 = arith.constant 0 : i32
    %c0_i32_1 = arith.constant 0 : i32
    return %c0_i32, %c0_i32_0 : i32, i32
  }
  func.func @transform_9(%arg0: i32, %arg1: i32) -> (i32, i32) {
    %c0_i32 = arith.constant 0 : i32
    %c0_i32_0 = arith.constant 0 : i32
    %c0_i32_1 = arith.constant 0 : i32
    return %c0_i32, %c0_i32_0 : i32, i32
  }
  func.func @transform_10(%arg0: i32, %arg1: i32) -> (i32, i32) {
    %c0_i32 = arith.constant 0 : i32
    %c0_i32_0 = arith.constant 0 : i32
    %c0_i32_1 = arith.constant 0 : i32
    return %c0_i32, %c0_i32_0 : i32, i32
  }
  func.func @transform_11(%arg0: i32, %arg1: i32) -> (i32, i32) {
    %c0_i32 = arith.constant 0 : i32
    %c0_i32_0 = arith.constant 0 : i32
    %c0_i32_1 = arith.constant 0 : i32
    return %c0_i32, %c0_i32_0 : i32, i32
  }
  func.func @transform_12(%arg0: i32, %arg1: i32) -> (i32, i32) {
    %c0_i32 = arith.constant 0 : i32
    %c0_i32_0 = arith.constant 0 : i32
    %c0_i32_1 = arith.constant 0 : i32
    return %c0_i32, %c0_i32_0 : i32, i32
  }
  func.func @transform_13(%arg0: i32, %arg1: i32) -> (i32, i32) {
    %c0_i32 = arith.constant 0 : i32
    %c0_i32_0 = arith.constant 0 : i32
    %c0_i32_1 = arith.constant 0 : i32
    return %c0_i32, %c0_i32_0 : i32, i32
  }
  func.func @transform_14(%arg0: i32, %arg1: i32) -> (i32, i32, i32) {
    %c0_i32 = arith.constant 0 : i32
    %c0_i32_0 = arith.constant 0 : i32
    return %arg0, %arg1, %c0_i32 : i32, i32, i32
  }
}

module attributes {stable_mosaic.version = 11 : i64} {
  func.func @_kv_proj_kernel(%arg0: i32, %arg1: i32, %arg2: memref<1x8x32xf32, #tpu.memory_space<vmem>>, %arg3: memref<32x64xbf16, #tpu.memory_space<vmem>>, %arg4: memref<1x64xf32, #tpu.memory_space<vmem>>, %arg5: memref<1x8x64xbf16, #tpu.memory_space<vmem>>) attributes {dimension_semantics = [#tpu.dimension_semantics<parallel>, #tpu.dimension_semantics<parallel>], iteration_bounds = array<i64: 2, 1>, scalar_prefetch = 0 : i64, scratch_operands = 0 : i64, tpu.core_type = #tpu.core_type<tc>, window_params = [{transform_indices = @transform_0, window_bounds = array<i64: 1, 8, 32>}, {pipeline_mode = #tpu.pipeline_mode<synchronous>, transform_indices = @transform_1, window_bounds = array<i64: 32, 64>}, {pipeline_mode = #tpu.pipeline_mode<synchronous>, transform_indices = @transform_2, window_bounds = array<i64: 1, 64>}, {transform_indices = @transform_3, window_bounds = array<i64: 1, 8, 64>}]} {
    %c0 = arith.constant 0 : index
    %c0_0 = arith.constant 0 : index
    %c0_1 = arith.constant 0 : index
    %0 = vector.load %arg2[%c0, %c0_0, %c0_1] : memref<1x8x32xf32, #tpu.memory_space<vmem>>, vector<1x8x32xf32>
    %1 = vector.shape_cast %0 : vector<1x8x32xf32> to vector<8x32xf32>
    %c0_2 = arith.constant 0 : index
    %c0_3 = arith.constant 0 : index
    %2 = vector.load %arg3[%c0_2, %c0_3] : memref<32x64xbf16, #tpu.memory_space<vmem>>, vector<32x64xbf16>
    %c0_4 = arith.constant 0 : index
    %c0_5 = arith.constant 0 : index
    %3 = vector.load %arg4[%c0_4, %c0_5] : memref<1x64xf32, #tpu.memory_space<vmem>>, vector<1x64xf32>
    %4 = arith.truncf %1 : vector<8x32xf32> to vector<8x32xbf16>
    %cst = arith.constant dense<0.000000e+00> : vector<8x64xf32>
    %5 = tpu.matmul %4, %2, %cst {dimension_numbers = #tpu.dot_dimension_numbers<[1], [0], [0], [1], [0, 0, 1, 1], [], []>} : vector<8x32xbf16>, vector<32x64xbf16>, vector<8x64xf32> -> vector<8x64xf32>
    %6 = vector.broadcast %3 : vector<1x64xf32> to vector<8x64xf32>
    %7 = arith.addf %5, %6 : vector<8x64xf32>
    %8 = arith.truncf %7 : vector<8x64xf32> to vector<8x64xbf16>
    %c0_6 = arith.constant 0 : index
    %c0_7 = arith.constant 0 : index
    %c0_8 = arith.constant 0 : index
    %9 = vector.load %arg5[%c0_6, %c0_7, %c0_8] : memref<1x8x64xbf16, #tpu.memory_space<vmem>>, vector<1x8x64xbf16>
    %10 = vector.shape_cast %9 : vector<1x8x64xbf16> to vector<8x64xbf16>
    %11 = vector.shape_cast %8 : vector<8x64xbf16> to vector<1x8x64xbf16>
    tpu.vector_store %arg5[%c0_6, %c0_7, %c0_8], %11 {strides = array<i32>} : memref<1x8x64xbf16, #tpu.memory_space<vmem>>, vector<1x8x64xbf16>,
    return
  }
  func.func @transform_0(%arg0: i32, %arg1: i32) -> (i32, i32, i32) {
    %c0_i32 = arith.constant 0 : i32
    %c0_i32_0 = arith.constant 0 : i32
    return %arg0, %arg1, %c0_i32 : i32, i32, i32
  }
  func.func @transform_1(%arg0: i32, %arg1: i32) -> (i32, i32) {
    %c0_i32 = arith.constant 0 : i32
    %c0_i32_0 = arith.constant 0 : i32
    %c0_i32_1 = arith.constant 0 : i32
    return %c0_i32, %c0_i32_0 : i32, i32
  }
  func.func @transform_2(%arg0: i32, %arg1: i32) -> (i32, i32) {
    %c0_i32 = arith.constant 0 : i32
    %c0_i32_0 = arith.constant 0 : i32
    %c0_i32_1 = arith.constant 0 : i32
    return %c0_i32, %c0_i32_0 : i32, i32
  }
  func.func @transform_3(%arg0: i32, %arg1: i32) -> (i32, i32, i32) {
    %c0_i32 = arith.constant 0 : i32
    %c0_i32_0 = arith.constant 0 : i32
    return %arg0, %arg1, %c0_i32 : i32, i32, i32
  }
}

module attributes {stable_mosaic.version = 11 : i64} {
  func.func @_encoder_layer_kernel(%arg0: i32, %arg1: i32, %arg2: memref<1x8x32xf32, #tpu.memory_space<vmem>>, %arg3: memref<1x8x64xbf16, #tpu.memory_space<vmem>>, %arg4: memref<32x32xbf16, #tpu.memory_space<vmem>>, %arg5: memref<1x32xf32, #tpu.memory_space<vmem>>, %arg6: memref<32x32xbf16, #tpu.memory_space<vmem>>, %arg7: memref<1x32xf32, #tpu.memory_space<vmem>>, %arg8: memref<1x32xf32, #tpu.memory_space<vmem>>, %arg9: memref<1x32xf32, #tpu.memory_space<vmem>>, %arg10: memref<32x64xbf16, #tpu.memory_space<vmem>>, %arg11: memref<1x64xf32, #tpu.memory_space<vmem>>, %arg12: memref<64x32xbf16, #tpu.memory_space<vmem>>, %arg13: memref<1x32xf32, #tpu.memory_space<vmem>>, %arg14: memref<1x32xf32, #tpu.memory_space<vmem>>, %arg15: memref<1x32xf32, #tpu.memory_space<vmem>>, %arg16: memref<1x32xf32, #tpu.memory_space<vmem>>, %arg17: memref<1x32xf32, #tpu.memory_space<vmem>>, %arg18: memref<1x8x32xf32, #tpu.memory_space<vmem>>, %arg19: memref<8x32xbf16, #tpu.memory_space<vmem>>) attributes {dimension_semantics = [#tpu.dimension_semantics<parallel>, #tpu.dimension_semantics<parallel>], iteration_bounds = array<i64: 2, 1>, scalar_prefetch = 0 : i64, scratch_operands = 1 : i64, tpu.core_type = #tpu.core_type<tc>, window_params = [{transform_indices = @transform_0, window_bounds = array<i64: 1, 8, 32>}, {transform_indices = @transform_1, window_bounds = array<i64: 1, 8, 64>}, {pipeline_mode = #tpu.pipeline_mode<synchronous>, transform_indices = @transform_2, window_bounds = array<i64: 32, 32>}, {pipeline_mode = #tpu.pipeline_mode<synchronous>, transform_indices = @transform_3, window_bounds = array<i64: 1, 32>}, {pipeline_mode = #tpu.pipeline_mode<synchronous>, transform_indices = @transform_4, window_bounds = array<i64: 32, 32>}, {pipeline_mode = #tpu.pipeline_mode<synchronous>, transform_indices = @transform_5, window_bounds = array<i64: 1, 32>}, {pipeline_mode = #tpu.pipeline_mode<synchronous>, transform_indices = @transform_6, window_bounds = array<i64: 1, 32>}, {pipeline_mode = #tpu.pipeline_mode<synchronous>, transform_indices = @transform_7, window_bounds = array<i64: 1, 32>}, {pipeline_mode = #tpu.pipeline_mode<synchronous>, transform_indices = @transform_8, window_bounds = array<i64: 32, 64>}, {pipeline_mode = #tpu.pipeline_mode<synchronous>, transform_indices = @transform_9, window_bounds = array<i64: 1, 64>}, {pipeline_mode = #tpu.pipeline_mode<synchronous>, transform_indices = @transform_10, window_bounds = array<i64: 64, 32>}, {pipeline_mode = #tpu.pipeline_mode<synchronous>, transform_indices = @transform_11, window_bounds = array<i64: 1, 32>}, {pipeline_mode = #tpu.pipeline_mode<synchronous>, transform_indices = @transform_12, window_bounds = array<i64: 1, 32>}, {pipeline_mode = #tpu.pipeline_mode<synchronous>, transform_indices = @transform_13, window_bounds = array<i64: 1, 32>}, {pipeline_mode = #tpu.pipeline_mode<synchronous>, transform_indices = @transform_14, window_bounds = array<i64: 1, 32>}, {pipeline_mode = #tpu.pipeline_mode<synchronous>, transform_indices = @transform_15, window_bounds = array<i64: 1, 32>}, {transform_indices = @transform_16, window_bounds = array<i64: 1, 8, 32>}]} {
    %c0 = arith.constant 0 : index
    %c0_0 = arith.constant 0 : index
    %c0_1 = arith.constant 0 : index
    %0 = vector.load %arg2[%c0, %c0_0, %c0_1] : memref<1x8x32xf32, #tpu.memory_space<vmem>>, vector<1x8x32xf32>
    %1 = vector.shape_cast %0 : vector<1x8x32xf32> to vector<8x32xf32>
    %c0_2 = arith.constant 0 : index
    %c0_3 = arith.constant 0 : index
    %2 = vector.load %arg4[%c0_2, %c0_3] : memref<32x32xbf16, #tpu.memory_space<vmem>>, vector<32x32xbf16>
    %c0_4 = arith.constant 0 : index
    %c0_5 = arith.constant 0 : index
    %3 = vector.load %arg5[%c0_4, %c0_5] : memref<1x32xf32, #tpu.memory_space<vmem>>, vector<1x32xf32>
    %4 = arith.truncf %1 : vector<8x32xf32> to vector<8x32xbf16>
    %cst = arith.constant dense<0.000000e+00> : vector<8x32xf32>
    %5 = tpu.matmul %4, %2, %cst {dimension_numbers = #tpu.dot_dimension_numbers<[1], [0], [0], [1], [0, 0, 1, 1], [], []>} : vector<8x32xbf16>, vector<32x32xbf16>, vector<8x32xf32> -> vector<8x32xf32>
    %6 = vector.broadcast %3 : vector<1x32xf32> to vector<8x32xf32>
    %7 = arith.addf %5, %6 : vector<8x32xf32>
    %c0_6 = arith.constant 0 : index
    %c0_7 = arith.constant 0 : index
    %c0_8 = arith.constant 0 : index
    %8 = vector.load %arg3[%c0_6, %c0_7, %c0_8] : memref<1x8x64xbf16, #tpu.memory_space<vmem>>, vector<1x8x64xbf16>
    %9 = vector.shape_cast %8 : vector<1x8x64xbf16> to vector<8x64xbf16>
    %cst_9 = arith.constant 2.500000e-01 : f32
    %10 = vector.broadcast %cst_9 : f32 to vector<8x32xf32>
    %11 = arith.mulf %7, %10 : vector<8x32xf32>
    %12 = arith.truncf %11 : vector<8x32xf32> to vector<8x32xbf16>
    %cst_10 = arith.constant 0xFF800000 : f32
    %13 = vector.broadcast %cst_10 : f32 to vector<8x1xf32>
    %cst_11 = arith.constant 0xFF800000 : f32
    %14 = vector.broadcast %cst_11 : f32 to vector<8x1xf32>
    %cst_12 = arith.constant 0.000000e+00 : f32
    %15 = vector.broadcast %cst_12 : f32 to vector<8x1xf32>
    %cst_13 = arith.constant 0.000000e+00 : f32
    %16 = vector.broadcast %cst_13 : f32 to vector<8x1xf32>
    %cst_14 = arith.constant 0.000000e+00 : f32
    %17 = vector.broadcast %cst_14 : f32 to vector<8x16xf32>
    %cst_15 = arith.constant 0.000000e+00 : f32
    %18 = vector.broadcast %cst_15 : f32 to vector<8x16xf32>
    %19 = vector.extract_strided_slice %9 {offsets = [0, 0], sizes = [8, 32], strides = [1, 1]} : vector<8x64xbf16> to vector<8x32xbf16>
    %20 = vector.extract_strided_slice %9 {offsets = [0, 32], sizes = [8, 32], strides = [1, 1]} : vector<8x64xbf16> to vector<8x32xbf16>
    %21 = vector.extract_strided_slice %12 {offsets = [0, 0], sizes = [8, 16], strides = [1, 1]} : vector<8x32xbf16> to vector<8x16xbf16>
    %22 = vector.extract_strided_slice %19 {offsets = [0, 0], sizes = [8, 16], strides = [1, 1]} : vector<8x32xbf16> to vector<8x16xbf16>
    %cst_16 = arith.constant dense<0.000000e+00> : vector<8x8xf32>
    %23 = tpu.matmul %21, %22, %cst_16 {dimension_numbers = #tpu.dot_dimension_numbers<[1], [1], [0], [0], [0, 0, 1, 0], [], []>} : vector<8x16xbf16>, vector<8x16xbf16>, vector<8x8xf32> -> vector<8x8xf32>
    %cst_17 = arith.constant dense<0xFF800000> : vector<8xf32>
    %24 = vector.multi_reduction <maximumf>, %23, %cst_17 [1] : vector<8x8xf32> to vector<8xf32>
    %25 = vector.shape_cast %24 : vector<8xf32> to vector<8x1xf32>
    %26 = arith.maximumf %13, %25 : vector<8x1xf32>
    %27 = arith.subf %13, %26 : vector<8x1xf32>
    %28 = math.exp %27 : vector<8x1xf32>
    %29 = vector.broadcast %26 : vector<8x1xf32> to vector<8x8xf32>
    %30 = arith.subf %23, %29 : vector<8x8xf32>
    %31 = math.exp %30 : vector<8x8xf32>
    %32 = arith.mulf %28, %15 : vector<8x1xf32>
    %cst_18 = arith.constant dense<0.000000e+00> : vector<8xf32>
    %33 = vector.multi_reduction <add>, %31, %cst_18 [1] : vector<8x8xf32> to vector<8xf32>
    %34 = vector.shape_cast %33 : vector<8xf32> to vector<8x1xf32>
    %35 = arith.addf %32, %34 : vector<8x1xf32>
    %36 = vector.broadcast %28 : vector<8x1xf32> to vector<8x16xf32>
    %37 = arith.mulf %36, %17 : vector<8x16xf32>
    %38 = arith.truncf %31 : vector<8x8xf32> to vector<8x8xbf16>
    %39 = vector.extract_strided_slice %20 {offsets = [0, 0], sizes = [8, 16], strides = [1, 1]} : vector<8x32xbf16> to vector<8x16xbf16>
    %cst_19 = arith.constant dense<0.000000e+00> : vector<8x16xf32>
    %40 = tpu.matmul %38, %39, %cst_19 {dimension_numbers = #tpu.dot_dimension_numbers<[1], [0], [0], [1], [0, 0, 1, 1], [], []>} : vector<8x8xbf16>, vector<8x16xbf16>, vector<8x16xf32> -> vector<8x16xf32>
    %41 = arith.addf %37, %40 : vector<8x16xf32>
    %42 = vector.extract_strided_slice %12 {offsets = [0, 16], sizes = [8, 16], strides = [1, 1]} : vector<8x32xbf16> to vector<8x16xbf16>
    %43 = vector.extract_strided_slice %19 {offsets = [0, 16], sizes = [8, 16], strides = [1, 1]} : vector<8x32xbf16> to vector<8x16xbf16>
    %cst_20 = arith.constant dense<0.000000e+00> : vector<8x8xf32>
    %44 = tpu.matmul %42, %43, %cst_20 {dimension_numbers = #tpu.dot_dimension_numbers<[1], [1], [0], [0], [0, 0, 1, 0], [], []>} : vector<8x16xbf16>, vector<8x16xbf16>, vector<8x8xf32> -> vector<8x8xf32>
    %cst_21 = arith.constant dense<0xFF800000> : vector<8xf32>
    %45 = vector.multi_reduction <maximumf>, %44, %cst_21 [1] : vector<8x8xf32> to vector<8xf32>
    %46 = vector.shape_cast %45 : vector<8xf32> to vector<8x1xf32>
    %47 = arith.maximumf %14, %46 : vector<8x1xf32>
    %48 = arith.subf %14, %47 : vector<8x1xf32>
    %49 = math.exp %48 : vector<8x1xf32>
    %50 = vector.broadcast %47 : vector<8x1xf32> to vector<8x8xf32>
    %51 = arith.subf %44, %50 : vector<8x8xf32>
    %52 = math.exp %51 : vector<8x8xf32>
    %53 = arith.mulf %49, %16 : vector<8x1xf32>
    %cst_22 = arith.constant dense<0.000000e+00> : vector<8xf32>
    %54 = vector.multi_reduction <add>, %52, %cst_22 [1] : vector<8x8xf32> to vector<8xf32>
    %55 = vector.shape_cast %54 : vector<8xf32> to vector<8x1xf32>
    %56 = arith.addf %53, %55 : vector<8x1xf32>
    %57 = vector.broadcast %49 : vector<8x1xf32> to vector<8x16xf32>
    %58 = arith.mulf %57, %18 : vector<8x16xf32>
    %59 = arith.truncf %52 : vector<8x8xf32> to vector<8x8xbf16>
    %60 = vector.extract_strided_slice %20 {offsets = [0, 16], sizes = [8, 16], strides = [1, 1]} : vector<8x32xbf16> to vector<8x16xbf16>
    %cst_23 = arith.constant dense<0.000000e+00> : vector<8x16xf32>
    %61 = tpu.matmul %59, %60, %cst_23 {dimension_numbers = #tpu.dot_dimension_numbers<[1], [0], [0], [1], [0, 0, 1, 1], [], []>} : vector<8x8xbf16>, vector<8x16xbf16>, vector<8x16xf32> -> vector<8x16xf32>
    %62 = arith.addf %58, %61 : vector<8x16xf32>
    %63 = tpu.reciprocal %35 {approx = true} : vector<8x1xf32> -> vector<8x1xf32>
    %64 = vector.broadcast %63 : vector<8x1xf32> to vector<8x16xf32>
    %65 = arith.mulf %41, %64 : vector<8x16xf32>
    %66 = arith.truncf %65 : vector<8x16xf32> to vector<8x16xbf16>
    %c0_24 = arith.constant 0 : index
    %c0_25 = arith.constant 0 : index
    %67 = vector.load %arg19[%c0_24, %c0_25] : memref<8x32xbf16, #tpu.memory_space<vmem>>, vector<8x16xbf16>
    tpu.vector_store %arg19[%c0_24, %c0_25], %66 {strides = array<i32>} : memref<8x32xbf16, #tpu.memory_space<vmem>>, vector<8x16xbf16>,
    %68 = tpu.reciprocal %56 {approx = true} : vector<8x1xf32> -> vector<8x1xf32>
    %69 = vector.broadcast %68 : vector<8x1xf32> to vector<8x16xf32>
    %70 = arith.mulf %62, %69 : vector<8x16xf32>
    %71 = arith.truncf %70 : vector<8x16xf32> to vector<8x16xbf16>
    %c0_26 = arith.constant 0 : index
    %c16 = arith.constant 16 : index
    %72 = vector.load %arg19[%c0_26, %c16] : memref<8x32xbf16, #tpu.memory_space<vmem>>, vector<8x16xbf16>
    tpu.vector_store %arg19[%c0_26, %c16], %71 {strides = array<i32>} : memref<8x32xbf16, #tpu.memory_space<vmem>>, vector<8x16xbf16>,
    %c0_27 = arith.constant 0 : index
    %c0_28 = arith.constant 0 : index
    %73 = vector.load %arg19[%c0_27, %c0_28] : memref<8x32xbf16, #tpu.memory_space<vmem>>, vector<8x32xbf16>
    %c0_29 = arith.constant 0 : index
    %c0_30 = arith.constant 0 : index
    %74 = vector.load %arg6[%c0_29, %c0_30] : memref<32x32xbf16, #tpu.memory_space<vmem>>, vector<32x32xbf16>
    %cst_31 = arith.constant dense<0.000000e+00> : vector<8x32xf32>
    %75 = tpu.matmul %73, %74, %cst_31 {dimension_numbers = #tpu.dot_dimension_numbers<[1], [0], [0], [1], [0, 0, 1, 1], [], []>} : vector<8x32xbf16>, vector<32x32xbf16>, vector<8x32xf32> -> vector<8x32xf32>
    %c0_32 = arith.constant 0 : index
    %c0_33 = arith.constant 0 : index
    %76 = vector.load %arg7[%c0_32, %c0_33] : memref<1x32xf32, #tpu.memory_space<vmem>>, vector<1x32xf32>
    %77 = vector.broadcast %76 : vector<1x32xf32> to vector<8x32xf32>
    %78 = arith.addf %75, %77 : vector<8x32xf32>
    %79 = arith.addf %1, %78 : vector<8x32xf32>
    %c0_34 = arith.constant 0 : index
    %c0_35 = arith.constant 0 : index
    %80 = vector.load %arg8[%c0_34, %c0_35] : memref<1x32xf32, #tpu.memory_space<vmem>>, vector<1x32xf32>
    %c0_36 = arith.constant 0 : index
    %c0_37 = arith.constant 0 : index
    %81 = vector.load %arg9[%c0_36, %c0_37] : memref<1x32xf32, #tpu.memory_space<vmem>>, vector<1x32xf32>
    %cst_38 = arith.constant dense<0.000000e+00> : vector<8xf32>
    %82 = vector.multi_reduction <add>, %79, %cst_38 [1] : vector<8x32xf32> to vector<8xf32>
    %83 = vector.shape_cast %82 : vector<8xf32> to vector<8x1xf32>
    %cst_39 = arith.constant 3.200000e+01 : f32
    %84 = vector.broadcast %cst_39 : f32 to vector<8x1xf32>
    %85 = arith.divf %83, %84 : vector<8x1xf32>
    %86 = vector.broadcast %85 : vector<8x1xf32> to vector<8x32xf32>
    %87 = arith.subf %79, %86 : vector<8x32xf32>
    %88 = arith.mulf %87, %87 : vector<8x32xf32>
    %cst_40 = arith.constant dense<0.000000e+00> : vector<8xf32>
    %89 = vector.multi_reduction <add>, %88, %cst_40 [1] : vector<8x32xf32> to vector<8xf32>
    %90 = vector.shape_cast %89 : vector<8xf32> to vector<8x1xf32>
    %cst_41 = arith.constant 3.200000e+01 : f32
    %91 = vector.broadcast %cst_41 : f32 to vector<8x1xf32>
    %92 = arith.divf %90, %91 : vector<8x1xf32>
    %93 = vector.broadcast %85 : vector<8x1xf32> to vector<8x32xf32>
    %94 = arith.subf %79, %93 : vector<8x32xf32>
    %cst_42 = arith.constant 9.99999974E-6 : f32
    %95 = vector.broadcast %cst_42 : f32 to vector<8x1xf32>
    %96 = arith.addf %92, %95 : vector<8x1xf32>
    %97 = math.rsqrt %96 : vector<8x1xf32>
    %98 = vector.broadcast %97 : vector<8x1xf32> to vector<8x32xf32>
    %99 = arith.mulf %94, %98 : vector<8x32xf32>
    %100 = vector.broadcast %80 : vector<1x32xf32> to vector<8x32xf32>
    %101 = arith.mulf %99, %100 : vector<8x32xf32>
    %102 = vector.broadcast %81 : vector<1x32xf32> to vector<8x32xf32>
    %103 = arith.addf %101, %102 : vector<8x32xf32>
    %c0_43 = arith.constant 0 : index
    %c0_44 = arith.constant 0 : index
    %104 = vector.load %arg10[%c0_43, %c0_44] : memref<32x64xbf16, #tpu.memory_space<vmem>>, vector<32x64xbf16>
    %c0_45 = arith.constant 0 : index
    %c0_46 = arith.constant 0 : index
    %105 = vector.load %arg11[%c0_45, %c0_46] : memref<1x64xf32, #tpu.memory_space<vmem>>, vector<1x64xf32>
    %c0_47 = arith.constant 0 : index
    %c0_48 = arith.constant 0 : index
    %106 = vector.load %arg12[%c0_47, %c0_48] : memref<64x32xbf16, #tpu.memory_space<vmem>>, vector<64x32xbf16>
    %c0_49 = arith.constant 0 : index
    %c0_50 = arith.constant 0 : index
    %107 = vector.load %arg13[%c0_49, %c0_50] : memref<1x32xf32, #tpu.memory_space<vmem>>, vector<1x32xf32>
    %108 = arith.truncf %103 : vector<8x32xf32> to vector<8x32xbf16>
    %cst_51 = arith.constant dense<0.000000e+00> : vector<8x64xf32>
    %109 = tpu.matmul %108, %104, %cst_51 {dimension_numbers = #tpu.dot_dimension_numbers<[1], [0], [0], [1], [0, 0, 1, 1], [], []>} : vector<8x32xbf16>, vector<32x64xbf16>, vector<8x64xf32> -> vector<8x64xf32>
    %110 = vector.broadcast %105 : vector<1x64xf32> to vector<8x64xf32>
    %111 = arith.addf %109, %110 : vector<8x64xf32>
    %cst_52 = arith.constant 0.000000e+00 : f32
    %112 = vector.broadcast %cst_52 : f32 to vector<8x64xf32>
    %113 = arith.maximumf %111, %112 : vector<8x64xf32>
    %114 = arith.truncf %113 : vector<8x64xf32> to vector<8x64xbf16>
    %cst_53 = arith.constant dense<0.000000e+00> : vector<8x32xf32>
    %115 = tpu.matmul %114, %106, %cst_53 {dimension_numbers = #tpu.dot_dimension_numbers<[1], [0], [0], [1], [0, 0, 1, 1], [], []>} : vector<8x64xbf16>, vector<64x32xbf16>, vector<8x32xf32> -> vector<8x32xf32>
    %116 = vector.broadcast %107 : vector<1x32xf32> to vector<8x32xf32>
    %117 = arith.addf %115, %116 : vector<8x32xf32>
    %118 = arith.addf %103, %117 : vector<8x32xf32>
    %c0_54 = arith.constant 0 : index
    %c0_55 = arith.constant 0 : index
    %119 = vector.load %arg14[%c0_54, %c0_55] : memref<1x32xf32, #tpu.memory_space<vmem>>, vector<1x32xf32>
    %c0_56 = arith.constant 0 : index
    %c0_57 = arith.constant 0 : index
    %120 = vector.load %arg15[%c0_56, %c0_57] : memref<1x32xf32, #tpu.memory_space<vmem>>, vector<1x32xf32>
    %cst_58 = arith.constant dense<0.000000e+00> : vector<8xf32>
    %121 = vector.multi_reduction <add>, %118, %cst_58 [1] : vector<8x32xf32> to vector<8xf32>
    %122 = vector.shape_cast %121 : vector<8xf32> to vector<8x1xf32>
    %cst_59 = arith.constant 3.200000e+01 : f32
    %123 = vector.broadcast %cst_59 : f32 to vector<8x1xf32>
    %124 = arith.divf %122, %123 : vector<8x1xf32>
    %125 = vector.broadcast %124 : vector<8x1xf32> to vector<8x32xf32>
    %126 = arith.subf %118, %125 : vector<8x32xf32>
    %127 = arith.mulf %126, %126 : vector<8x32xf32>
    %cst_60 = arith.constant dense<0.000000e+00> : vector<8xf32>
    %128 = vector.multi_reduction <add>, %127, %cst_60 [1] : vector<8x32xf32> to vector<8xf32>
    %129 = vector.shape_cast %128 : vector<8xf32> to vector<8x1xf32>
    %cst_61 = arith.constant 3.200000e+01 : f32
    %130 = vector.broadcast %cst_61 : f32 to vector<8x1xf32>
    %131 = arith.divf %129, %130 : vector<8x1xf32>
    %132 = vector.broadcast %124 : vector<8x1xf32> to vector<8x32xf32>
    %133 = arith.subf %118, %132 : vector<8x32xf32>
    %cst_62 = arith.constant 9.99999974E-6 : f32
    %134 = vector.broadcast %cst_62 : f32 to vector<8x1xf32>
    %135 = arith.addf %131, %134 : vector<8x1xf32>
    %136 = math.rsqrt %135 : vector<8x1xf32>
    %137 = vector.broadcast %136 : vector<8x1xf32> to vector<8x32xf32>
    %138 = arith.mulf %133, %137 : vector<8x32xf32>
    %139 = vector.broadcast %119 : vector<1x32xf32> to vector<8x32xf32>
    %140 = arith.mulf %138, %139 : vector<8x32xf32>
    %141 = vector.broadcast %120 : vector<1x32xf32> to vector<8x32xf32>
    %142 = arith.addf %140, %141 : vector<8x32xf32>
    %c0_63 = arith.constant 0 : index
    %c0_64 = arith.constant 0 : index
    %143 = vector.load %arg16[%c0_63, %c0_64] : memref<1x32xf32, #tpu.memory_space<vmem>>, vector<1x32xf32>
    %c0_65 = arith.constant 0 : index
    %c0_66 = arith.constant 0 : index
    %144 = vector.load %arg17[%c0_65, %c0_66] : memref<1x32xf32, #tpu.memory_space<vmem>>, vector<1x32xf32>
    %cst_67 = arith.constant dense<0.000000e+00> : vector<8xf32>
    %145 = vector.multi_reduction <add>, %142, %cst_67 [1] : vector<8x32xf32> to vector<8xf32>
    %146 = vector.shape_cast %145 : vector<8xf32> to vector<8x1xf32>
    %cst_68 = arith.constant 3.200000e+01 : f32
    %147 = vector.broadcast %cst_68 : f32 to vector<8x1xf32>
    %148 = arith.divf %146, %147 : vector<8x1xf32>
    %149 = vector.broadcast %148 : vector<8x1xf32> to vector<8x32xf32>
    %150 = arith.subf %142, %149 : vector<8x32xf32>
    %151 = arith.mulf %150, %150 : vector<8x32xf32>
    %cst_69 = arith.constant dense<0.000000e+00> : vector<8xf32>
    %152 = vector.multi_reduction <add>, %151, %cst_69 [1] : vector<8x32xf32> to vector<8xf32>
    %153 = vector.shape_cast %152 : vector<8xf32> to vector<8x1xf32>
    %cst_70 = arith.constant 3.200000e+01 : f32
    %154 = vector.broadcast %cst_70 : f32 to vector<8x1xf32>
    %155 = arith.divf %153, %154 : vector<8x1xf32>
    %156 = vector.broadcast %148 : vector<8x1xf32> to vector<8x32xf32>
    %157 = arith.subf %142, %156 : vector<8x32xf32>
    %cst_71 = arith.constant 9.99999974E-6 : f32
    %158 = vector.broadcast %cst_71 : f32 to vector<8x1xf32>
    %159 = arith.addf %155, %158 : vector<8x1xf32>
    %160 = math.rsqrt %159 : vector<8x1xf32>
    %161 = vector.broadcast %160 : vector<8x1xf32> to vector<8x32xf32>
    %162 = arith.mulf %157, %161 : vector<8x32xf32>
    %163 = vector.broadcast %143 : vector<1x32xf32> to vector<8x32xf32>
    %164 = arith.mulf %162, %163 : vector<8x32xf32>
    %165 = vector.broadcast %144 : vector<1x32xf32> to vector<8x32xf32>
    %166 = arith.addf %164, %165 : vector<8x32xf32>
    %c0_72 = arith.constant 0 : index
    %c0_73 = arith.constant 0 : index
    %c0_74 = arith.constant 0 : index
    %167 = vector.load %arg18[%c0_72, %c0_73, %c0_74] : memref<1x8x32xf32, #tpu.memory_space<vmem>>, vector<1x8x32xf32>
    %168 = vector.shape_cast %167 : vector<1x8x32xf32> to vector<8x32xf32>
    %169 = vector.shape_cast %166 : vector<8x32xf32> to vector<1x8x32xf32>
    tpu.vector_store %arg18[%c0_72, %c0_73, %c0_74], %169 {strides = array<i32>} : memref<1x8x32xf32, #tpu.memory_space<vmem>>, vector<1x8x32xf32>,
    return
  }
  func.func @transform_0(%arg0: i32, %arg1: i32) -> (i32, i32, i32) {
    %c0_i32 = arith.constant 0 : i32
    %c0_i32_0 = arith.constant 0 : i32
    return %arg0, %arg1, %c0_i32 : i32, i32, i32
  }
  func.func @transform_1(%arg0: i32, %arg1: i32) -> (i32, i32, i32) {
    %c0_i32 = arith.constant 0 : i32
    %c0_i32_0 = arith.constant 0 : i32
    %c0_i32_1 = arith.constant 0 : i32
    return %arg0, %c0_i32, %c0_i32_0 : i32, i32, i32
  }
  func.func @transform_2(%arg0: i32, %arg1: i32) -> (i32, i32) {
    %c0_i32 = arith.constant 0 : i32
    %c0_i32_0 = arith.constant 0 : i32
    %c0_i32_1 = arith.constant 0 : i32
    return %c0_i32, %c0_i32_0 : i32, i32
  }
  func.func @transform_3(%arg0: i32, %arg1: i32) -> (i32, i32) {
    %c0_i32 = arith.constant 0 : i32
    %c0_i32_0 = arith.constant 0 : i32
    %c0_i32_1 = arith.constant 0 : i32
    return %c0_i32, %c0_i32_0 : i32, i32
  }
  func.func @transform_4(%arg0: i32, %arg1: i32) -> (i32, i32) {
    %c0_i32 = arith.constant 0 : i32
    %c0_i32_0 = arith.constant 0 : i32
    %c0_i32_1 = arith.constant 0 : i32
    return %c0_i32, %c0_i32_0 : i32, i32
  }
  func.func @transform_5(%arg0: i32, %arg1: i32) -> (i32, i32) {
    %c0_i32 = arith.constant 0 : i32
    %c0_i32_0 = arith.constant 0 : i32
    %c0_i32_1 = arith.constant 0 : i32
    return %c0_i32, %c0_i32_0 : i32, i32
  }
  func.func @transform_6(%arg0: i32, %arg1: i32) -> (i32, i32) {
    %c0_i32 = arith.constant 0 : i32
    %c0_i32_0 = arith.constant 0 : i32
    %c0_i32_1 = arith.constant 0 : i32
    return %c0_i32, %c0_i32_0 : i32, i32
  }
  func.func @transform_7(%arg0: i32, %arg1: i32) -> (i32, i32) {
    %c0_i32 = arith.constant 0 : i32
    %c0_i32_0 = arith.constant 0 : i32
    %c0_i32_1 = arith.constant 0 : i32
    return %c0_i32, %c0_i32_0 : i32, i32
  }
  func.func @transform_8(%arg0: i32, %arg1: i32) -> (i32, i32) {
    %c0_i32 = arith.constant 0 : i32
    %c0_i32_0 = arith.constant 0 : i32
    %c0_i32_1 = arith.constant 0 : i32
    return %c0_i32, %c0_i32_0 : i32, i32
  }
  func.func @transform_9(%arg0: i32, %arg1: i32) -> (i32, i32) {
    %c0_i32 = arith.constant 0 : i32
    %c0_i32_0 = arith.constant 0 : i32
    %c0_i32_1 = arith.constant 0 : i32
    return %c0_i32, %c0_i32_0 : i32, i32
  }
  func.func @transform_10(%arg0: i32, %arg1: i32) -> (i32, i32) {
    %c0_i32 = arith.constant 0 : i32
    %c0_i32_0 = arith.constant 0 : i32
    %c0_i32_1 = arith.constant 0 : i32
    return %c0_i32, %c0_i32_0 : i32, i32
  }
  func.func @transform_11(%arg0: i32, %arg1: i32) -> (i32, i32) {
    %c0_i32 = arith.constant 0 : i32
    %c0_i32_0 = arith.constant 0 : i32
    %c0_i32_1 = arith.constant 0 : i32
    return %c0_i32, %c0_i32_0 : i32, i32
  }
  func.func @transform_12(%arg0: i32, %arg1: i32) -> (i32, i32) {
    %c0_i32 = arith.constant 0 : i32
    %c0_i32_0 = arith.constant 0 : i32
    %c0_i32_1 = arith.constant 0 : i32
    return %c0_i32, %c0_i32_0 : i32, i32
  }
  func.func @transform_13(%arg0: i32, %arg1: i32) -> (i32, i32) {
    %c0_i32 = arith.constant 0 : i32
    %c0_i32_0 = arith.constant 0 : i32
    %c0_i32_1 = arith.constant 0 : i32
    return %c0_i32, %c0_i32_0 : i32, i32
  }
  func.func @transform_14(%arg0: i32, %arg1: i32) -> (i32, i32) {
    %c0_i32 = arith.constant 0 : i32
    %c0_i32_0 = arith.constant 0 : i32
    %c0_i32_1 = arith.constant 0 : i32
    return %c0_i32, %c0_i32_0 : i32, i32
  }
  func.func @transform_15(%arg0: i32, %arg1: i32) -> (i32, i32) {
    %c0_i32 = arith.constant 0 : i32
    %c0_i32_0 = arith.constant 0 : i32
    %c0_i32_1 = arith.constant 0 : i32
    return %c0_i32, %c0_i32_0 : i32, i32
  }
  func.func @transform_16(%arg0: i32, %arg1: i32) -> (i32, i32, i32) {
    %c0_i32 = arith.constant 0 : i32
    %c0_i32_0 = arith.constant 0 : i32
    return %arg0, %arg1, %c0_i32 : i32, i32, i32
  }
}

module attributes {stable_mosaic.version = 11 : i64} {
  func.func @_decoder_layer_kernel(%arg0: i32, %arg1: i32, %arg2: memref<1x8x32xf32, #tpu.memory_space<vmem>>, %arg3: memref<1x8x64xbf16, #tpu.memory_space<vmem>>, %arg4: memref<1x8x64xbf16, #tpu.memory_space<vmem>>, %arg5: memref<32x32xbf16, #tpu.memory_space<vmem>>, %arg6: memref<1x32xf32, #tpu.memory_space<vmem>>, %arg7: memref<32x32xbf16, #tpu.memory_space<vmem>>, %arg8: memref<1x32xf32, #tpu.memory_space<vmem>>, %arg9: memref<1x32xf32, #tpu.memory_space<vmem>>, %arg10: memref<1x32xf32, #tpu.memory_space<vmem>>, %arg11: memref<32x32xbf16, #tpu.memory_space<vmem>>, %arg12: memref<1x32xf32, #tpu.memory_space<vmem>>, %arg13: memref<32x32xbf16, #tpu.memory_space<vmem>>, %arg14: memref<1x32xf32, #tpu.memory_space<vmem>>, %arg15: memref<1x32xf32, #tpu.memory_space<vmem>>, %arg16: memref<1x32xf32, #tpu.memory_space<vmem>>, %arg17: memref<32x64xbf16, #tpu.memory_space<vmem>>, %arg18: memref<1x64xf32, #tpu.memory_space<vmem>>, %arg19: memref<64x32xbf16, #tpu.memory_space<vmem>>, %arg20: memref<1x32xf32, #tpu.memory_space<vmem>>, %arg21: memref<1x32xf32, #tpu.memory_space<vmem>>, %arg22: memref<1x32xf32, #tpu.memory_space<vmem>>, %arg23: memref<1x8x32xf32, #tpu.memory_space<vmem>>, %arg24: memref<8x32xbf16, #tpu.memory_space<vmem>>) attributes {dimension_semantics = [#tpu.dimension_semantics<parallel>, #tpu.dimension_semantics<parallel>], iteration_bounds = array<i64: 2, 1>, scalar_prefetch = 0 : i64, scratch_operands = 1 : i64, tpu.core_type = #tpu.core_type<tc>, window_params = [{transform_indices = @transform_0, window_bounds = array<i64: 1, 8, 32>}, {transform_indices = @transform_1, window_bounds = array<i64: 1, 8, 64>}, {transform_indices = @transform_2, window_bounds = array<i64: 1, 8, 64>}, {pipeline_mode = #tpu.pipeline_mode<synchronous>, transform_indices = @transform_3, window_bounds = array<i64: 32, 32>}, {pipeline_mode = #tpu.pipeline_mode<synchronous>, transform_indices = @transform_4, window_bounds = array<i64: 1, 32>}, {pipeline_mode = #tpu.pipeline_mode<synchronous>, transform_indices = @transform_5, window_bounds = array<i64: 32, 32>}, {pipeline_mode = #tpu.pipeline_mode<synchronous>, transform_indices = @transform_6, window_bounds = array<i64: 1, 32>}, {pipeline_mode = #tpu.pipeline_mode<synchronous>, transform_indices = @transform_7, window_bounds = array<i64: 1, 32>}, {pipeline_mode = #tpu.pipeline_mode<synchronous>, transform_indices = @transform_8, window_bounds = array<i64: 1, 32>}, {pipeline_mode = #tpu.pipeline_mode<synchronous>, transform_indices = @transform_9, window_bounds = array<i64: 32, 32>}, {pipeline_mode = #tpu.pipeline_mode<synchronous>, transform_indices = @transform_10, window_bounds = array<i64: 1, 32>}, {pipeline_mode = #tpu.pipeline_mode<synchronous>, transform_indices = @transform_11, window_bounds = array<i64: 32, 32>}, {pipeline_mode = #tpu.pipeline_mode<synchronous>, transform_indices = @transform_12, window_bounds = array<i64: 1, 32>}, {pipeline_mode = #tpu.pipeline_mode<synchronous>, transform_indices = @transform_13, window_bounds = array<i64: 1, 32>}, {pipeline_mode = #tpu.pipeline_mode<synchronous>, transform_indices = @transform_14, window_bounds = array<i64: 1, 32>}, {pipeline_mode = #tpu.pipeline_mode<synchronous>, transform_indices = @transform_15, window_bounds = array<i64: 32, 64>}, {pipeline_mode = #tpu.pipeline_mode<synchronous>, transform_indices = @transform_16, window_bounds = array<i64: 1, 64>}, {pipeline_mode = #tpu.pipeline_mode<synchronous>, transform_indices = @transform_17, window_bounds = array<i64: 64, 32>}, {pipeline_mode = #tpu.pipeline_mode<synchronous>, transform_indices = @transform_18, window_bounds = array<i64: 1, 32>}, {pipeline_mode = #tpu.pipeline_mode<synchronous>, transform_indices = @transform_19, window_bounds = array<i64: 1, 32>}, {pipeline_mode = #tpu.pipeline_mode<synchronous>, transform_indices = @transform_20, window_bounds = array<i64: 1, 32>}, {transform_indices = @transform_21, window_bounds = array<i64: 1, 8, 32>}]} {
    %c0 = arith.constant 0 : index
    %c0_0 = arith.constant 0 : index
    %c0_1 = arith.constant 0 : index
    %0 = vector.load %arg2[%c0, %c0_0, %c0_1] : memref<1x8x32xf32, #tpu.memory_space<vmem>>, vector<1x8x32xf32>
    %1 = vector.shape_cast %0 : vector<1x8x32xf32> to vector<8x32xf32>
    %c0_2 = arith.constant 0 : index
    %c0_3 = arith.constant 0 : index
    %2 = vector.load %arg5[%c0_2, %c0_3] : memref<32x32xbf16, #tpu.memory_space<vmem>>, vector<32x32xbf16>
    %c0_4 = arith.constant 0 : index
    %c0_5 = arith.constant 0 : index
    %3 = vector.load %arg6[%c0_4, %c0_5] : memref<1x32xf32, #tpu.memory_space<vmem>>, vector<1x32xf32>
    %4 = arith.truncf %1 : vector<8x32xf32> to vector<8x32xbf16>
    %cst = arith.constant dense<0.000000e+00> : vector<8x32xf32>
    %5 = tpu.matmul %4, %2, %cst {dimension_numbers = #tpu.dot_dimension_numbers<[1], [0], [0], [1], [0, 0, 1, 1], [], []>} : vector<8x32xbf16>, vector<32x32xbf16>, vector<8x32xf32> -> vector<8x32xf32>
    %6 = vector.broadcast %3 : vector<1x32xf32> to vector<8x32xf32>
    %7 = arith.addf %5, %6 : vector<8x32xf32>
    %c0_6 = arith.constant 0 : index
    %c0_7 = arith.constant 0 : index
    %c0_8 = arith.constant 0 : index
    %8 = vector.load %arg3[%c0_6, %c0_7, %c0_8] : memref<1x8x64xbf16, #tpu.memory_space<vmem>>, vector<1x8x64xbf16>
    %9 = vector.shape_cast %8 : vector<1x8x64xbf16> to vector<8x64xbf16>
    %cst_9 = arith.constant 2.500000e-01 : f32
    %10 = vector.broadcast %cst_9 : f32 to vector<8x32xf32>
    %11 = arith.mulf %7, %10 : vector<8x32xf32>
    %12 = arith.truncf %11 : vector<8x32xf32> to vector<8x32xbf16>
    %cst_10 = arith.constant 0xFF800000 : f32
    %13 = vector.broadcast %cst_10 : f32 to vector<8x1xf32>
    %cst_11 = arith.constant 0xFF800000 : f32
    %14 = vector.broadcast %cst_11 : f32 to vector<8x1xf32>
    %cst_12 = arith.constant 0.000000e+00 : f32
    %15 = vector.broadcast %cst_12 : f32 to vector<8x1xf32>
    %cst_13 = arith.constant 0.000000e+00 : f32
    %16 = vector.broadcast %cst_13 : f32 to vector<8x1xf32>
    %cst_14 = arith.constant 0.000000e+00 : f32
    %17 = vector.broadcast %cst_14 : f32 to vector<8x16xf32>
    %cst_15 = arith.constant 0.000000e+00 : f32
    %18 = vector.broadcast %cst_15 : f32 to vector<8x16xf32>
    %19 = vector.extract_strided_slice %9 {offsets = [0, 0], sizes = [8, 32], strides = [1, 1]} : vector<8x64xbf16> to vector<8x32xbf16>
    %20 = vector.extract_strided_slice %9 {offsets = [0, 32], sizes = [8, 32], strides = [1, 1]} : vector<8x64xbf16> to vector<8x32xbf16>
    %21 = vector.extract_strided_slice %12 {offsets = [0, 0], sizes = [8, 16], strides = [1, 1]} : vector<8x32xbf16> to vector<8x16xbf16>
    %22 = vector.extract_strided_slice %19 {offsets = [0, 0], sizes = [8, 16], strides = [1, 1]} : vector<8x32xbf16> to vector<8x16xbf16>
    %cst_16 = arith.constant dense<0.000000e+00> : vector<8x8xf32>
    %23 = tpu.matmul %21, %22, %cst_16 {dimension_numbers = #tpu.dot_dimension_numbers<[1], [1], [0], [0], [0, 0, 1, 0], [], []>} : vector<8x16xbf16>, vector<8x16xbf16>, vector<8x8xf32> -> vector<8x8xf32>
    %cst_17 = arith.constant dense<0xFF800000> : vector<8xf32>
    %24 = vector.multi_reduction <maximumf>, %23, %cst_17 [1] : vector<8x8xf32> to vector<8xf32>
    %25 = vector.shape_cast %24 : vector<8xf32> to vector<8x1xf32>
    %26 = arith.maximumf %13, %25 : vector<8x1xf32>
    %27 = arith.subf %13, %26 : vector<8x1xf32>
    %28 = math.exp %27 : vector<8x1xf32>
    %29 = vector.broadcast %26 : vector<8x1xf32> to vector<8x8xf32>
    %30 = arith.subf %23, %29 : vector<8x8xf32>
    %31 = math.exp %30 : vector<8x8xf32>
    %32 = arith.mulf %28, %15 : vector<8x1xf32>
    %cst_18 = arith.constant dense<0.000000e+00> : vector<8xf32>
    %33 = vector.multi_reduction <add>, %31, %cst_18 [1] : vector<8x8xf32> to vector<8xf32>
    %34 = vector.shape_cast %33 : vector<8xf32> to vector<8x1xf32>
    %35 = arith.addf %32, %34 : vector<8x1xf32>
    %36 = vector.broadcast %28 : vector<8x1xf32> to vector<8x16xf32>
    %37 = arith.mulf %36, %17 : vector<8x16xf32>
    %38 = arith.truncf %31 : vector<8x8xf32> to vector<8x8xbf16>
    %39 = vector.extract_strided_slice %20 {offsets = [0, 0], sizes = [8, 16], strides = [1, 1]} : vector<8x32xbf16> to vector<8x16xbf16>
    %cst_19 = arith.constant dense<0.000000e+00> : vector<8x16xf32>
    %40 = tpu.matmul %38, %39, %cst_19 {dimension_numbers = #tpu.dot_dimension_numbers<[1], [0], [0], [1], [0, 0, 1, 1], [], []>} : vector<8x8xbf16>, vector<8x16xbf16>, vector<8x16xf32> -> vector<8x16xf32>
    %41 = arith.addf %37, %40 : vector<8x16xf32>
    %42 = vector.extract_strided_slice %12 {offsets = [0, 16], sizes = [8, 16], strides = [1, 1]} : vector<8x32xbf16> to vector<8x16xbf16>
    %43 = vector.extract_strided_slice %19 {offsets = [0, 16], sizes = [8, 16], strides = [1, 1]} : vector<8x32xbf16> to vector<8x16xbf16>
    %cst_20 = arith.constant dense<0.000000e+00> : vector<8x8xf32>
    %44 = tpu.matmul %42, %43, %cst_20 {dimension_numbers = #tpu.dot_dimension_numbers<[1], [1], [0], [0], [0, 0, 1, 0], [], []>} : vector<8x16xbf16>, vector<8x16xbf16>, vector<8x8xf32> -> vector<8x8xf32>
    %cst_21 = arith.constant dense<0xFF800000> : vector<8xf32>
    %45 = vector.multi_reduction <maximumf>, %44, %cst_21 [1] : vector<8x8xf32> to vector<8xf32>
    %46 = vector.shape_cast %45 : vector<8xf32> to vector<8x1xf32>
    %47 = arith.maximumf %14, %46 : vector<8x1xf32>
    %48 = arith.subf %14, %47 : vector<8x1xf32>
    %49 = math.exp %48 : vector<8x1xf32>
    %50 = vector.broadcast %47 : vector<8x1xf32> to vector<8x8xf32>
    %51 = arith.subf %44, %50 : vector<8x8xf32>
    %52 = math.exp %51 : vector<8x8xf32>
    %53 = arith.mulf %49, %16 : vector<8x1xf32>
    %cst_22 = arith.constant dense<0.000000e+00> : vector<8xf32>
    %54 = vector.multi_reduction <add>, %52, %cst_22 [1] : vector<8x8xf32> to vector<8xf32>
    %55 = vector.shape_cast %54 : vector<8xf32> to vector<8x1xf32>
    %56 = arith.addf %53, %55 : vector<8x1xf32>
    %57 = vector.broadcast %49 : vector<8x1xf32> to vector<8x16xf32>
    %58 = arith.mulf %57, %18 : vector<8x16xf32>
    %59 = arith.truncf %52 : vector<8x8xf32> to vector<8x8xbf16>
    %60 = vector.extract_strided_slice %20 {offsets = [0, 16], sizes = [8, 16], strides = [1, 1]} : vector<8x32xbf16> to vector<8x16xbf16>
    %cst_23 = arith.constant dense<0.000000e+00> : vector<8x16xf32>
    %61 = tpu.matmul %59, %60, %cst_23 {dimension_numbers = #tpu.dot_dimension_numbers<[1], [0], [0], [1], [0, 0, 1, 1], [], []>} : vector<8x8xbf16>, vector<8x16xbf16>, vector<8x16xf32> -> vector<8x16xf32>
    %62 = arith.addf %58, %61 : vector<8x16xf32>
    %63 = tpu.reciprocal %35 {approx = true} : vector<8x1xf32> -> vector<8x1xf32>
    %64 = vector.broadcast %63 : vector<8x1xf32> to vector<8x16xf32>
    %65 = arith.mulf %41, %64 : vector<8x16xf32>
    %66 = arith.truncf %65 : vector<8x16xf32> to vector<8x16xbf16>
    %c0_24 = arith.constant 0 : index
    %c0_25 = arith.constant 0 : index
    %67 = vector.load %arg24[%c0_24, %c0_25] : memref<8x32xbf16, #tpu.memory_space<vmem>>, vector<8x16xbf16>
    tpu.vector_store %arg24[%c0_24, %c0_25], %66 {strides = array<i32>} : memref<8x32xbf16, #tpu.memory_space<vmem>>, vector<8x16xbf16>,
    %68 = tpu.reciprocal %56 {approx = true} : vector<8x1xf32> -> vector<8x1xf32>
    %69 = vector.broadcast %68 : vector<8x1xf32> to vector<8x16xf32>
    %70 = arith.mulf %62, %69 : vector<8x16xf32>
    %71 = arith.truncf %70 : vector<8x16xf32> to vector<8x16xbf16>
    %c0_26 = arith.constant 0 : index
    %c16 = arith.constant 16 : index
    %72 = vector.load %arg24[%c0_26, %c16] : memref<8x32xbf16, #tpu.memory_space<vmem>>, vector<8x16xbf16>
    tpu.vector_store %arg24[%c0_26, %c16], %71 {strides = array<i32>} : memref<8x32xbf16, #tpu.memory_space<vmem>>, vector<8x16xbf16>,
    %c0_27 = arith.constant 0 : index
    %c0_28 = arith.constant 0 : index
    %73 = vector.load %arg24[%c0_27, %c0_28] : memref<8x32xbf16, #tpu.memory_space<vmem>>, vector<8x32xbf16>
    %c0_29 = arith.constant 0 : index
    %c0_30 = arith.constant 0 : index
    %74 = vector.load %arg7[%c0_29, %c0_30] : memref<32x32xbf16, #tpu.memory_space<vmem>>, vector<32x32xbf16>
    %cst_31 = arith.constant dense<0.000000e+00> : vector<8x32xf32>
    %75 = tpu.matmul %73, %74, %cst_31 {dimension_numbers = #tpu.dot_dimension_numbers<[1], [0], [0], [1], [0, 0, 1, 1], [], []>} : vector<8x32xbf16>, vector<32x32xbf16>, vector<8x32xf32> -> vector<8x32xf32>
    %c0_32 = arith.constant 0 : index
    %c0_33 = arith.constant 0 : index
    %76 = vector.load %arg8[%c0_32, %c0_33] : memref<1x32xf32, #tpu.memory_space<vmem>>, vector<1x32xf32>
    %77 = vector.broadcast %76 : vector<1x32xf32> to vector<8x32xf32>
    %78 = arith.addf %75, %77 : vector<8x32xf32>
    %79 = arith.addf %1, %78 : vector<8x32xf32>
    %c0_34 = arith.constant 0 : index
    %c0_35 = arith.constant 0 : index
    %80 = vector.load %arg9[%c0_34, %c0_35] : memref<1x32xf32, #tpu.memory_space<vmem>>, vector<1x32xf32>
    %c0_36 = arith.constant 0 : index
    %c0_37 = arith.constant 0 : index
    %81 = vector.load %arg10[%c0_36, %c0_37] : memref<1x32xf32, #tpu.memory_space<vmem>>, vector<1x32xf32>
    %cst_38 = arith.constant dense<0.000000e+00> : vector<8xf32>
    %82 = vector.multi_reduction <add>, %79, %cst_38 [1] : vector<8x32xf32> to vector<8xf32>
    %83 = vector.shape_cast %82 : vector<8xf32> to vector<8x1xf32>
    %cst_39 = arith.constant 3.200000e+01 : f32
    %84 = vector.broadcast %cst_39 : f32 to vector<8x1xf32>
    %85 = arith.divf %83, %84 : vector<8x1xf32>
    %86 = vector.broadcast %85 : vector<8x1xf32> to vector<8x32xf32>
    %87 = arith.subf %79, %86 : vector<8x32xf32>
    %88 = arith.mulf %87, %87 : vector<8x32xf32>
    %cst_40 = arith.constant dense<0.000000e+00> : vector<8xf32>
    %89 = vector.multi_reduction <add>, %88, %cst_40 [1] : vector<8x32xf32> to vector<8xf32>
    %90 = vector.shape_cast %89 : vector<8xf32> to vector<8x1xf32>
    %cst_41 = arith.constant 3.200000e+01 : f32
    %91 = vector.broadcast %cst_41 : f32 to vector<8x1xf32>
    %92 = arith.divf %90, %91 : vector<8x1xf32>
    %93 = vector.broadcast %85 : vector<8x1xf32> to vector<8x32xf32>
    %94 = arith.subf %79, %93 : vector<8x32xf32>
    %cst_42 = arith.constant 9.99999974E-6 : f32
    %95 = vector.broadcast %cst_42 : f32 to vector<8x1xf32>
    %96 = arith.addf %92, %95 : vector<8x1xf32>
    %97 = math.rsqrt %96 : vector<8x1xf32>
    %98 = vector.broadcast %97 : vector<8x1xf32> to vector<8x32xf32>
    %99 = arith.mulf %94, %98 : vector<8x32xf32>
    %100 = vector.broadcast %80 : vector<1x32xf32> to vector<8x32xf32>
    %101 = arith.mulf %99, %100 : vector<8x32xf32>
    %102 = vector.broadcast %81 : vector<1x32xf32> to vector<8x32xf32>
    %103 = arith.addf %101, %102 : vector<8x32xf32>
    %c0_43 = arith.constant 0 : index
    %c0_44 = arith.constant 0 : index
    %104 = vector.load %arg11[%c0_43, %c0_44] : memref<32x32xbf16, #tpu.memory_space<vmem>>, vector<32x32xbf16>
    %c0_45 = arith.constant 0 : index
    %c0_46 = arith.constant 0 : index
    %105 = vector.load %arg12[%c0_45, %c0_46] : memref<1x32xf32, #tpu.memory_space<vmem>>, vector<1x32xf32>
    %106 = arith.truncf %103 : vector<8x32xf32> to vector<8x32xbf16>
    %cst_47 = arith.constant dense<0.000000e+00> : vector<8x32xf32>
    %107 = tpu.matmul %106, %104, %cst_47 {dimension_numbers = #tpu.dot_dimension_numbers<[1], [0], [0], [1], [0, 0, 1, 1], [], []>} : vector<8x32xbf16>, vector<32x32xbf16>, vector<8x32xf32> -> vector<8x32xf32>
    %108 = vector.broadcast %105 : vector<1x32xf32> to vector<8x32xf32>
    %109 = arith.addf %107, %108 : vector<8x32xf32>
    %c0_48 = arith.constant 0 : index
    %c0_49 = arith.constant 0 : index
    %c0_50 = arith.constant 0 : index
    %110 = vector.load %arg4[%c0_48, %c0_49, %c0_50] : memref<1x8x64xbf16, #tpu.memory_space<vmem>>, vector<1x8x64xbf16>
    %111 = vector.shape_cast %110 : vector<1x8x64xbf16> to vector<8x64xbf16>
    %cst_51 = arith.constant 2.500000e-01 : f32
    %112 = vector.broadcast %cst_51 : f32 to vector<8x32xf32>
    %113 = arith.mulf %109, %112 : vector<8x32xf32>
    %114 = arith.truncf %113 : vector<8x32xf32> to vector<8x32xbf16>
    %cst_52 = arith.constant 0xFF800000 : f32
    %115 = vector.broadcast %cst_52 : f32 to vector<8x1xf32>
    %cst_53 = arith.constant 0xFF800000 : f32
    %116 = vector.broadcast %cst_53 : f32 to vector<8x1xf32>
    %cst_54 = arith.constant 0.000000e+00 : f32
    %117 = vector.broadcast %cst_54 : f32 to vector<8x1xf32>
    %cst_55 = arith.constant 0.000000e+00 : f32
    %118 = vector.broadcast %cst_55 : f32 to vector<8x1xf32>
    %cst_56 = arith.constant 0.000000e+00 : f32
    %119 = vector.broadcast %cst_56 : f32 to vector<8x16xf32>
    %cst_57 = arith.constant 0.000000e+00 : f32
    %120 = vector.broadcast %cst_57 : f32 to vector<8x16xf32>
    %121 = vector.extract_strided_slice %111 {offsets = [0, 0], sizes = [8, 32], strides = [1, 1]} : vector<8x64xbf16> to vector<8x32xbf16>
    %122 = vector.extract_strided_slice %111 {offsets = [0, 32], sizes = [8, 32], strides = [1, 1]} : vector<8x64xbf16> to vector<8x32xbf16>
    %123 = vector.extract_strided_slice %114 {offsets = [0, 0], sizes = [8, 16], strides = [1, 1]} : vector<8x32xbf16> to vector<8x16xbf16>
    %124 = vector.extract_strided_slice %121 {offsets = [0, 0], sizes = [8, 16], strides = [1, 1]} : vector<8x32xbf16> to vector<8x16xbf16>
    %cst_58 = arith.constant dense<0.000000e+00> : vector<8x8xf32>
    %125 = tpu.matmul %123, %124, %cst_58 {dimension_numbers = #tpu.dot_dimension_numbers<[1], [1], [0], [0], [0, 0, 1, 0], [], []>} : vector<8x16xbf16>, vector<8x16xbf16>, vector<8x8xf32> -> vector<8x8xf32>
    %cst_59 = arith.constant dense<0xFF800000> : vector<8xf32>
    %126 = vector.multi_reduction <maximumf>, %125, %cst_59 [1] : vector<8x8xf32> to vector<8xf32>
    %127 = vector.shape_cast %126 : vector<8xf32> to vector<8x1xf32>
    %128 = arith.maximumf %115, %127 : vector<8x1xf32>
    %129 = arith.subf %115, %128 : vector<8x1xf32>
    %130 = math.exp %129 : vector<8x1xf32>
    %131 = vector.broadcast %128 : vector<8x1xf32> to vector<8x8xf32>
    %132 = arith.subf %125, %131 : vector<8x8xf32>
    %133 = math.exp %132 : vector<8x8xf32>
    %134 = arith.mulf %130, %117 : vector<8x1xf32>
    %cst_60 = arith.constant dense<0.000000e+00> : vector<8xf32>
    %135 = vector.multi_reduction <add>, %133, %cst_60 [1] : vector<8x8xf32> to vector<8xf32>
    %136 = vector.shape_cast %135 : vector<8xf32> to vector<8x1xf32>
    %137 = arith.addf %134, %136 : vector<8x1xf32>
    %138 = vector.broadcast %130 : vector<8x1xf32> to vector<8x16xf32>
    %139 = arith.mulf %138, %119 : vector<8x16xf32>
    %140 = arith.truncf %133 : vector<8x8xf32> to vector<8x8xbf16>
    %141 = vector.extract_strided_slice %122 {offsets = [0, 0], sizes = [8, 16], strides = [1, 1]} : vector<8x32xbf16> to vector<8x16xbf16>
    %cst_61 = arith.constant dense<0.000000e+00> : vector<8x16xf32>
    %142 = tpu.matmul %140, %141, %cst_61 {dimension_numbers = #tpu.dot_dimension_numbers<[1], [0], [0], [1], [0, 0, 1, 1], [], []>} : vector<8x8xbf16>, vector<8x16xbf16>, vector<8x16xf32> -> vector<8x16xf32>
    %143 = arith.addf %139, %142 : vector<8x16xf32>
    %144 = vector.extract_strided_slice %114 {offsets = [0, 16], sizes = [8, 16], strides = [1, 1]} : vector<8x32xbf16> to vector<8x16xbf16>
    %145 = vector.extract_strided_slice %121 {offsets = [0, 16], sizes = [8, 16], strides = [1, 1]} : vector<8x32xbf16> to vector<8x16xbf16>
    %cst_62 = arith.constant dense<0.000000e+00> : vector<8x8xf32>
    %146 = tpu.matmul %144, %145, %cst_62 {dimension_numbers = #tpu.dot_dimension_numbers<[1], [1], [0], [0], [0, 0, 1, 0], [], []>} : vector<8x16xbf16>, vector<8x16xbf16>, vector<8x8xf32> -> vector<8x8xf32>
    %cst_63 = arith.constant dense<0xFF800000> : vector<8xf32>
    %147 = vector.multi_reduction <maximumf>, %146, %cst_63 [1] : vector<8x8xf32> to vector<8xf32>
    %148 = vector.shape_cast %147 : vector<8xf32> to vector<8x1xf32>
    %149 = arith.maximumf %116, %148 : vector<8x1xf32>
    %150 = arith.subf %116, %149 : vector<8x1xf32>
    %151 = math.exp %150 : vector<8x1xf32>
    %152 = vector.broadcast %149 : vector<8x1xf32> to vector<8x8xf32>
    %153 = arith.subf %146, %152 : vector<8x8xf32>
    %154 = math.exp %153 : vector<8x8xf32>
    %155 = arith.mulf %151, %118 : vector<8x1xf32>
    %cst_64 = arith.constant dense<0.000000e+00> : vector<8xf32>
    %156 = vector.multi_reduction <add>, %154, %cst_64 [1] : vector<8x8xf32> to vector<8xf32>
    %157 = vector.shape_cast %156 : vector<8xf32> to vector<8x1xf32>
    %158 = arith.addf %155, %157 : vector<8x1xf32>
    %159 = vector.broadcast %151 : vector<8x1xf32> to vector<8x16xf32>
    %160 = arith.mulf %159, %120 : vector<8x16xf32>
    %161 = arith.truncf %154 : vector<8x8xf32> to vector<8x8xbf16>
    %162 = vector.extract_strided_slice %122 {offsets = [0, 16], sizes = [8, 16], strides = [1, 1]} : vector<8x32xbf16> to vector<8x16xbf16>
    %cst_65 = arith.constant dense<0.000000e+00> : vector<8x16xf32>
    %163 = tpu.matmul %161, %162, %cst_65 {dimension_numbers = #tpu.dot_dimension_numbers<[1], [0], [0], [1], [0, 0, 1, 1], [], []>} : vector<8x8xbf16>, vector<8x16xbf16>, vector<8x16xf32> -> vector<8x16xf32>
    %164 = arith.addf %160, %163 : vector<8x16xf32>
    %165 = tpu.reciprocal %137 {approx = true} : vector<8x1xf32> -> vector<8x1xf32>
    %166 = vector.broadcast %165 : vector<8x1xf32> to vector<8x16xf32>
    %167 = arith.mulf %143, %166 : vector<8x16xf32>
    %168 = arith.truncf %167 : vector<8x16xf32> to vector<8x16xbf16>
    %c0_66 = arith.constant 0 : index
    %c0_67 = arith.constant 0 : index
    %169 = vector.load %arg24[%c0_66, %c0_67] : memref<8x32xbf16, #tpu.memory_space<vmem>>, vector<8x16xbf16>
    tpu.vector_store %arg24[%c0_66, %c0_67], %168 {strides = array<i32>} : memref<8x32xbf16, #tpu.memory_space<vmem>>, vector<8x16xbf16>,
    %170 = tpu.reciprocal %158 {approx = true} : vector<8x1xf32> -> vector<8x1xf32>
    %171 = vector.broadcast %170 : vector<8x1xf32> to vector<8x16xf32>
    %172 = arith.mulf %164, %171 : vector<8x16xf32>
    %173 = arith.truncf %172 : vector<8x16xf32> to vector<8x16xbf16>
    %c0_68 = arith.constant 0 : index
    %c16_69 = arith.constant 16 : index
    %174 = vector.load %arg24[%c0_68, %c16_69] : memref<8x32xbf16, #tpu.memory_space<vmem>>, vector<8x16xbf16>
    tpu.vector_store %arg24[%c0_68, %c16_69], %173 {strides = array<i32>} : memref<8x32xbf16, #tpu.memory_space<vmem>>, vector<8x16xbf16>,
    %c0_70 = arith.constant 0 : index
    %c0_71 = arith.constant 0 : index
    %175 = vector.load %arg24[%c0_70, %c0_71] : memref<8x32xbf16, #tpu.memory_space<vmem>>, vector<8x32xbf16>
    %c0_72 = arith.constant 0 : index
    %c0_73 = arith.constant 0 : index
    %176 = vector.load %arg13[%c0_72, %c0_73] : memref<32x32xbf16, #tpu.memory_space<vmem>>, vector<32x32xbf16>
    %cst_74 = arith.constant dense<0.000000e+00> : vector<8x32xf32>
    %177 = tpu.matmul %175, %176, %cst_74 {dimension_numbers = #tpu.dot_dimension_numbers<[1], [0], [0], [1], [0, 0, 1, 1], [], []>} : vector<8x32xbf16>, vector<32x32xbf16>, vector<8x32xf32> -> vector<8x32xf32>
    %c0_75 = arith.constant 0 : index
    %c0_76 = arith.constant 0 : index
    %178 = vector.load %arg14[%c0_75, %c0_76] : memref<1x32xf32, #tpu.memory_space<vmem>>, vector<1x32xf32>
    %179 = vector.broadcast %178 : vector<1x32xf32> to vector<8x32xf32>
    %180 = arith.addf %177, %179 : vector<8x32xf32>
    %181 = arith.addf %103, %180 : vector<8x32xf32>
    %c0_77 = arith.constant 0 : index
    %c0_78 = arith.constant 0 : index
    %182 = vector.load %arg15[%c0_77, %c0_78] : memref<1x32xf32, #tpu.memory_space<vmem>>, vector<1x32xf32>
    %c0_79 = arith.constant 0 : index
    %c0_80 = arith.constant 0 : index
    %183 = vector.load %arg16[%c0_79, %c0_80] : memref<1x32xf32, #tpu.memory_space<vmem>>, vector<1x32xf32>
    %cst_81 = arith.constant dense<0.000000e+00> : vector<8xf32>
    %184 = vector.multi_reduction <add>, %181, %cst_81 [1] : vector<8x32xf32> to vector<8xf32>
    %185 = vector.shape_cast %184 : vector<8xf32> to vector<8x1xf32>
    %cst_82 = arith.constant 3.200000e+01 : f32
    %186 = vector.broadcast %cst_82 : f32 to vector<8x1xf32>
    %187 = arith.divf %185, %186 : vector<8x1xf32>
    %188 = vector.broadcast %187 : vector<8x1xf32> to vector<8x32xf32>
    %189 = arith.subf %181, %188 : vector<8x32xf32>
    %190 = arith.mulf %189, %189 : vector<8x32xf32>
    %cst_83 = arith.constant dense<0.000000e+00> : vector<8xf32>
    %191 = vector.multi_reduction <add>, %190, %cst_83 [1] : vector<8x32xf32> to vector<8xf32>
    %192 = vector.shape_cast %191 : vector<8xf32> to vector<8x1xf32>
    %cst_84 = arith.constant 3.200000e+01 : f32
    %193 = vector.broadcast %cst_84 : f32 to vector<8x1xf32>
    %194 = arith.divf %192, %193 : vector<8x1xf32>
    %195 = vector.broadcast %187 : vector<8x1xf32> to vector<8x32xf32>
    %196 = arith.subf %181, %195 : vector<8x32xf32>
    %cst_85 = arith.constant 9.99999974E-6 : f32
    %197 = vector.broadcast %cst_85 : f32 to vector<8x1xf32>
    %198 = arith.addf %194, %197 : vector<8x1xf32>
    %199 = math.rsqrt %198 : vector<8x1xf32>
    %200 = vector.broadcast %199 : vector<8x1xf32> to vector<8x32xf32>
    %201 = arith.mulf %196, %200 : vector<8x32xf32>
    %202 = vector.broadcast %182 : vector<1x32xf32> to vector<8x32xf32>
    %203 = arith.mulf %201, %202 : vector<8x32xf32>
    %204 = vector.broadcast %183 : vector<1x32xf32> to vector<8x32xf32>
    %205 = arith.addf %203, %204 : vector<8x32xf32>
    %c0_86 = arith.constant 0 : index
    %c0_87 = arith.constant 0 : index
    %206 = vector.load %arg17[%c0_86, %c0_87] : memref<32x64xbf16, #tpu.memory_space<vmem>>, vector<32x64xbf16>
    %c0_88 = arith.constant 0 : index
    %c0_89 = arith.constant 0 : index
    %207 = vector.load %arg18[%c0_88, %c0_89] : memref<1x64xf32, #tpu.memory_space<vmem>>, vector<1x64xf32>
    %c0_90 = arith.constant 0 : index
    %c0_91 = arith.constant 0 : index
    %208 = vector.load %arg19[%c0_90, %c0_91] : memref<64x32xbf16, #tpu.memory_space<vmem>>, vector<64x32xbf16>
    %c0_92 = arith.constant 0 : index
    %c0_93 = arith.constant 0 : index
    %209 = vector.load %arg20[%c0_92, %c0_93] : memref<1x32xf32, #tpu.memory_space<vmem>>, vector<1x32xf32>
    %210 = arith.truncf %205 : vector<8x32xf32> to vector<8x32xbf16>
    %cst_94 = arith.constant dense<0.000000e+00> : vector<8x64xf32>
    %211 = tpu.matmul %210, %206, %cst_94 {dimension_numbers = #tpu.dot_dimension_numbers<[1], [0], [0], [1], [0, 0, 1, 1], [], []>} : vector<8x32xbf16>, vector<32x64xbf16>, vector<8x64xf32> -> vector<8x64xf32>
    %212 = vector.broadcast %207 : vector<1x64xf32> to vector<8x64xf32>
    %213 = arith.addf %211, %212 : vector<8x64xf32>
    %cst_95 = arith.constant 0.000000e+00 : f32
    %214 = vector.broadcast %cst_95 : f32 to vector<8x64xf32>
    %215 = arith.maximumf %213, %214 : vector<8x64xf32>
    %216 = arith.truncf %215 : vector<8x64xf32> to vector<8x64xbf16>
    %cst_96 = arith.constant dense<0.000000e+00> : vector<8x32xf32>
    %217 = tpu.matmul %216, %208, %cst_96 {dimension_numbers = #tpu.dot_dimension_numbers<[1], [0], [0], [1], [0, 0, 1, 1], [], []>} : vector<8x64xbf16>, vector<64x32xbf16>, vector<8x32xf32> -> vector<8x32xf32>
    %218 = vector.broadcast %209 : vector<1x32xf32> to vector<8x32xf32>
    %219 = arith.addf %217, %218 : vector<8x32xf32>
    %220 = arith.addf %205, %219 : vector<8x32xf32>
    %c0_97 = arith.constant 0 : index
    %c0_98 = arith.constant 0 : index
    %221 = vector.load %arg21[%c0_97, %c0_98] : memref<1x32xf32, #tpu.memory_space<vmem>>, vector<1x32xf32>
    %c0_99 = arith.constant 0 : index
    %c0_100 = arith.constant 0 : index
    %222 = vector.load %arg22[%c0_99, %c0_100] : memref<1x32xf32, #tpu.memory_space<vmem>>, vector<1x32xf32>
    %cst_101 = arith.constant dense<0.000000e+00> : vector<8xf32>
    %223 = vector.multi_reduction <add>, %220, %cst_101 [1] : vector<8x32xf32> to vector<8xf32>
    %224 = vector.shape_cast %223 : vector<8xf32> to vector<8x1xf32>
    %cst_102 = arith.constant 3.200000e+01 : f32
    %225 = vector.broadcast %cst_102 : f32 to vector<8x1xf32>
    %226 = arith.divf %224, %225 : vector<8x1xf32>
    %227 = vector.broadcast %226 : vector<8x1xf32> to vector<8x32xf32>
    %228 = arith.subf %220, %227 : vector<8x32xf32>
    %229 = arith.mulf %228, %228 : vector<8x32xf32>
    %cst_103 = arith.constant dense<0.000000e+00> : vector<8xf32>
    %230 = vector.multi_reduction <add>, %229, %cst_103 [1] : vector<8x32xf32> to vector<8xf32>
    %231 = vector.shape_cast %230 : vector<8xf32> to vector<8x1xf32>
    %cst_104 = arith.constant 3.200000e+01 : f32
    %232 = vector.broadcast %cst_104 : f32 to vector<8x1xf32>
    %233 = arith.divf %231, %232 : vector<8x1xf32>
    %234 = vector.broadcast %226 : vector<8x1xf32> to vector<8x32xf32>
    %235 = arith.subf %220, %234 : vector<8x32xf32>
    %cst_105 = arith.constant 9.99999974E-6 : f32
    %236 = vector.broadcast %cst_105 : f32 to vector<8x1xf32>
    %237 = arith.addf %233, %236 : vector<8x1xf32>
    %238 = math.rsqrt %237 : vector<8x1xf32>
    %239 = vector.broadcast %238 : vector<8x1xf32> to vector<8x32xf32>
    %240 = arith.mulf %235, %239 : vector<8x32xf32>
    %241 = vector.broadcast %221 : vector<1x32xf32> to vector<8x32xf32>
    %242 = arith.mulf %240, %241 : vector<8x32xf32>
    %243 = vector.broadcast %222 : vector<1x32xf32> to vector<8x32xf32>
    %244 = arith.addf %242, %243 : vector<8x32xf32>
    %c0_106 = arith.constant 0 : index
    %c0_107 = arith.constant 0 : index
    %c0_108 = arith.constant 0 : index
    %245 = vector.load %arg23[%c0_106, %c0_107, %c0_108] : memref<1x8x32xf32, #tpu.memory_space<vmem>>, vector<1x8x32xf32>
    %246 = vector.shape_cast %245 : vector<1x8x32xf32> to vector<8x32xf32>
    %247 = vector.shape_cast %244 : vector<8x32xf32> to vector<1x8x32xf32>
    tpu.vector_store %arg23[%c0_106, %c0_107, %c0_108], %247 {strides = array<i32>} : memref<1x8x32xf32, #tpu.memory_space<vmem>>, vector<1x8x32xf32>,
    return
  }
  func.func @transform_0(%arg0: i32, %arg1: i32) -> (i32, i32, i32) {
    %c0_i32 = arith.constant 0 : i32
    %c0_i32_0 = arith.constant 0 : i32
    return %arg0, %arg1, %c0_i32 : i32, i32, i32
  }
  func.func @transform_1(%arg0: i32, %arg1: i32) -> (i32, i32, i32) {
    %c0_i32 = arith.constant 0 : i32
    %c0_i32_0 = arith.constant 0 : i32
    %c0_i32_1 = arith.constant 0 : i32
    return %arg0, %c0_i32, %c0_i32_0 : i32, i32, i32
  }
  func.func @transform_2(%arg0: i32, %arg1: i32) -> (i32, i32, i32) {
    %c0_i32 = arith.constant 0 : i32
    %c0_i32_0 = arith.constant 0 : i32
    %c0_i32_1 = arith.constant 0 : i32
    return %arg0, %c0_i32, %c0_i32_0 : i32, i32, i32
  }
  func.func @transform_3(%arg0: i32, %arg1: i32) -> (i32, i32) {
    %c0_i32 = arith.constant 0 : i32
    %c0_i32_0 = arith.constant 0 : i32
    %c0_i32_1 = arith.constant 0 : i32
    return %c0_i32, %c0_i32_0 : i32, i32
  }
  func.func @transform_4(%arg0: i32, %arg1: i32) -> (i32, i32) {
    %c0_i32 = arith.constant 0 : i32
    %c0_i32_0 = arith.constant 0 : i32
    %c0_i32_1 = arith.constant 0 : i32
    return %c0_i32, %c0_i32_0 : i32, i32
  }
  func.func @transform_5(%arg0: i32, %arg1: i32) -> (i32, i32) {
    %c0_i32 = arith.constant 0 : i32
    %c0_i32_0 = arith.constant 0 : i32
    %c0_i32_1 = arith.constant 0 : i32
    return %c0_i32, %c0_i32_0 : i32, i32
  }
  func.func @transform_6(%arg0: i32, %arg1: i32) -> (i32, i32) {
    %c0_i32 = arith.constant 0 : i32
    %c0_i32_0 = arith.constant 0 : i32
    %c0_i32_1 = arith.constant 0 : i32
    return %c0_i32, %c0_i32_0 : i32, i32
  }
  func.func @transform_7(%arg0: i32, %arg1: i32) -> (i32, i32) {
    %c0_i32 = arith.constant 0 : i32
    %c0_i32_0 = arith.constant 0 : i32
    %c0_i32_1 = arith.constant 0 : i32
    return %c0_i32, %c0_i32_0 : i32, i32
  }
  func.func @transform_8(%arg0: i32, %arg1: i32) -> (i32, i32) {
    %c0_i32 = arith.constant 0 : i32
    %c0_i32_0 = arith.constant 0 : i32
    %c0_i32_1 = arith.constant 0 : i32
    return %c0_i32, %c0_i32_0 : i32, i32
  }
  func.func @transform_9(%arg0: i32, %arg1: i32) -> (i32, i32) {
    %c0_i32 = arith.constant 0 : i32
    %c0_i32_0 = arith.constant 0 : i32
    %c0_i32_1 = arith.constant 0 : i32
    return %c0_i32, %c0_i32_0 : i32, i32
  }
  func.func @transform_10(%arg0: i32, %arg1: i32) -> (i32, i32) {
    %c0_i32 = arith.constant 0 : i32
    %c0_i32_0 = arith.constant 0 : i32
    %c0_i32_1 = arith.constant 0 : i32
    return %c0_i32, %c0_i32_0 : i32, i32
  }
  func.func @transform_11(%arg0: i32, %arg1: i32) -> (i32, i32) {
    %c0_i32 = arith.constant 0 : i32
    %c0_i32_0 = arith.constant 0 : i32
    %c0_i32_1 = arith.constant 0 : i32
    return %c0_i32, %c0_i32_0 : i32, i32
  }
  func.func @transform_12(%arg0: i32, %arg1: i32) -> (i32, i32) {
    %c0_i32 = arith.constant 0 : i32
    %c0_i32_0 = arith.constant 0 : i32
    %c0_i32_1 = arith.constant 0 : i32
    return %c0_i32, %c0_i32_0 : i32, i32
  }
  func.func @transform_13(%arg0: i32, %arg1: i32) -> (i32, i32) {
    %c0_i32 = arith.constant 0 : i32
    %c0_i32_0 = arith.constant 0 : i32
    %c0_i32_1 = arith.constant 0 : i32
    return %c0_i32, %c0_i32_0 : i32, i32
  }
  func.func @transform_14(%arg0: i32, %arg1: i32) -> (i32, i32) {
    %c0_i32 = arith.constant 0 : i32
    %c0_i32_0 = arith.constant 0 : i32
    %c0_i32_1 = arith.constant 0 : i32
    return %c0_i32, %c0_i32_0 : i32, i32
  }
  func.func @transform_15(%arg0: i32, %arg1: i32) -> (i32, i32) {
    %c0_i32 = arith.constant 0 : i32
    %c0_i32_0 = arith.constant 0 : i32
    %c0_i32_1 = arith.constant 0 : i32
    return %c0_i32, %c0_i32_0 : i32, i32
  }
  func.func @transform_16(%arg0: i32, %arg1: i32) -> (i32, i32) {
    %c0_i32 = arith.constant 0 : i32
    %c0_i32_0 = arith.constant 0 : i32
    %c0_i32_1 = arith.constant 0 : i32
    return %c0_i32, %c0_i32_0 : i32, i32
  }
  func.func @transform_17(%arg0: i32, %arg1: i32) -> (i32, i32) {
    %c0_i32 = arith.constant 0 : i32
    %c0_i32_0 = arith.constant 0 : i32
    %c0_i32_1 = arith.constant 0 : i32
    return %c0_i32, %c0_i32_0 : i32, i32
  }
  func.func @transform_18(%arg0: i32, %arg1: i32) -> (i32, i32) {
    %c0_i32 = arith.constant 0 : i32
    %c0_i32_0 = arith.constant 0 : i32
    %c0_i32_1 = arith.constant 0 : i32
    return %c0_i32, %c0_i32_0 : i32, i32
  }
  func.func @transform_19(%arg0: i32, %arg1: i32) -> (i32, i32) {
    %c0_i32 = arith.constant 0 : i32
    %c0_i32_0 = arith.constant 0 : i32
    %c0_i32_1 = arith.constant 0 : i32
    return %c0_i32, %c0_i32_0 : i32, i32
  }
  func.func @transform_20(%arg0: i32, %arg1: i32) -> (i32, i32) {
    %c0_i32 = arith.constant 0 : i32
    %c0_i32_0 = arith.constant 0 : i32
    %c0_i32_1 = arith.constant 0 : i32
    return %c0_i32, %c0_i32_0 : i32, i32
  }
  func.func @transform_21(%arg0: i32, %arg1: i32) -> (i32, i32, i32) {
    %c0_i32 = arith.constant 0 : i32
    %c0_i32_0 = arith.constant 0 : i32
    return %arg0, %arg1, %c0_i32 : i32, i32, i32
  }
}

module attributes {stable_mosaic.version = 11 : i64} {
  func.func @_decoder_layer_kernel(%arg0: i32, %arg1: i32, %arg2: memref<1x8x32xf32, #tpu.memory_space<vmem>>, %arg3: memref<1x8x64xbf16, #tpu.memory_space<vmem>>, %arg4: memref<1x8x64xbf16, #tpu.memory_space<vmem>>, %arg5: memref<32x32xbf16, #tpu.memory_space<vmem>>, %arg6: memref<1x32xf32, #tpu.memory_space<vmem>>, %arg7: memref<32x32xbf16, #tpu.memory_space<vmem>>, %arg8: memref<1x32xf32, #tpu.memory_space<vmem>>, %arg9: memref<1x32xf32, #tpu.memory_space<vmem>>, %arg10: memref<1x32xf32, #tpu.memory_space<vmem>>, %arg11: memref<32x32xbf16, #tpu.memory_space<vmem>>, %arg12: memref<1x32xf32, #tpu.memory_space<vmem>>, %arg13: memref<32x32xbf16, #tpu.memory_space<vmem>>, %arg14: memref<1x32xf32, #tpu.memory_space<vmem>>, %arg15: memref<1x32xf32, #tpu.memory_space<vmem>>, %arg16: memref<1x32xf32, #tpu.memory_space<vmem>>, %arg17: memref<32x64xbf16, #tpu.memory_space<vmem>>, %arg18: memref<1x64xf32, #tpu.memory_space<vmem>>, %arg19: memref<64x32xbf16, #tpu.memory_space<vmem>>, %arg20: memref<1x32xf32, #tpu.memory_space<vmem>>, %arg21: memref<1x32xf32, #tpu.memory_space<vmem>>, %arg22: memref<1x32xf32, #tpu.memory_space<vmem>>, %arg23: memref<1x8x32xf32, #tpu.memory_space<vmem>>, %arg24: memref<8x32xbf16, #tpu.memory_space<vmem>>) attributes {dimension_semantics = [#tpu.dimension_semantics<parallel>, #tpu.dimension_semantics<parallel>], iteration_bounds = array<i64: 2, 1>, scalar_prefetch = 0 : i64, scratch_operands = 1 : i64, tpu.core_type = #tpu.core_type<tc>, window_params = [{transform_indices = @transform_0, window_bounds = array<i64: 1, 8, 32>}, {transform_indices = @transform_1, window_bounds = array<i64: 1, 8, 64>}, {transform_indices = @transform_2, window_bounds = array<i64: 1, 8, 64>}, {pipeline_mode = #tpu.pipeline_mode<synchronous>, transform_indices = @transform_3, window_bounds = array<i64: 32, 32>}, {pipeline_mode = #tpu.pipeline_mode<synchronous>, transform_indices = @transform_4, window_bounds = array<i64: 1, 32>}, {pipeline_mode = #tpu.pipeline_mode<synchronous>, transform_indices = @transform_5, window_bounds = array<i64: 32, 32>}, {pipeline_mode = #tpu.pipeline_mode<synchronous>, transform_indices = @transform_6, window_bounds = array<i64: 1, 32>}, {pipeline_mode = #tpu.pipeline_mode<synchronous>, transform_indices = @transform_7, window_bounds = array<i64: 1, 32>}, {pipeline_mode = #tpu.pipeline_mode<synchronous>, transform_indices = @transform_8, window_bounds = array<i64: 1, 32>}, {pipeline_mode = #tpu.pipeline_mode<synchronous>, transform_indices = @transform_9, window_bounds = array<i64: 32, 32>}, {pipeline_mode = #tpu.pipeline_mode<synchronous>, transform_indices = @transform_10, window_bounds = array<i64: 1, 32>}, {pipeline_mode = #tpu.pipeline_mode<synchronous>, transform_indices = @transform_11, window_bounds = array<i64: 32, 32>}, {pipeline_mode = #tpu.pipeline_mode<synchronous>, transform_indices = @transform_12, window_bounds = array<i64: 1, 32>}, {pipeline_mode = #tpu.pipeline_mode<synchronous>, transform_indices = @transform_13, window_bounds = array<i64: 1, 32>}, {pipeline_mode = #tpu.pipeline_mode<synchronous>, transform_indices = @transform_14, window_bounds = array<i64: 1, 32>}, {pipeline_mode = #tpu.pipeline_mode<synchronous>, transform_indices = @transform_15, window_bounds = array<i64: 32, 64>}, {pipeline_mode = #tpu.pipeline_mode<synchronous>, transform_indices = @transform_16, window_bounds = array<i64: 1, 64>}, {pipeline_mode = #tpu.pipeline_mode<synchronous>, transform_indices = @transform_17, window_bounds = array<i64: 64, 32>}, {pipeline_mode = #tpu.pipeline_mode<synchronous>, transform_indices = @transform_18, window_bounds = array<i64: 1, 32>}, {pipeline_mode = #tpu.pipeline_mode<synchronous>, transform_indices = @transform_19, window_bounds = array<i64: 1, 32>}, {pipeline_mode = #tpu.pipeline_mode<synchronous>, transform_indices = @transform_20, window_bounds = array<i64: 1, 32>}, {transform_indices = @transform_21, window_bounds = array<i64: 1, 8, 32>}]} {
    %c0 = arith.constant 0 : index
    %c0_0 = arith.constant 0 : index
    %c0_1 = arith.constant 0 : index
    %0 = vector.load %arg2[%c0, %c0_0, %c0_1] : memref<1x8x32xf32, #tpu.memory_space<vmem>>, vector<1x8x32xf32>
    %1 = vector.shape_cast %0 : vector<1x8x32xf32> to vector<8x32xf32>
    %c0_2 = arith.constant 0 : index
    %c0_3 = arith.constant 0 : index
    %2 = vector.load %arg5[%c0_2, %c0_3] : memref<32x32xbf16, #tpu.memory_space<vmem>>, vector<32x32xbf16>
    %c0_4 = arith.constant 0 : index
    %c0_5 = arith.constant 0 : index
    %3 = vector.load %arg6[%c0_4, %c0_5] : memref<1x32xf32, #tpu.memory_space<vmem>>, vector<1x32xf32>
    %4 = arith.truncf %1 : vector<8x32xf32> to vector<8x32xbf16>
    %cst = arith.constant dense<0.000000e+00> : vector<8x32xf32>
    %5 = tpu.matmul %4, %2, %cst {dimension_numbers = #tpu.dot_dimension_numbers<[1], [0], [0], [1], [0, 0, 1, 1], [], []>} : vector<8x32xbf16>, vector<32x32xbf16>, vector<8x32xf32> -> vector<8x32xf32>
    %6 = vector.broadcast %3 : vector<1x32xf32> to vector<8x32xf32>
    %7 = arith.addf %5, %6 : vector<8x32xf32>
    %c0_6 = arith.constant 0 : index
    %c0_7 = arith.constant 0 : index
    %c0_8 = arith.constant 0 : index
    %8 = vector.load %arg3[%c0_6, %c0_7, %c0_8] : memref<1x8x64xbf16, #tpu.memory_space<vmem>>, vector<1x8x64xbf16>
    %9 = vector.shape_cast %8 : vector<1x8x64xbf16> to vector<8x64xbf16>
    %cst_9 = arith.constant 2.500000e-01 : f32
    %10 = vector.broadcast %cst_9 : f32 to vector<8x32xf32>
    %11 = arith.mulf %7, %10 : vector<8x32xf32>
    %12 = arith.truncf %11 : vector<8x32xf32> to vector<8x32xbf16>
    %cst_10 = arith.constant 0xFF800000 : f32
    %13 = vector.broadcast %cst_10 : f32 to vector<8x1xf32>
    %cst_11 = arith.constant 0xFF800000 : f32
    %14 = vector.broadcast %cst_11 : f32 to vector<8x1xf32>
    %cst_12 = arith.constant 0.000000e+00 : f32
    %15 = vector.broadcast %cst_12 : f32 to vector<8x1xf32>
    %cst_13 = arith.constant 0.000000e+00 : f32
    %16 = vector.broadcast %cst_13 : f32 to vector<8x1xf32>
    %cst_14 = arith.constant 0.000000e+00 : f32
    %17 = vector.broadcast %cst_14 : f32 to vector<8x16xf32>
    %cst_15 = arith.constant 0.000000e+00 : f32
    %18 = vector.broadcast %cst_15 : f32 to vector<8x16xf32>
    %19 = vector.extract_strided_slice %9 {offsets = [0, 0], sizes = [8, 32], strides = [1, 1]} : vector<8x64xbf16> to vector<8x32xbf16>
    %20 = vector.extract_strided_slice %9 {offsets = [0, 32], sizes = [8, 32], strides = [1, 1]} : vector<8x64xbf16> to vector<8x32xbf16>
    %21 = vector.extract_strided_slice %12 {offsets = [0, 0], sizes = [8, 16], strides = [1, 1]} : vector<8x32xbf16> to vector<8x16xbf16>
    %22 = vector.extract_strided_slice %19 {offsets = [0, 0], sizes = [8, 16], strides = [1, 1]} : vector<8x32xbf16> to vector<8x16xbf16>
    %cst_16 = arith.constant dense<0.000000e+00> : vector<8x8xf32>
    %23 = tpu.matmul %21, %22, %cst_16 {dimension_numbers = #tpu.dot_dimension_numbers<[1], [1], [0], [0], [0, 0, 1, 0], [], []>} : vector<8x16xbf16>, vector<8x16xbf16>, vector<8x8xf32> -> vector<8x8xf32>
    %cst_17 = arith.constant dense<0xFF800000> : vector<8xf32>
    %24 = vector.multi_reduction <maximumf>, %23, %cst_17 [1] : vector<8x8xf32> to vector<8xf32>
    %25 = vector.shape_cast %24 : vector<8xf32> to vector<8x1xf32>
    %26 = arith.maximumf %13, %25 : vector<8x1xf32>
    %27 = arith.subf %13, %26 : vector<8x1xf32>
    %28 = math.exp %27 : vector<8x1xf32>
    %29 = vector.broadcast %26 : vector<8x1xf32> to vector<8x8xf32>
    %30 = arith.subf %23, %29 : vector<8x8xf32>
    %31 = math.exp %30 : vector<8x8xf32>
    %32 = arith.mulf %28, %15 : vector<8x1xf32>
    %cst_18 = arith.constant dense<0.000000e+00> : vector<8xf32>
    %33 = vector.multi_reduction <add>, %31, %cst_18 [1] : vector<8x8xf32> to vector<8xf32>
    %34 = vector.shape_cast %33 : vector<8xf32> to vector<8x1xf32>
    %35 = arith.addf %32, %34 : vector<8x1xf32>
    %36 = vector.broadcast %28 : vector<8x1xf32> to vector<8x16xf32>
    %37 = arith.mulf %36, %17 : vector<8x16xf32>
    %38 = arith.truncf %31 : vector<8x8xf32> to vector<8x8xbf16>
    %39 = vector.extract_strided_slice %20 {offsets = [0, 0], sizes = [8, 16], strides = [1, 1]} : vector<8x32xbf16> to vector<8x16xbf16>
    %cst_19 = arith.constant dense<0.000000e+00> : vector<8x16xf32>
    %40 = tpu.matmul %38, %39, %cst_19 {dimension_numbers = #tpu.dot_dimension_numbers<[1], [0], [0], [1], [0, 0, 1, 1], [], []>} : vector<8x8xbf16>, vector<8x16xbf16>, vector<8x16xf32> -> vector<8x16xf32>
    %41 = arith.addf %37, %40 : vector<8x16xf32>
    %42 = vector.extract_strided_slice %12 {offsets = [0, 16], sizes = [8, 16], strides = [1, 1]} : vector<8x32xbf16> to vector<8x16xbf16>
    %43 = vector.extract_strided_slice %19 {offsets = [0, 16], sizes = [8, 16], strides = [1, 1]} : vector<8x32xbf16> to vector<8x16xbf16>
    %cst_20 = arith.constant dense<0.000000e+00> : vector<8x8xf32>
    %44 = tpu.matmul %42, %43, %cst_20 {dimension_numbers = #tpu.dot_dimension_numbers<[1], [1], [0], [0], [0, 0, 1, 0], [], []>} : vector<8x16xbf16>, vector<8x16xbf16>, vector<8x8xf32> -> vector<8x8xf32>
    %cst_21 = arith.constant dense<0xFF800000> : vector<8xf32>
    %45 = vector.multi_reduction <maximumf>, %44, %cst_21 [1] : vector<8x8xf32> to vector<8xf32>
    %46 = vector.shape_cast %45 : vector<8xf32> to vector<8x1xf32>
    %47 = arith.maximumf %14, %46 : vector<8x1xf32>
    %48 = arith.subf %14, %47 : vector<8x1xf32>
    %49 = math.exp %48 : vector<8x1xf32>
    %50 = vector.broadcast %47 : vector<8x1xf32> to vector<8x8xf32>
    %51 = arith.subf %44, %50 : vector<8x8xf32>
    %52 = math.exp %51 : vector<8x8xf32>
    %53 = arith.mulf %49, %16 : vector<8x1xf32>
    %cst_22 = arith.constant dense<0.000000e+00> : vector<8xf32>
    %54 = vector.multi_reduction <add>, %52, %cst_22 [1] : vector<8x8xf32> to vector<8xf32>
    %55 = vector.shape_cast %54 : vector<8xf32> to vector<8x1xf32>
    %56 = arith.addf %53, %55 : vector<8x1xf32>
    %57 = vector.broadcast %49 : vector<8x1xf32> to vector<8x16xf32>
    %58 = arith.mulf %57, %18 : vector<8x16xf32>
    %59 = arith.truncf %52 : vector<8x8xf32> to vector<8x8xbf16>
    %60 = vector.extract_strided_slice %20 {offsets = [0, 16], sizes = [8, 16], strides = [1, 1]} : vector<8x32xbf16> to vector<8x16xbf16>
    %cst_23 = arith.constant dense<0.000000e+00> : vector<8x16xf32>
    %61 = tpu.matmul %59, %60, %cst_23 {dimension_numbers = #tpu.dot_dimension_numbers<[1], [0], [0], [1], [0, 0, 1, 1], [], []>} : vector<8x8xbf16>, vector<8x16xbf16>, vector<8x16xf32> -> vector<8x16xf32>
    %62 = arith.addf %58, %61 : vector<8x16xf32>
    %63 = tpu.reciprocal %35 {approx = true} : vector<8x1xf32> -> vector<8x1xf32>
    %64 = vector.broadcast %63 : vector<8x1xf32> to vector<8x16xf32>
    %65 = arith.mulf %41, %64 : vector<8x16xf32>
    %66 = arith.truncf %65 : vector<8x16xf32> to vector<8x16xbf16>
    %c0_24 = arith.constant 0 : index
    %c0_25 = arith.constant 0 : index
    %67 = vector.load %arg24[%c0_24, %c0_25] : memref<8x32xbf16, #tpu.memory_space<vmem>>, vector<8x16xbf16>
    tpu.vector_store %arg24[%c0_24, %c0_25], %66 {strides = array<i32>} : memref<8x32xbf16, #tpu.memory_space<vmem>>, vector<8x16xbf16>,
    %68 = tpu.reciprocal %56 {approx = true} : vector<8x1xf32> -> vector<8x1xf32>
    %69 = vector.broadcast %68 : vector<8x1xf32> to vector<8x16xf32>
    %70 = arith.mulf %62, %69 : vector<8x16xf32>
    %71 = arith.truncf %70 : vector<8x16xf32> to vector<8x16xbf16>
    %c0_26 = arith.constant 0 : index
    %c16 = arith.constant 16 : index
    %72 = vector.load %arg24[%c0_26, %c16] : memref<8x32xbf16, #tpu.memory_space<vmem>>, vector<8x16xbf16>
    tpu.vector_store %arg24[%c0_26, %c16], %71 {strides = array<i32>} : memref<8x32xbf16, #tpu.memory_space<vmem>>, vector<8x16xbf16>,
    %c0_27 = arith.constant 0 : index
    %c0_28 = arith.constant 0 : index
    %73 = vector.load %arg24[%c0_27, %c0_28] : memref<8x32xbf16, #tpu.memory_space<vmem>>, vector<8x32xbf16>
    %c0_29 = arith.constant 0 : index
    %c0_30 = arith.constant 0 : index
    %74 = vector.load %arg7[%c0_29, %c0_30] : memref<32x32xbf16, #tpu.memory_space<vmem>>, vector<32x32xbf16>
    %cst_31 = arith.constant dense<0.000000e+00> : vector<8x32xf32>
    %75 = tpu.matmul %73, %74, %cst_31 {dimension_numbers = #tpu.dot_dimension_numbers<[1], [0], [0], [1], [0, 0, 1, 1], [], []>} : vector<8x32xbf16>, vector<32x32xbf16>, vector<8x32xf32> -> vector<8x32xf32>
    %c0_32 = arith.constant 0 : index
    %c0_33 = arith.constant 0 : index
    %76 = vector.load %arg8[%c0_32, %c0_33] : memref<1x32xf32, #tpu.memory_space<vmem>>, vector<1x32xf32>
    %77 = vector.broadcast %76 : vector<1x32xf32> to vector<8x32xf32>
    %78 = arith.addf %75, %77 : vector<8x32xf32>
    %79 = arith.addf %1, %78 : vector<8x32xf32>
    %c0_34 = arith.constant 0 : index
    %c0_35 = arith.constant 0 : index
    %80 = vector.load %arg9[%c0_34, %c0_35] : memref<1x32xf32, #tpu.memory_space<vmem>>, vector<1x32xf32>
    %c0_36 = arith.constant 0 : index
    %c0_37 = arith.constant 0 : index
    %81 = vector.load %arg10[%c0_36, %c0_37] : memref<1x32xf32, #tpu.memory_space<vmem>>, vector<1x32xf32>
    %cst_38 = arith.constant dense<0.000000e+00> : vector<8xf32>
    %82 = vector.multi_reduction <add>, %79, %cst_38 [1] : vector<8x32xf32> to vector<8xf32>
    %83 = vector.shape_cast %82 : vector<8xf32> to vector<8x1xf32>
    %cst_39 = arith.constant 3.200000e+01 : f32
    %84 = vector.broadcast %cst_39 : f32 to vector<8x1xf32>
    %85 = arith.divf %83, %84 : vector<8x1xf32>
    %86 = vector.broadcast %85 : vector<8x1xf32> to vector<8x32xf32>
    %87 = arith.subf %79, %86 : vector<8x32xf32>
    %88 = arith.mulf %87, %87 : vector<8x32xf32>
    %cst_40 = arith.constant dense<0.000000e+00> : vector<8xf32>
    %89 = vector.multi_reduction <add>, %88, %cst_40 [1] : vector<8x32xf32> to vector<8xf32>
    %90 = vector.shape_cast %89 : vector<8xf32> to vector<8x1xf32>
    %cst_41 = arith.constant 3.200000e+01 : f32
    %91 = vector.broadcast %cst_41 : f32 to vector<8x1xf32>
    %92 = arith.divf %90, %91 : vector<8x1xf32>
    %93 = vector.broadcast %85 : vector<8x1xf32> to vector<8x32xf32>
    %94 = arith.subf %79, %93 : vector<8x32xf32>
    %cst_42 = arith.constant 9.99999974E-6 : f32
    %95 = vector.broadcast %cst_42 : f32 to vector<8x1xf32>
    %96 = arith.addf %92, %95 : vector<8x1xf32>
    %97 = math.rsqrt %96 : vector<8x1xf32>
    %98 = vector.broadcast %97 : vector<8x1xf32> to vector<8x32xf32>
    %99 = arith.mulf %94, %98 : vector<8x32xf32>
    %100 = vector.broadcast %80 : vector<1x32xf32> to vector<8x32xf32>
    %101 = arith.mulf %99, %100 : vector<8x32xf32>
    %102 = vector.broadcast %81 : vector<1x32xf32> to vector<8x32xf32>
    %103 = arith.addf %101, %102 : vector<8x32xf32>
    %c0_43 = arith.constant 0 : index
    %c0_44 = arith.constant 0 : index
    %104 = vector.load %arg11[%c0_43, %c0_44] : memref<32x32xbf16, #tpu.memory_space<vmem>>, vector<32x32xbf16>
    %c0_45 = arith.constant 0 : index
    %c0_46 = arith.constant 0 : index
    %105 = vector.load %arg12[%c0_45, %c0_46] : memref<1x32xf32, #tpu.memory_space<vmem>>, vector<1x32xf32>
    %106 = arith.truncf %103 : vector<8x32xf32> to vector<8x32xbf16>
    %cst_47 = arith.constant dense<0.000000e+00> : vector<8x32xf32>
    %107 = tpu.matmul %106, %104, %cst_47 {dimension_numbers = #tpu.dot_dimension_numbers<[1], [0], [0], [1], [0, 0, 1, 1], [], []>} : vector<8x32xbf16>, vector<32x32xbf16>, vector<8x32xf32> -> vector<8x32xf32>
    %108 = vector.broadcast %105 : vector<1x32xf32> to vector<8x32xf32>
    %109 = arith.addf %107, %108 : vector<8x32xf32>
    %c0_48 = arith.constant 0 : index
    %c0_49 = arith.constant 0 : index
    %c0_50 = arith.constant 0 : index
    %110 = vector.load %arg4[%c0_48, %c0_49, %c0_50] : memref<1x8x64xbf16, #tpu.memory_space<vmem>>, vector<1x8x64xbf16>
    %111 = vector.shape_cast %110 : vector<1x8x64xbf16> to vector<8x64xbf16>
    %cst_51 = arith.constant 2.500000e-01 : f32
    %112 = vector.broadcast %cst_51 : f32 to vector<8x32xf32>
    %113 = arith.mulf %109, %112 : vector<8x32xf32>
    %114 = arith.truncf %113 : vector<8x32xf32> to vector<8x32xbf16>
    %cst_52 = arith.constant 0xFF800000 : f32
    %115 = vector.broadcast %cst_52 : f32 to vector<8x1xf32>
    %cst_53 = arith.constant 0xFF800000 : f32
    %116 = vector.broadcast %cst_53 : f32 to vector<8x1xf32>
    %cst_54 = arith.constant 0.000000e+00 : f32
    %117 = vector.broadcast %cst_54 : f32 to vector<8x1xf32>
    %cst_55 = arith.constant 0.000000e+00 : f32
    %118 = vector.broadcast %cst_55 : f32 to vector<8x1xf32>
    %cst_56 = arith.constant 0.000000e+00 : f32
    %119 = vector.broadcast %cst_56 : f32 to vector<8x16xf32>
    %cst_57 = arith.constant 0.000000e+00 : f32
    %120 = vector.broadcast %cst_57 : f32 to vector<8x16xf32>
    %121 = vector.extract_strided_slice %111 {offsets = [0, 0], sizes = [8, 32], strides = [1, 1]} : vector<8x64xbf16> to vector<8x32xbf16>
    %122 = vector.extract_strided_slice %111 {offsets = [0, 32], sizes = [8, 32], strides = [1, 1]} : vector<8x64xbf16> to vector<8x32xbf16>
    %123 = vector.extract_strided_slice %114 {offsets = [0, 0], sizes = [8, 16], strides = [1, 1]} : vector<8x32xbf16> to vector<8x16xbf16>
    %124 = vector.extract_strided_slice %121 {offsets = [0, 0], sizes = [8, 16], strides = [1, 1]} : vector<8x32xbf16> to vector<8x16xbf16>
    %cst_58 = arith.constant dense<0.000000e+00> : vector<8x8xf32>
    %125 = tpu.matmul %123, %124, %cst_58 {dimension_numbers = #tpu.dot_dimension_numbers<[1], [1], [0], [0], [0, 0, 1, 0], [], []>} : vector<8x16xbf16>, vector<8x16xbf16>, vector<8x8xf32> -> vector<8x8xf32>
    %cst_59 = arith.constant dense<0xFF800000> : vector<8xf32>
    %126 = vector.multi_reduction <maximumf>, %125, %cst_59 [1] : vector<8x8xf32> to vector<8xf32>
    %127 = vector.shape_cast %126 : vector<8xf32> to vector<8x1xf32>
    %128 = arith.maximumf %115, %127 : vector<8x1xf32>
    %129 = arith.subf %115, %128 : vector<8x1xf32>
    %130 = math.exp %129 : vector<8x1xf32>
    %131 = vector.broadcast %128 : vector<8x1xf32> to vector<8x8xf32>
    %132 = arith.subf %125, %131 : vector<8x8xf32>
    %133 = math.exp %132 : vector<8x8xf32>
    %134 = arith.mulf %130, %117 : vector<8x1xf32>
    %cst_60 = arith.constant dense<0.000000e+00> : vector<8xf32>
    %135 = vector.multi_reduction <add>, %133, %cst_60 [1] : vector<8x8xf32> to vector<8xf32>
    %136 = vector.shape_cast %135 : vector<8xf32> to vector<8x1xf32>
    %137 = arith.addf %134, %136 : vector<8x1xf32>
    %138 = vector.broadcast %130 : vector<8x1xf32> to vector<8x16xf32>
    %139 = arith.mulf %138, %119 : vector<8x16xf32>
    %140 = arith.truncf %133 : vector<8x8xf32> to vector<8x8xbf16>
    %141 = vector.extract_strided_slice %122 {offsets = [0, 0], sizes = [8, 16], strides = [1, 1]} : vector<8x32xbf16> to vector<8x16xbf16>
    %cst_61 = arith.constant dense<0.000000e+00> : vector<8x16xf32>
    %142 = tpu.matmul %140, %141, %cst_61 {dimension_numbers = #tpu.dot_dimension_numbers<[1], [0], [0], [1], [0, 0, 1, 1], [], []>} : vector<8x8xbf16>, vector<8x16xbf16>, vector<8x16xf32> -> vector<8x16xf32>
    %143 = arith.addf %139, %142 : vector<8x16xf32>
    %144 = vector.extract_strided_slice %114 {offsets = [0, 16], sizes = [8, 16], strides = [1, 1]} : vector<8x32xbf16> to vector<8x16xbf16>
    %145 = vector.extract_strided_slice %121 {offsets = [0, 16], sizes = [8, 16], strides = [1, 1]} : vector<8x32xbf16> to vector<8x16xbf16>
    %cst_62 = arith.constant dense<0.000000e+00> : vector<8x8xf32>
    %146 = tpu.matmul %144, %145, %cst_62 {dimension_numbers = #tpu.dot_dimension_numbers<[1], [1], [0], [0], [0, 0, 1, 0], [], []>} : vector<8x16xbf16>, vector<8x16xbf16>, vector<8x8xf32> -> vector<8x8xf32>
    %cst_63 = arith.constant dense<0xFF800000> : vector<8xf32>
    %147 = vector.multi_reduction <maximumf>, %146, %cst_63 [1] : vector<8x8xf32> to vector<8xf32>
    %148 = vector.shape_cast %147 : vector<8xf32> to vector<8x1xf32>
    %149 = arith.maximumf %116, %148 : vector<8x1xf32>
    %150 = arith.subf %116, %149 : vector<8x1xf32>
    %151 = math.exp %150 : vector<8x1xf32>
    %152 = vector.broadcast %149 : vector<8x1xf32> to vector<8x8xf32>
    %153 = arith.subf %146, %152 : vector<8x8xf32>
    %154 = math.exp %153 : vector<8x8xf32>
    %155 = arith.mulf %151, %118 : vector<8x1xf32>
    %cst_64 = arith.constant dense<0.000000e+00> : vector<8xf32>
    %156 = vector.multi_reduction <add>, %154, %cst_64 [1] : vector<8x8xf32> to vector<8xf32>
    %157 = vector.shape_cast %156 : vector<8xf32> to vector<8x1xf32>
    %158 = arith.addf %155, %157 : vector<8x1xf32>
    %159 = vector.broadcast %151 : vector<8x1xf32> to vector<8x16xf32>
    %160 = arith.mulf %159, %120 : vector<8x16xf32>
    %161 = arith.truncf %154 : vector<8x8xf32> to vector<8x8xbf16>
    %162 = vector.extract_strided_slice %122 {offsets = [0, 16], sizes = [8, 16], strides = [1, 1]} : vector<8x32xbf16> to vector<8x16xbf16>
    %cst_65 = arith.constant dense<0.000000e+00> : vector<8x16xf32>
    %163 = tpu.matmul %161, %162, %cst_65 {dimension_numbers = #tpu.dot_dimension_numbers<[1], [0], [0], [1], [0, 0, 1, 1], [], []>} : vector<8x8xbf16>, vector<8x16xbf16>, vector<8x16xf32> -> vector<8x16xf32>
    %164 = arith.addf %160, %163 : vector<8x16xf32>
    %165 = tpu.reciprocal %137 {approx = true} : vector<8x1xf32> -> vector<8x1xf32>
    %166 = vector.broadcast %165 : vector<8x1xf32> to vector<8x16xf32>
    %167 = arith.mulf %143, %166 : vector<8x16xf32>
    %168 = arith.truncf %167 : vector<8x16xf32> to vector<8x16xbf16>
    %c0_66 = arith.constant 0 : index
    %c0_67 = arith.constant 0 : index
    %169 = vector.load %arg24[%c0_66, %c0_67] : memref<8x32xbf16, #tpu.memory_space<vmem>>, vector<8x16xbf16>
    tpu.vector_store %arg24[%c0_66, %c0_67], %168 {strides = array<i32>} : memref<8x32xbf16, #tpu.memory_space<vmem>>, vector<8x16xbf16>,
    %170 = tpu.reciprocal %158 {approx = true} : vector<8x1xf32> -> vector<8x1xf32>
    %171 = vector.broadcast %170 : vector<8x1xf32> to vector<8x16xf32>
    %172 = arith.mulf %164, %171 : vector<8x16xf32>
    %173 = arith.truncf %172 : vector<8x16xf32> to vector<8x16xbf16>
    %c0_68 = arith.constant 0 : index
    %c16_69 = arith.constant 16 : index
    %174 = vector.load %arg24[%c0_68, %c16_69] : memref<8x32xbf16, #tpu.memory_space<vmem>>, vector<8x16xbf16>
    tpu.vector_store %arg24[%c0_68, %c16_69], %173 {strides = array<i32>} : memref<8x32xbf16, #tpu.memory_space<vmem>>, vector<8x16xbf16>,
    %c0_70 = arith.constant 0 : index
    %c0_71 = arith.constant 0 : index
    %175 = vector.load %arg24[%c0_70, %c0_71] : memref<8x32xbf16, #tpu.memory_space<vmem>>, vector<8x32xbf16>
    %c0_72 = arith.constant 0 : index
    %c0_73 = arith.constant 0 : index
    %176 = vector.load %arg13[%c0_72, %c0_73] : memref<32x32xbf16, #tpu.memory_space<vmem>>, vector<32x32xbf16>
    %cst_74 = arith.constant dense<0.000000e+00> : vector<8x32xf32>
    %177 = tpu.matmul %175, %176, %cst_74 {dimension_numbers = #tpu.dot_dimension_numbers<[1], [0], [0], [1], [0, 0, 1, 1], [], []>} : vector<8x32xbf16>, vector<32x32xbf16>, vector<8x32xf32> -> vector<8x32xf32>
    %c0_75 = arith.constant 0 : index
    %c0_76 = arith.constant 0 : index
    %178 = vector.load %arg14[%c0_75, %c0_76] : memref<1x32xf32, #tpu.memory_space<vmem>>, vector<1x32xf32>
    %179 = vector.broadcast %178 : vector<1x32xf32> to vector<8x32xf32>
    %180 = arith.addf %177, %179 : vector<8x32xf32>
    %181 = arith.addf %103, %180 : vector<8x32xf32>
    %c0_77 = arith.constant 0 : index
    %c0_78 = arith.constant 0 : index
    %182 = vector.load %arg15[%c0_77, %c0_78] : memref<1x32xf32, #tpu.memory_space<vmem>>, vector<1x32xf32>
    %c0_79 = arith.constant 0 : index
    %c0_80 = arith.constant 0 : index
    %183 = vector.load %arg16[%c0_79, %c0_80] : memref<1x32xf32, #tpu.memory_space<vmem>>, vector<1x32xf32>
    %cst_81 = arith.constant dense<0.000000e+00> : vector<8xf32>
    %184 = vector.multi_reduction <add>, %181, %cst_81 [1] : vector<8x32xf32> to vector<8xf32>
    %185 = vector.shape_cast %184 : vector<8xf32> to vector<8x1xf32>
    %cst_82 = arith.constant 3.200000e+01 : f32
    %186 = vector.broadcast %cst_82 : f32 to vector<8x1xf32>
    %187 = arith.divf %185, %186 : vector<8x1xf32>
    %188 = vector.broadcast %187 : vector<8x1xf32> to vector<8x32xf32>
    %189 = arith.subf %181, %188 : vector<8x32xf32>
    %190 = arith.mulf %189, %189 : vector<8x32xf32>
    %cst_83 = arith.constant dense<0.000000e+00> : vector<8xf32>
    %191 = vector.multi_reduction <add>, %190, %cst_83 [1] : vector<8x32xf32> to vector<8xf32>
    %192 = vector.shape_cast %191 : vector<8xf32> to vector<8x1xf32>
    %cst_84 = arith.constant 3.200000e+01 : f32
    %193 = vector.broadcast %cst_84 : f32 to vector<8x1xf32>
    %194 = arith.divf %192, %193 : vector<8x1xf32>
    %195 = vector.broadcast %187 : vector<8x1xf32> to vector<8x32xf32>
    %196 = arith.subf %181, %195 : vector<8x32xf32>
    %cst_85 = arith.constant 9.99999974E-6 : f32
    %197 = vector.broadcast %cst_85 : f32 to vector<8x1xf32>
    %198 = arith.addf %194, %197 : vector<8x1xf32>
    %199 = math.rsqrt %198 : vector<8x1xf32>
    %200 = vector.broadcast %199 : vector<8x1xf32> to vector<8x32xf32>
    %201 = arith.mulf %196, %200 : vector<8x32xf32>
    %202 = vector.broadcast %182 : vector<1x32xf32> to vector<8x32xf32>
    %203 = arith.mulf %201, %202 : vector<8x32xf32>
    %204 = vector.broadcast %183 : vector<1x32xf32> to vector<8x32xf32>
    %205 = arith.addf %203, %204 : vector<8x32xf32>
    %c0_86 = arith.constant 0 : index
    %c0_87 = arith.constant 0 : index
    %206 = vector.load %arg17[%c0_86, %c0_87] : memref<32x64xbf16, #tpu.memory_space<vmem>>, vector<32x64xbf16>
    %c0_88 = arith.constant 0 : index
    %c0_89 = arith.constant 0 : index
    %207 = vector.load %arg18[%c0_88, %c0_89] : memref<1x64xf32, #tpu.memory_space<vmem>>, vector<1x64xf32>
    %c0_90 = arith.constant 0 : index
    %c0_91 = arith.constant 0 : index
    %208 = vector.load %arg19[%c0_90, %c0_91] : memref<64x32xbf16, #tpu.memory_space<vmem>>, vector<64x32xbf16>
    %c0_92 = arith.constant 0 : index
    %c0_93 = arith.constant 0 : index
    %209 = vector.load %arg20[%c0_92, %c0_93] : memref<1x32xf32, #tpu.memory_space<vmem>>, vector<1x32xf32>
    %210 = arith.truncf %205 : vector<8x32xf32> to vector<8x32xbf16>
    %cst_94 = arith.constant dense<0.000000e+00> : vector<8x64xf32>
    %211 = tpu.matmul %210, %206, %cst_94 {dimension_numbers = #tpu.dot_dimension_numbers<[1], [0], [0], [1], [0, 0, 1, 1], [], []>} : vector<8x32xbf16>, vector<32x64xbf16>, vector<8x64xf32> -> vector<8x64xf32>
    %212 = vector.broadcast %207 : vector<1x64xf32> to vector<8x64xf32>
    %213 = arith.addf %211, %212 : vector<8x64xf32>
    %cst_95 = arith.constant 0.000000e+00 : f32
    %214 = vector.broadcast %cst_95 : f32 to vector<8x64xf32>
    %215 = arith.maximumf %213, %214 : vector<8x64xf32>
    %216 = arith.truncf %215 : vector<8x64xf32> to vector<8x64xbf16>
    %cst_96 = arith.constant dense<0.000000e+00> : vector<8x32xf32>
    %217 = tpu.matmul %216, %208, %cst_96 {dimension_numbers = #tpu.dot_dimension_numbers<[1], [0], [0], [1], [0, 0, 1, 1], [], []>} : vector<8x64xbf16>, vector<64x32xbf16>, vector<8x32xf32> -> vector<8x32xf32>
    %218 = vector.broadcast %209 : vector<1x32xf32> to vector<8x32xf32>
    %219 = arith.addf %217, %218 : vector<8x32xf32>
    %220 = arith.addf %205, %219 : vector<8x32xf32>
    %c0_97 = arith.constant 0 : index
    %c0_98 = arith.constant 0 : index
    %221 = vector.load %arg21[%c0_97, %c0_98] : memref<1x32xf32, #tpu.memory_space<vmem>>, vector<1x32xf32>
    %c0_99 = arith.constant 0 : index
    %c0_100 = arith.constant 0 : index
    %222 = vector.load %arg22[%c0_99, %c0_100] : memref<1x32xf32, #tpu.memory_space<vmem>>, vector<1x32xf32>
    %cst_101 = arith.constant dense<0.000000e+00> : vector<8xf32>
    %223 = vector.multi_reduction <add>, %220, %cst_101 [1] : vector<8x32xf32> to vector<8xf32>
    %224 = vector.shape_cast %223 : vector<8xf32> to vector<8x1xf32>
    %cst_102 = arith.constant 3.200000e+01 : f32
    %225 = vector.broadcast %cst_102 : f32 to vector<8x1xf32>
    %226 = arith.divf %224, %225 : vector<8x1xf32>
    %227 = vector.broadcast %226 : vector<8x1xf32> to vector<8x32xf32>
    %228 = arith.subf %220, %227 : vector<8x32xf32>
    %229 = arith.mulf %228, %228 : vector<8x32xf32>
    %cst_103 = arith.constant dense<0.000000e+00> : vector<8xf32>
    %230 = vector.multi_reduction <add>, %229, %cst_103 [1] : vector<8x32xf32> to vector<8xf32>
    %231 = vector.shape_cast %230 : vector<8xf32> to vector<8x1xf32>
    %cst_104 = arith.constant 3.200000e+01 : f32
    %232 = vector.broadcast %cst_104 : f32 to vector<8x1xf32>
    %233 = arith.divf %231, %232 : vector<8x1xf32>
    %234 = vector.broadcast %226 : vector<8x1xf32> to vector<8x32xf32>
    %235 = arith.subf %220, %234 : vector<8x32xf32>
    %cst_105 = arith.constant 9.99999974E-6 : f32
    %236 = vector.broadcast %cst_105 : f32 to vector<8x1xf32>
    %237 = arith.addf %233, %236 : vector<8x1xf32>
    %238 = math.rsqrt %237 : vector<8x1xf32>
    %239 = vector.broadcast %238 : vector<8x1xf32> to vector<8x32xf32>
    %240 = arith.mulf %235, %239 : vector<8x32xf32>
    %241 = vector.broadcast %221 : vector<1x32xf32> to vector<8x32xf32>
    %242 = arith.mulf %240, %241 : vector<8x32xf32>
    %243 = vector.broadcast %222 : vector<1x32xf32> to vector<8x32xf32>
    %244 = arith.addf %242, %243 : vector<8x32xf32>
    %c0_106 = arith.constant 0 : index
    %c0_107 = arith.constant 0 : index
    %c0_108 = arith.constant 0 : index
    %245 = vector.load %arg23[%c0_106, %c0_107, %c0_108] : memref<1x8x32xf32, #tpu.memory_space<vmem>>, vector<1x8x32xf32>
    %246 = vector.shape_cast %245 : vector<1x8x32xf32> to vector<8x32xf32>
    %247 = vector.shape_cast %244 : vector<8x32xf32> to vector<1x8x32xf32>
    tpu.vector_store %arg23[%c0_106, %c0_107, %c0_108], %247 {strides = array<i32>} : memref<1x8x32xf32, #tpu.memory_space<vmem>>, vector<1x8x32xf32>,
    return
  }
  func.func @transform_0(%arg0: i32, %arg1: i32) -> (i32, i32, i32) {
    %c0_i32 = arith.constant 0 : i32
    %c0_i32_0 = arith.constant 0 : i32
    return %arg0, %arg1, %c0_i32 : i32, i32, i32
  }
  func.func @transform_1(%arg0: i32, %arg1: i32) -> (i32, i32, i32) {
    %c0_i32 = arith.constant 0 : i32
    %c0_i32_0 = arith.constant 0 : i32
    %c0_i32_1 = arith.constant 0 : i32
    return %arg0, %c0_i32, %c0_i32_0 : i32, i32, i32
  }
  func.func @transform_2(%arg0: i32, %arg1: i32) -> (i32, i32, i32) {
    %c0_i32 = arith.constant 0 : i32
    %c0_i32_0 = arith.constant 0 : i32
    %c0_i32_1 = arith.constant 0 : i32
    return %arg0, %c0_i32, %c0_i32_0 : i32, i32, i32
  }
  func.func @transform_3(%arg0: i32, %arg1: i32) -> (i32, i32) {
    %c0_i32 = arith.constant 0 : i32
    %c0_i32_0 = arith.constant 0 : i32
    %c0_i32_1 = arith.constant 0 : i32
    return %c0_i32, %c0_i32_0 : i32, i32
  }
  func.func @transform_4(%arg0: i32, %arg1: i32) -> (i32, i32) {
    %c0_i32 = arith.constant 0 : i32
    %c0_i32_0 = arith.constant 0 : i32
    %c0_i32_1 = arith.constant 0 : i32
    return %c0_i32, %c0_i32_0 : i32, i32
  }
  func.func @transform_5(%arg0: i32, %arg1: i32) -> (i32, i32) {
    %c0_i32 = arith.constant 0 : i32
    %c0_i32_0 = arith.constant 0 : i32
    %c0_i32_1 = arith.constant 0 : i32
    return %c0_i32, %c0_i32_0 : i32, i32
  }
  func.func @transform_6(%arg0: i32, %arg1: i32) -> (i32, i32) {
    %c0_i32 = arith.constant 0 : i32
    %c0_i32_0 = arith.constant 0 : i32
    %c0_i32_1 = arith.constant 0 : i32
    return %c0_i32, %c0_i32_0 : i32, i32
  }
  func.func @transform_7(%arg0: i32, %arg1: i32) -> (i32, i32) {
    %c0_i32 = arith.constant 0 : i32
    %c0_i32_0 = arith.constant 0 : i32
    %c0_i32_1 = arith.constant 0 : i32
    return %c0_i32, %c0_i32_0 : i32, i32
  }
  func.func @transform_8(%arg0: i32, %arg1: i32) -> (i32, i32) {
    %c0_i32 = arith.constant 0 : i32
    %c0_i32_0 = arith.constant 0 : i32
    %c0_i32_1 = arith.constant 0 : i32
    return %c0_i32, %c0_i32_0 : i32, i32
  }
  func.func @transform_9(%arg0: i32, %arg1: i32) -> (i32, i32) {
    %c0_i32 = arith.constant 0 : i32
    %c0_i32_0 = arith.constant 0 : i32
    %c0_i32_1 = arith.constant 0 : i32
    return %c0_i32, %c0_i32_0 : i32, i32
  }
  func.func @transform_10(%arg0: i32, %arg1: i32) -> (i32, i32) {
    %c0_i32 = arith.constant 0 : i32
    %c0_i32_0 = arith.constant 0 : i32
    %c0_i32_1 = arith.constant 0 : i32
    return %c0_i32, %c0_i32_0 : i32, i32
  }
  func.func @transform_11(%arg0: i32, %arg1: i32) -> (i32, i32) {
    %c0_i32 = arith.constant 0 : i32
    %c0_i32_0 = arith.constant 0 : i32
    %c0_i32_1 = arith.constant 0 : i32
    return %c0_i32, %c0_i32_0 : i32, i32
  }
  func.func @transform_12(%arg0: i32, %arg1: i32) -> (i32, i32) {
    %c0_i32 = arith.constant 0 : i32
    %c0_i32_0 = arith.constant 0 : i32
    %c0_i32_1 = arith.constant 0 : i32
    return %c0_i32, %c0_i32_0 : i32, i32
  }
  func.func @transform_13(%arg0: i32, %arg1: i32) -> (i32, i32) {
    %c0_i32 = arith.constant 0 : i32
    %c0_i32_0 = arith.constant 0 : i32
    %c0_i32_1 = arith.constant 0 : i32
    return %c0_i32, %c0_i32_0 : i32, i32
  }
  func.func @transform_14(%arg0: i32, %arg1: i32) -> (i32, i32) {
    %c0_i32 = arith.constant 0 : i32
    %c0_i32_0 = arith.constant 0 : i32
    %c0_i32_1 = arith.constant 0 : i32
    return %c0_i32, %c0_i32_0 : i32, i32
  }
  func.func @transform_15(%arg0: i32, %arg1: i32) -> (i32, i32) {
    %c0_i32 = arith.constant 0 : i32
    %c0_i32_0 = arith.constant 0 : i32
    %c0_i32_1 = arith.constant 0 : i32
    return %c0_i32, %c0_i32_0 : i32, i32
  }
  func.func @transform_16(%arg0: i32, %arg1: i32) -> (i32, i32) {
    %c0_i32 = arith.constant 0 : i32
    %c0_i32_0 = arith.constant 0 : i32
    %c0_i32_1 = arith.constant 0 : i32
    return %c0_i32, %c0_i32_0 : i32, i32
  }
  func.func @transform_17(%arg0: i32, %arg1: i32) -> (i32, i32) {
    %c0_i32 = arith.constant 0 : i32
    %c0_i32_0 = arith.constant 0 : i32
    %c0_i32_1 = arith.constant 0 : i32
    return %c0_i32, %c0_i32_0 : i32, i32
  }
  func.func @transform_18(%arg0: i32, %arg1: i32) -> (i32, i32) {
    %c0_i32 = arith.constant 0 : i32
    %c0_i32_0 = arith.constant 0 : i32
    %c0_i32_1 = arith.constant 0 : i32
    return %c0_i32, %c0_i32_0 : i32, i32
  }
  func.func @transform_19(%arg0: i32, %arg1: i32) -> (i32, i32) {
    %c0_i32 = arith.constant 0 : i32
    %c0_i32_0 = arith.constant 0 : i32
    %c0_i32_1 = arith.constant 0 : i32
    return %c0_i32, %c0_i32_0 : i32, i32
  }
  func.func @transform_20(%arg0: i32, %arg1: i32) -> (i32, i32) {
    %c0_i32 = arith.constant 0 : i32
    %c0_i32_0 = arith.constant 0 : i32
    %c0_i32_1 = arith.constant 0 : i32
    return %c0_i32, %c0_i32_0 : i32, i32
  }
  func.func @transform_21(%arg0: i32, %arg1: i32) -> (i32, i32, i32) {
    %c0_i32 = arith.constant 0 : i32
    %c0_i32_0 = arith.constant 0 : i32
    return %arg0, %arg1, %c0_i32 : i32, i32, i32
  }
}

module attributes {stable_mosaic.version = 11 : i64} {
  func.func @_ln_fc_kernel(%arg0: i32, %arg1: memref<16x32xf32, #tpu.memory_space<vmem>>, %arg2: memref<1x32xf32, #tpu.memory_space<vmem>>, %arg3: memref<1x32xf32, #tpu.memory_space<vmem>>, %arg4: memref<32x128xbf16, #tpu.memory_space<vmem>>, %arg5: memref<1x128xf32, #tpu.memory_space<vmem>>, %arg6: memref<16x128xf32, #tpu.memory_space<vmem>>) attributes {dimension_semantics = [#tpu.dimension_semantics<parallel>], iteration_bounds = array<i64: 1>, scalar_prefetch = 0 : i64, scratch_operands = 0 : i64, tpu.core_type = #tpu.core_type<tc>, window_params = [{transform_indices = @transform_0, window_bounds = array<i64: 16, 32>}, {pipeline_mode = #tpu.pipeline_mode<synchronous>, transform_indices = @transform_1, window_bounds = array<i64: 1, 32>}, {pipeline_mode = #tpu.pipeline_mode<synchronous>, transform_indices = @transform_2, window_bounds = array<i64: 1, 32>}, {pipeline_mode = #tpu.pipeline_mode<synchronous>, transform_indices = @transform_3, window_bounds = array<i64: 32, 128>}, {pipeline_mode = #tpu.pipeline_mode<synchronous>, transform_indices = @transform_4, window_bounds = array<i64: 1, 128>}, {transform_indices = @transform_5, window_bounds = array<i64: 16, 128>}]} {
    %c0 = arith.constant 0 : index
    %c0_0 = arith.constant 0 : index
    %0 = vector.load %arg1[%c0, %c0_0] : memref<16x32xf32, #tpu.memory_space<vmem>>, vector<16x32xf32>
    %c0_1 = arith.constant 0 : index
    %c0_2 = arith.constant 0 : index
    %1 = vector.load %arg2[%c0_1, %c0_2] : memref<1x32xf32, #tpu.memory_space<vmem>>, vector<1x32xf32>
    %c0_3 = arith.constant 0 : index
    %c0_4 = arith.constant 0 : index
    %2 = vector.load %arg3[%c0_3, %c0_4] : memref<1x32xf32, #tpu.memory_space<vmem>>, vector<1x32xf32>
    %cst = arith.constant dense<0.000000e+00> : vector<16xf32>
    %3 = vector.multi_reduction <add>, %0, %cst [1] : vector<16x32xf32> to vector<16xf32>
    %4 = vector.shape_cast %3 : vector<16xf32> to vector<16x1xf32>
    %cst_5 = arith.constant 3.200000e+01 : f32
    %5 = vector.broadcast %cst_5 : f32 to vector<16x1xf32>
    %6 = arith.divf %4, %5 : vector<16x1xf32>
    %7 = vector.broadcast %6 : vector<16x1xf32> to vector<16x32xf32>
    %8 = arith.subf %0, %7 : vector<16x32xf32>
    %9 = arith.mulf %8, %8 : vector<16x32xf32>
    %cst_6 = arith.constant dense<0.000000e+00> : vector<16xf32>
    %10 = vector.multi_reduction <add>, %9, %cst_6 [1] : vector<16x32xf32> to vector<16xf32>
    %11 = vector.shape_cast %10 : vector<16xf32> to vector<16x1xf32>
    %cst_7 = arith.constant 3.200000e+01 : f32
    %12 = vector.broadcast %cst_7 : f32 to vector<16x1xf32>
    %13 = arith.divf %11, %12 : vector<16x1xf32>
    %14 = vector.broadcast %6 : vector<16x1xf32> to vector<16x32xf32>
    %15 = arith.subf %0, %14 : vector<16x32xf32>
    %cst_8 = arith.constant 9.99999974E-6 : f32
    %16 = vector.broadcast %cst_8 : f32 to vector<16x1xf32>
    %17 = arith.addf %13, %16 : vector<16x1xf32>
    %18 = math.rsqrt %17 : vector<16x1xf32>
    %19 = vector.broadcast %18 : vector<16x1xf32> to vector<16x32xf32>
    %20 = arith.mulf %15, %19 : vector<16x32xf32>
    %21 = vector.broadcast %1 : vector<1x32xf32> to vector<16x32xf32>
    %22 = arith.mulf %20, %21 : vector<16x32xf32>
    %23 = vector.broadcast %2 : vector<1x32xf32> to vector<16x32xf32>
    %24 = arith.addf %22, %23 : vector<16x32xf32>
    %c0_9 = arith.constant 0 : index
    %c0_10 = arith.constant 0 : index
    %25 = vector.load %arg4[%c0_9, %c0_10] : memref<32x128xbf16, #tpu.memory_space<vmem>>, vector<32x128xbf16>
    %c0_11 = arith.constant 0 : index
    %c0_12 = arith.constant 0 : index
    %26 = vector.load %arg5[%c0_11, %c0_12] : memref<1x128xf32, #tpu.memory_space<vmem>>, vector<1x128xf32>
    %27 = arith.truncf %24 : vector<16x32xf32> to vector<16x32xbf16>
    %cst_13 = arith.constant dense<0.000000e+00> : vector<16x128xf32>
    %28 = tpu.matmul %27, %25, %cst_13 {dimension_numbers = #tpu.dot_dimension_numbers<[1], [0], [0], [1], [0, 0, 1, 1], [], []>} : vector<16x32xbf16>, vector<32x128xbf16>, vector<16x128xf32> -> vector<16x128xf32>
    %29 = vector.broadcast %26 : vector<1x128xf32> to vector<16x128xf32>
    %30 = arith.addf %28, %29 : vector<16x128xf32>
    %c0_14 = arith.constant 0 : index
    %c0_15 = arith.constant 0 : index
    %31 = vector.load %arg6[%c0_14, %c0_15] : memref<16x128xf32, #tpu.memory_space<vmem>>, vector<16x128xf32>
    tpu.vector_store %arg6[%c0_14, %c0_15], %30 {strides = array<i32>} : memref<16x128xf32, #tpu.memory_space<vmem>>, vector<16x128xf32>,
    return
  }
  func.func @transform_0(%arg0: i32) -> (i32, i32) {
    %c0_i32 = arith.constant 0 : i32
    %c0_i32_0 = arith.constant 0 : i32
    return %arg0, %c0_i32 : i32, i32
  }
  func.func @transform_1(%arg0: i32) -> (i32, i32) {
    %c0_i32 = arith.constant 0 : i32
    %c0_i32_0 = arith.constant 0 : i32
    %c0_i32_1 = arith.constant 0 : i32
    return %c0_i32, %c0_i32_0 : i32, i32
  }
  func.func @transform_2(%arg0: i32) -> (i32, i32) {
    %c0_i32 = arith.constant 0 : i32
    %c0_i32_0 = arith.constant 0 : i32
    %c0_i32_1 = arith.constant 0 : i32
    return %c0_i32, %c0_i32_0 : i32, i32
  }
  func.func @transform_3(%arg0: i32) -> (i32, i32) {
    %c0_i32 = arith.constant 0 : i32
    %c0_i32_0 = arith.constant 0 : i32
    %c0_i32_1 = arith.constant 0 : i32
    return %c0_i32, %c0_i32_0 : i32, i32
  }
  func.func @transform_4(%arg0: i32) -> (i32, i32) {
    %c0_i32 = arith.constant 0 : i32
    %c0_i32_0 = arith.constant 0 : i32
    %c0_i32_1 = arith.constant 0 : i32
    return %c0_i32, %c0_i32_0 : i32, i32
  }
  func.func @transform_5(%arg0: i32) -> (i32, i32) {
    %c0_i32 = arith.constant 0 : i32
    %c0_i32_0 = arith.constant 0 : i32
    return %arg0, %c0_i32 : i32, i32
  }
}

</mosaic_0001>

<bundles_post_ra>
// kernel: forward.16
= control target key start
LH: loop header
LB: loop body
LE: loop exit
PB: predicated region body
PF: predicated region fallthrough
CT: control target
= control target key end

     0   :  { %8 = vsyncpa [#allocation3], 0  ;;  %s479_s12 = smov 0   ;;  %s481_s13 = smov 0   ;;  %s522_s0 = inlined_call_operand.vmem [shape: f32[2,8,32], index: 0, kind: input, shape index: {}]   ;;  %s523_s1 = inlined_call_operand.vmem [shape: bf16[32,64], index: 1, kind: input, shape index: {}]   ;;  %s524_s2 = inlined_call_operand.hbm [shape: f32[1,64], index: 2, kind: input, shape index: {}]   ;;  %s525_s3 = inlined_call_operand.vmem [shape: bf16[2,8,64], index: 3, kind: output, shape index: {}]  }
   0x1   :  { %s483_s14 = smov 0  }
   0x2 LB: > { %s342_s15 = sadd.s32 4294967295, %s456_s14   ;;  %s26_s16 = sadd.s32 1, %s452_s13  ;;  %s456_s14 = sphi %s483_s14, %s14_s14   ;;  %s452_s13 = sphi %s481_s13, %s527_s13   ;;  %s448_s12 = sphi %s479_s12, %s526_s12  }
   0x3   : > { %p28_p0 = scmp.ge.s32.totalorder %s26_s16, 2  ;;  %p344_p1 = scmp.ge.s32.totalorder %s456_s14, 1 }
   0x4   : > { %p129_p2 = scmp.lt.s32.totalorder %s456_s14, 3  ;;  %p372_p4 = scmp.eq.s32.totalorder %s342_s15, 0 }
   0x5   : > { %s529_s16 = smov (%p28_p0, %s26_s16), 0  ;;  %s144_s19 = sshll.u32 %s524_s2, 4  ;;  %s145_s19 = int_to_ptr.hbm [resolvable:$true] %s144_s19 }
   0x6   : > { %p130_p3 = pnand %p344_p1, %p129_p2  ;;  %s458_s20 = smov [#allocation2]  }
   0x7   : > { %s146_s21 = sshll.u32 %s458_s20, 4  ;;  %s147_s21 = int_to_ptr.vmem [resolvable:$true] %s146_s21 }
   0x8   : > { %p368_p5 = pneg %p130_p3  ;;  %169 = sbr.rel (%p130_p3) target bundleno = 156 (0x9c), region = 32 }
   0xa   : > { %p369_p6 = pnand %p372_p4, %p368_p5 }
   0xc   : > { %371 = dma.hbm_to_vmem [thread:$0]  (!%p369_p6), %s145_s19, 16, %s147_s21, [#allocation3]  }
   0xd   : > { %443 = dma.done.wait (%p372_p4), [#allocation3], 16  }
   0xe   : > { %445 = vsyncadd (%p372_p4), [#allocation3], 4294967280  ;;  %p198_p7 = scmp.lt.s32.totalorder %s448_s12, 1  ;;  %v363_v0 = vld [vmem:[%s523_s1 + $0x8] sm:$0xff]  ;;  %v362_v1 = vld [vmem:[%s523_s1] sm:$0xff]  ;;  %vm235_vm0 = vcmask 261120  }
   0xf   : > { %245 = vmatpush.bf16.msra.mxu0 %v363_v0  ;;  %v399_v4 = vld [vmem:[#allocation2] ss:$0 sm:$0xff]  ;;  %vm253_vm1 = vcmask 519168  }
  0x10   : > { %s531_s12 = smov (!%p198_p7, %s448_s12), 1 }
  0x11   : > { %s349_s22 = sshll.u32 %s531_s12, 3  ;;  %s350_s30 = sshll.u32 %s531_s12, 2 }
  0x12   : > { %s204_s25 = scalar_lea.vmem %s522_s0, %s349_s22  ;;  %s211_s6 = scalar_lea.vmem %s525_s3, %s350_s30 }
  0x13   : > { %v213_v2 = vld [vmem:[%s204_s25] sm:$0xff]  ;;  %246 = vmatpush.bf16.msra.mxu0 %v362_v1 }
  0x14   : > { %v219_v3 = vpack.c.bf16 %v213_v2, %v213_v2 }
  0x16   : > { %359 = vmatmul.msk.bf16.vlgmr.msra.gmra.mxu0 %vm235_vm0, %v219_v3 }
  0x93   : > { %v248_v5 = vpop.f32.mrf.mxu0 }
  0x94   : > { %v249_v6 = vadd.f32 %v399_v4, %v248_v5 }
  0x96   : > { %v252_v7 = vpack.c.bf16 %v249_v6, %v249_v6 }
  0x98   : > { %254 = vst.msk [vmem:[%s211_s6] sm:$0xf] %vm253_vm1, %v252_v7 }
  0x9b   : > { %v250_v8 = vpop.f32.mrf.mxu0 }
  0x9c PF: > { %s14_s14 = sadd.s32 1, %s456_s14   ;;  %s526_s12 = smov %s452_s13 }
  0x9d   : > { %p11_p8 = scmp.ge.s32.totalorder %s14_s14, 4   ;;  %s527_s13 = smov %s529_s16 }
  0x9f   :  { %13 = sbr.rel (!%p11_p8) target bundleno = 2 (0x2), region = 67 }
  0xa4   :  { %280 = vsyncpa [#allocation3], 1 }
  0xa5   :  { %282 = vsyncpa [#allocation3 + $0x1], 1 }

// kernel: forward.11
= control target key start
LH: loop header
LB: loop body
LE: loop exit
PB: predicated region body
PF: predicated region fallthrough
CT: control target
= control target key end

     0   :  { %s403_s12 = smov 0   ;;  %s405_s13 = smov 0   ;;  %s442_s0 = inlined_call_operand.vmem [shape: f32[2,8,32], index: 0, kind: input, shape index: {}]   ;;  %s443_s1 = inlined_call_operand.vmem [shape: bf16[32,64], index: 1, kind: input, shape index: {}]   ;;  %s444_s2 = inlined_call_operand.vmem [shape: f32[1,64], index: 2, kind: input, shape index: {}]   ;;  %s445_s3 = inlined_call_operand.vmem [shape: bf16[2,8,64], index: 3, kind: output, shape index: {}]  }
   0x1   :  { %s407_s14 = smov 0  }
   0x2 LB: > { %s25_s15 = sadd.s32 1, %s377_s13  ;;  %p318_p0 = scmp.ge.s32.totalorder %s381_s14, 1  ;;  %s381_s14 = sphi %s407_s14, %s13_s14   ;;  %s377_s13 = sphi %s405_s13, %s447_s13   ;;  %s373_s12 = sphi %s403_s12, %s446_s12  }
   0x3   : > { %p27_p1 = scmp.ge.s32.totalorder %s25_s15, 2  ;;  %p155_p2 = scmp.lt.s32.totalorder %s381_s14, 3 }
   0x5   : > { %s449_s15 = smov (%p27_p1, %s25_s15), 0  ;;  %p156_p3 = pnand %p318_p0, %p155_p2 }
   0x6   : > { %p183_p4 = scmp.lt.s32.totalorder (!%p156_p3), %s373_s12, 1 }
   0x7   : > { %159 = sbr.rel (%p156_p3) target bundleno = 154 (0x9a), region = 32 }
   0xc   : > { %v333_v0 = vld [vmem:[%s443_s1 + $0x8] sm:$0xff]  ;;  %v332_v1 = vld [vmem:[%s443_s1] sm:$0xff]  ;;  %s451_s12 = smov (!%p183_p4, %s373_s12), 1  ;;  %vm220_vm0 = vcmask 261120   ;;  %vm238_vm1 = vcmask 519168  }
   0xd   : > { %230 = vmatpush.bf16.msra.mxu0 %v333_v0  ;;  %s319_s20 = sshll.u32 %s451_s12, 3  ;;  %v358_v4 = vld [vmem:[%s444_s2] ss:$0 sm:$0xff]  ;;  %s320_s26 = sshll.u32 %s451_s12, 2 }
   0xe   : > { %s189_s23 = scalar_lea.vmem %s442_s0, %s319_s20  ;;  %s196_s29 = scalar_lea.vmem %s445_s3, %s320_s26 }
   0xf   : > { %v198_v2 = vld [vmem:[%s189_s23] sm:$0xff] }
  0x10   : > { %v204_v3 = vpack.c.bf16 %v198_v2, %v198_v2 }
  0x11   : > { %231 = vmatpush.bf16.msra.mxu0 %v332_v1 }
  0x14   : > { %329 = vmatmul.msk.bf16.vlgmr.msra.gmra.mxu0 %vm220_vm0, %v204_v3 }
  0x91   : > { %v233_v5 = vpop.f32.mrf.mxu0 }
  0x92   : > { %v234_v6 = vadd.f32 %v358_v4, %v233_v5 }
  0x94   : > { %v237_v7 = vpack.c.bf16 %v234_v6, %v234_v6 }
  0x96   : > { %239 = vst.msk [vmem:[%s196_s29] sm:$0xf] %vm238_vm1, %v237_v7 }
  0x99   : > { %v235_v8 = vpop.f32.mrf.mxu0 }
  0x9a PF: > { %s13_s14 = sadd.s32 1, %s381_s14   ;;  %s446_s12 = smov %s377_s13 }
  0x9b   : > { %p10_p5 = scmp.ge.s32.totalorder %s13_s14, 4   ;;  %s447_s13 = smov %s449_s15 }
  0x9d   :  { %12 = sbr.rel (!%p10_p5) target bundleno = 2 (0x2), region = 62 }

// kernel: forward.12
= control target key start
LH: loop header
LB: loop body
LE: loop exit
PB: predicated region body
PF: predicated region fallthrough
CT: control target
= control target key end

     0   :  { %s1209_s29 = smov 0   ;;  %s1211_s30 = smov 0   ;;  %s1332_s0 = inlined_call_operand.vmem [shape: f32[2,8,32], index: 0, kind: input, shape index: {}]   ;;  %s1333_s1 = inlined_call_operand.vmem [shape: bf16[2,8,64], index: 1, kind: input, shape index: {}]   ;;  %s1334_s2 = inlined_call_operand.vmem [shape: bf16[32,32], index: 2, kind: input, shape index: {}]   ;;  %s1335_s3 = inlined_call_operand.vmem [shape: f32[1,32], index: 3, kind: input, shape index: {}]   ;;  %s1336_s4 = inlined_call_operand.vmem [shape: bf16[32,32], index: 4, kind: input, shape index: {}]   ;;  %s1337_s5 = inlined_call_operand.vmem [shape: f32[1,32], index: 5, kind: input, shape index: {}]   ;;  %s1338_s6 = inlined_call_operand.vmem [shape: f32[1,32], index: 6, kind: input, shape index: {}]   ;;  %s1339_s7 = inlined_call_operand.vmem [shape: f32[1,32], index: 7, kind: input, shape index: {}]   ;;  %s1340_s8 = inlined_call_operand.vmem [shape: bf16[32,64], index: 8, kind: input, shape index: {}]   ;;  %s1341_s9 = inlined_call_operand.vmem [shape: f32[1,64], index: 9, kind: input, shape index: {}]   ;;  %s1342_s10 = inlined_call_operand.vmem [shape: bf16[64,32], index: 10, kind: input, shape index: {}]   ;;  %s1343_s11 = inlined_call_operand.vmem [shape: f32[1,32], index: 11, kind: input, shape index: {}]   ;;  %s1344_s12 = inlined_call_operand.vmem [shape: f32[1,32], index: 12, kind: input, shape index: {}]   ;;  %s1345_s13 = inlined_call_operand.vmem [shape: f32[1,32], index: 13, kind: input, shape index: {}]   ;;  %s1346_s14 = inlined_call_operand.vmem [shape: f32[2,8,32], index: 14, kind: output, shape index: {}]  }
   0x1   :  { %s1213_s15 = smov 0  }
   0x2 LB: > { %s36_s16 = sadd.s32 1, %s1123_s30  ;;  %p986_p0 = scmp.ge.s32.totalorder %s1127_s15, 1  ;;  %s1127_s15 = sphi %s1213_s15, %s24_s15   ;;  %s1123_s30 = sphi %s1211_s30, %s1348_s30   ;;  %s1119_s29 = sphi %s1209_s29, %s1347_s29  }
   0x3   : > { %p38_p1 = scmp.ge.s32.totalorder %s36_s16, 2  ;;  %p439_p2 = scmp.lt.s32.totalorder %s1127_s15, 3 }
   0x5   : > { %s1350_s16 = smov (%p38_p1, %s36_s16), 0  ;;  %p440_p3 = pnand %p986_p0, %p439_p2 }
   0x6   : > { %p493_p4 = scmp.lt.s32.totalorder (!%p440_p3), %s1119_s29, 1  ;;  %s1129_s17 = smov (!%p440_p3), 112  }
   0x7   : > { %443 = sbr.rel (%p440_p3) target bundleno = 1731 (0x6c3), region = 76  ;;  %s1130_s20 = smov (!%p440_p3), 96  }
   0x8   : > { %s1131_s22 = smov (!%p440_p3), 80   ;;  %s1132_s23 = smov (!%p440_p3), 16  }
   0xc   : > { %v1041_v0 = vld [vmem:[%s1334_s2 + $0x8] sm:$0xff]  ;;  %v1040_v1 = vld [vmem:[%s1334_s2] sm:$0xff]  ;;  %s1352_s29 = smov (!%p493_p4, %s1119_s29), 1  ;;  %vm534_vm0 = vcmask 261120   ;;  %vm554_vm1 = vcmask 130048   ;;  %vm574_vm2 = vcmask 64512  }
   0xd   : > { %544 = vmatpush.bf16.msra.mxu0 %v1041_v0  ;;  %s987_s21 = sshll.u32 %s1352_s29, 3  ;;  %s988_s25 = sshll.u32 %s1352_s29, 2  ;;  %v1079_v8 = vld [vmem:[%s1335_s3] ss:$0 sm:$0xff]  ;;  %vm598_vm3 = vcmask 1043456   ;;  %vm682_vm4 = vcmask 125952  }
   0xe   : > { %s499_s24 = scalar_lea.vmem %s1332_s0, %s987_s21  ;;  %s503_s28 = scalar_lea.vmem %s1333_s1, %s988_s25  ;;  %vm691_vm5 = vcmask 257152   ;;  %vm845_vm10 = vcmask 523264  }
   0xf   : > { %v1241_v2 = vld [vmem:[%s499_s24] sm:$0xff] }
  0x10   : > { %v518_v3 = vpack.c.bf16 %v1241_v2, %v1241_v2  ;;  %v551_v4 = vld [vmem:[%s503_s28] sm:$0xf] }
  0x11   : > { %545 = vmatpush.bf16.msra.mxu0 %v1040_v1  ;;  %v559_v5 = vsel %vm554_vm1, %v551_v4, 0  ;;  %v591_v6 = vunpack.c.l.b16 %v551_v4  ;;  %v1043_v1 = vld [vmem:[%s1336_s4 + $0x8] sm:$0xff] }
  0x12   : > { %568 = vmatpush.bf16.xpose.msra.mxu1 %v559_v5 }
  0x13   : > { %v592_v7 = vpack.c.b16 %v591_v6, %v591_v6  ;;  %v1080_v6 = vld [vmem:[%s1337_s5] ss:$0 sm:$0xff] }
  0x14   : > { %998 = vmatmul.msk.bf16.vlgmr.msra.gmra.mxu0 %vm534_vm0, %v518_v3  ;;  %v1042_v3 = vld [vmem:[%s1336_s4] sm:$0xff] }
  0x15   : > { %621 = vrot.lane.b32.xlu0 %v592_v7, %s1129_s17  ;;  %723 = vmatpush.bf16.msrb.mxu0 %v1043_v1 }
  0x19   : > { %724 = vmatpush.bf16.msrb.mxu0 %v1042_v3 }
  0x87   : > { %v622_v16 = vpop.permute.xlu0 %621 }
  0x88   : > { %v627_v17 = vsel %vm554_vm1, %v622_v16, 0 }
  0x89   : > { %636 = vmatpush.bf16.xpose.msra.mxu3 %v627_v17 }
  0x91   : > { %v547_v9 = vpop.f32.mrf.mxu0 }
  0x92   : > { %v548_v10 = vadd.f32 %v1079_v8, %v547_v9 }
  0x94   : > { %v552_v11 = vmul.f32 0.25, %v548_v10 }
  0x96   : > { %v553_v12 = vpack.c.bf16 %v552_v11, %v552_v11 }
  0x98   : > { %v617_v13 = vunpack.c.l.b16 %v553_v12  ;;  %999 = vmatmul.msk.bf16.vlgmr.msra.gmra.mxu1 %vm554_vm1, %v553_v12  ;;  %v1133_v12 = vmov 32.0  }
  0x99   : > { %v549_v14 = vpop.f32.mrf.mxu0 }
  0x9a   : > { %v618_v15 = vpack.c.b16 %v617_v13, %v617_v13 }
  0x9c   : > { %619 = vrot.lane.b32.xlu0 %v618_v15, %s1129_s17 }
 0x10e   : > { %v620_v18 = vpop.permute.xlu0 %619 }
 0x10f   : > { %1001 = vmatmul.msk.bf16.vlgmr.msra.gmra.mxu3 %vm554_vm1, %v620_v18 }
 0x115   : > { %v570_v19 = vpop.f32.mrf.mxu1 }
 0x116   : > { %v575_v20 = vsel %vm574_vm2, %v570_v19, -inf }
 0x117   : > { %576 = vmax.xlane.f32.xlu1 %v575_v20 }
 0x11d   : > { %v572_v21 = vpop.f32.mrf.mxu1 }
 0x130   : > { %593 = vrot.lane.b32.xlu1 %v592_v7, %s1130_s20 }
 0x18a   : > { %v577_v22 = vpop.xlane.xlu1 %576 }
 0x18b   : > { %v581_v25 = vsub.f32 %v570_v19, %v577_v22  ;;  %v578_v43 = vsub.f32 -inf, %v577_v22 }
 0x18d   : > { %v582_v26 = vmul.f32 1.442695, %v581_v25  ;;  %v579_v44 = vmul.f32 1.442695, %v578_v43  ;;  %v1049_v25 = vld [vmem:[%s1342_s10 + $0x18] sm:$0xff]  ;;  %v1047_v43 = vld [vmem:[%s1342_s10 + $0x8] sm:$0xff] }
 0x18e   : > { %853 = vmatpush.bf16.msrb.mxu3 %v1049_v25 }
 0x18f   : > { %1087 = vpow2.f32 %v582_v26 }
 0x192   : > { %v638_v23 = vpop.f32.mrf.mxu3 }
 0x193   : > { %v642_v24 = vsel %vm574_vm2, %v638_v23, -inf }
 0x194   : > { %643 = vmax.xlane.f32.xlu2 %v642_v24  ;;  %v1044_v24 = vld [vmem:[%s1340_s8] sm:$0xff] }
 0x195   : > { %v1088_v28 = vpop.eup %1087 }
 0x196   : > { %v589_v31 = vpack.c.bf16 %v1088_v28, %v1088_v28  ;;  %v585_v32 = vsel %vm574_vm2, %v1088_v28, 0.0  ;;  %v1048_v28 = vld [vmem:[%s1342_s10 + $0x10] sm:$0xff] }
 0x197   : > { %854 = vmatpush.bf16.msrb.mxu3 %v1048_v28 }
 0x19a   : > { %v640_v27 = vpop.f32.mrf.mxu3 }
 0x19b   : > { %855 = vmatpush.bf16.msrb.mxu3 %v1047_v43 }
 0x1a2   : > { %v594_v29 = vpop.permute.xlu1 %593 }
 0x1a3   : > { %v600_v30 = vsel %vm598_vm3, %v594_v29, 0 }
 0x1a4   : > { %609 = vmatpush.bf16.msra.mxu2 %v600_v30 }
 0x1a7   : > { %1000 = vmatmul.msk.bf16.vlgmr.msra.gmra.mxu2 %vm574_vm2, %v589_v31 }
 0x1ac   : > { %657 = vrot.lane.b32.xlu2 %v592_v7, %s1131_s22 }
 0x1d5   : > { %586 = vadd.xlane.f32.xlu2 %v585_v32 }
 0x207   : > { %v644_v33 = vpop.xlane.xlu2 %643 }
 0x208   : > { %v648_v34 = vsub.f32 %v638_v23, %v644_v33  ;;  %v645_v53 = vsub.f32 -inf, %v644_v33 }
 0x20a   : > { %v649_v35 = vmul.f32 1.442695, %v648_v34  ;;  %v646_v54 = vmul.f32 1.442695, %v645_v53 }
 0x20c   : > { %1089 = vpow2.f32 %v649_v35 }
 0x20d   : > { %1091 = vpow2.f32 %v579_v44  ;;  %v1046_v44 = vld [vmem:[%s1342_s10] sm:$0xff] }
 0x20e   : > { %856 = vmatpush.bf16.msrb.mxu3 %v1046_v44 }
 0x20f   : > { %v658_v36 = vpop.permute.xlu2 %657 }
 0x210   : > { %v663_v37 = vsel %vm598_vm3, %v658_v36, 0  ;;  %v1081_v36 = vld [vmem:[%s1338_s6] ss:$0 sm:$0xff] }
 0x211   : > { %672 = vmatpush.bf16.msrb.mxu2 %v663_v37 }
 0x212   : > { %v1090_v38 = vpop.eup %1089 }
 0x213   : > { %v652_v39 = vsel %vm574_vm2, %v1090_v38, 0.0  ;;  %v656_v40 = vpack.c.bf16 %v1090_v38, %v1090_v38  ;;  %v1092_v45 = vpop.eup %1091 }
 0x214   : > { %653 = vadd.xlane.f32.xlu0 %v652_v39  ;;  %v584_v46 = vmul.f32 0.0, %v1092_v45  ;;  %v1082_v39 = vld [vmem:[%s1339_s7] ss:$0 sm:$0xff] }
 0x215   : > { %1002 = vmatmul.msk.bf16.vlgmr.msrb.gmra.mxu2 %vm574_vm2, %v656_v40  ;;  %v1083_v45 = vld [vmem:[%s1341_s9] ss:$0 sm:$0xff] }
 0x22a   : > { %v611_v41 = vpop.f32.mrf.mxu2 }
 0x22b   : > { %v615_v49 = vadd.f32 %v611_v41, %v584_v46 }
 0x232   : > { %v613_v42 = vpop.f32.mrf.mxu2 }
 0x248   : > { %v587_v47 = vpop.xlane.xlu2 %586 }
 0x249   : > { %v588_v48 = vadd.f32 %v587_v47, %v584_v46 }
 0x24b   : > { %1093 = vrcp.f32 %v588_v48 }
 0x24c   : > { %1095 = vpow2.f32 %v646_v54 }
 0x251   : > { %v1094_v50 = vpop.eup %1093 }
 0x252   : > { %v680_v51 = vmul.f32 %v1094_v50, %v615_v49  ;;  %v1096_v55 = vpop.eup %1095 }
 0x253   : > { %v651_v57 = vmul.f32 0.0, %v1096_v55 }
 0x254   : > { %v681_v52 = vpack.c.bf16 %v680_v51, %v680_v51  ;;  %v1084_v51 = vld [vmem:[%s1343_s11] ss:$0 sm:$0xff] }
 0x256   : > { %683 = vst.msk [vmem:[#allocation2] sm:$0xf] %vm682_vm4, %v681_v52 }
 0x287   : > { %v654_v56 = vpop.xlane.xlu0 %653 }
 0x288   : > { %v655_v58 = vadd.f32 %v654_v56, %v651_v57 }
 0x28a   : > { %1097 = vrcp.f32 %v655_v58 }
 0x28b   : > { %1099 = vrcp.f32 %v1133_v12 }
 0x290   : > { %v1098_v61 = vpop.eup %1097 }
 0x291   : > { %v1100_v13 = vpop.eup %1099 }
 0x292   : > { %v737_v14 = vmul.f32 32.0, %v1100_v13  ;;  %vm741_vm6 = vweird.f32 %v1100_v13 }
 0x294   : > { %v738_v15 = vsub.f32 1.0, %v737_v14 }
 0x296   : > { %v739_v16 = vmul.f32 %v1100_v13, %v738_v15 }
 0x298   : > { %v674_v59 = vpop.f32.mrf.mxu2  ;;  %v740_v17 = vadd.f32 %v1100_v13, %v739_v16 }
 0x299   : > { %v678_v60 = vadd.f32 %v674_v59, %v651_v57 }
 0x29a   : > { %v742_v18 = vsel %vm741_vm6, %v1100_v13, %v740_v17 }
 0x29b   : > { %v685_v62 = vmul.f32 %v1098_v61, %v678_v60 }
 0x29d   : > { %v686_v63 = vpack.c.bf16 %v685_v62, %v685_v62 }
 0x29f   : > { %688 = vrot.lane.b32.xlu1 %v686_v63, %s1132_s23  ;;  %s510_s23 = scalar_lea.vmem %s1346_s14, %s987_s21 }
 0x2a0   : > { %v676_v0 = vpop.f32.mrf.mxu2 }
 0x311   : > { %v689_v4 = vpop.permute.xlu1 %688 }
 0x312   : > { %692 = vst.msk [vmem:[#allocation2] sm:$0xf] %vm691_vm5, %v689_v4 }
 0x319   : > { %v693_v5 = vld [vmem:[#allocation2] sm:$0xf] }
 0x31a   : > { %1011 = vmatmul.msk.bf16.vlgmr.msrb.gmra.mxu0 %vm534_vm0, %v693_v5 }
 0x397   : > { %v726_v7 = vpop.f32.mrf.mxu0 }
 0x398   : > { %v727_v8 = vadd.f32 %v1080_v6, %v726_v7 }
 0x39a   : > { %v730_v9 = vadd.f32 %v727_v8, %v1241_v2  ;;  %v1045_v2 = vld [vmem:[%s1340_s8 + $0x8] sm:$0xff]  ;;  %v1085_v8 = vld [vmem:[%s1344_s12] ss:$0 sm:$0xff] }
 0x39b   : > { %809 = vmatpush.bf16.msrb.mxu1 %v1045_v2 }
 0x39c   : > { %v733_v10 = vsel %vm534_vm0, %v730_v9, 0.0 }
 0x39d   : > { %734 = vadd.xlane.f32.xlu1 %v733_v10  ;;  %v1086_v10 = vld [vmem:[%s1345_s13] ss:$0 sm:$0xff] }
 0x39f   : > { %v728_v11 = vpop.f32.mrf.mxu0  ;;  %810 = vmatpush.bf16.msrb.mxu1 %v1044_v24 }
 0x410   : > { %v735_v19 = vpop.xlane.xlu1 %734 }
 0x411   : > { %v743_v20 = vmul.f32 %v742_v18, %v735_v19 }
 0x413   : > { %v744_v21 = vsub.f32 %v730_v9, %v743_v20 }
 0x415   : > { %v745_v22 = vmul.f32 %v744_v21, %v744_v21 }
 0x417   : > { %v746_v23 = vsel %vm534_vm0, %v745_v22, 0.0 }
 0x418   : > { %747 = vadd.xlane.f32.xlu0 %v746_v23 }
 0x48b   : > { %v748_v26 = vpop.xlane.xlu0 %747 }
 0x48c   : > { %v749_v27 = vmul.f32 %v748_v26, %v742_v18 }
 0x48e   : > { %v750_v29 = vadd.f32 1e-05, %v749_v27 }
 0x490   : > { %1101 = vrsqrt.f32 %v750_v29  ;;  %vm757_vm8 = vweird.f32 %v750_v29 }
 0x496   : > { %v1102_v30 = vpop.eup %1101 }
 0x497   : > { %v752_v31 = vmul.f32 %v1102_v30, %v750_v29  ;;  %vm758_vm7 = vweird.f32 %v1102_v30 }
 0x498   : > { %vm759_vm9 = vmor %vm757_vm8, %vm758_vm7 }
 0x499   : > { %v753_v32 = vmul.f32 %v1102_v30, %v752_v31 }
 0x49b   : > { %v754_v33 = vmul.f32 0.5, %v753_v32 }
 0x49d   : > { %v755_v34 = vsub.f32 1.5, %v754_v33 }
 0x49f   : > { %v756_v35 = vmul.f32 %v1102_v30, %v755_v34 }
 0x4a1   : > { %v760_v37 = vsel %vm759_vm9, %v1102_v30, %v756_v35 }
 0x4a2   : > { %v761_v38 = vmul.f32 %v760_v37, %v744_v21 }
 0x4a4   : > { %v765_v40 = vmul.f32 %v1081_v36, %v761_v38 }
 0x4a6   : > { %v769_v41 = vadd.f32 %v1082_v39, %v765_v40 }
 0x4a8   : > { %v784_v42 = vpack.c.bf16 %v769_v41, %v769_v41 }
 0x4aa   : > { %1020 = vmatmul.msk.bf16.vlgmr.msrb.gmra.mxu1 %vm534_vm0, %v784_v42 }
 0x527   : > { %v812_v46 = vpop.f32.mrf.mxu1 }
 0x528   : > { %v813_v47 = vadd.f32 %v1083_v45, %v812_v46 }
 0x52a   : > { %v816_v48 = vmax.f32 %v813_v47, 0.0 }
 0x52c   : > { %v817_v49 = vpack.c.bf16 %v816_v48, %v816_v48 }
 0x52e   : > { %1037 = vmatmul.msk.bf16.vlgmr.msrb.gmra.mxu3 %vm845_vm10, %v817_v49 }
 0x52f   : > { %v814_v50 = vpop.f32.mrf.mxu1 }
 0x5b1   : > { %v858_v52 = vpop.f32.mrf.mxu3 }
 0x5b2   : > { %v859_v53 = vadd.f32 %v1084_v51, %v858_v52 }
 0x5b4   : > { %v862_v54 = vadd.f32 %v859_v53, %v769_v41 }
 0x5b6   : > { %v865_v55 = vsel %vm534_vm0, %v862_v54, 0.0 }
 0x5b7   : > { %866 = vadd.xlane.f32.xlu0 %v865_v55 }
 0x5b9   : > { %v860_v56 = vpop.f32.mrf.mxu3 }
 0x62a   : > { %v867_v57 = vpop.xlane.xlu0 %866 }
 0x62b   : > { %v868_v58 = vmul.f32 %v867_v57, %v742_v18 }
 0x62d   : > { %v869_v59 = vsub.f32 %v862_v54, %v868_v58 }
 0x62f   : > { %v870_v60 = vmul.f32 %v869_v59, %v869_v59 }
 0x631   : > { %v871_v61 = vsel %vm534_vm0, %v870_v60, 0.0 }
 0x632   : > { %872 = vadd.xlane.f32.xlu2 %v871_v61 }
 0x6a5   : > { %v873_v62 = vpop.xlane.xlu2 %872 }
 0x6a6   : > { %v874_v63 = vmul.f32 %v873_v62, %v742_v18 }
 0x6a8   : > { %v875_v0 = vadd.f32 1e-05, %v874_v63 }
 0x6aa   : > { %1103 = vrsqrt.f32 %v875_v0  ;;  %vm882_vm12 = vweird.f32 %v875_v0 }
 0x6b0   : > { %v1104_v1 = vpop.eup %1103 }
 0x6b1   : > { %v877_v3 = vmul.f32 %v1104_v1, %v875_v0  ;;  %vm883_vm11 = vweird.f32 %v1104_v1 }
 0x6b2   : > { %vm884_vm13 = vmor %vm882_vm12, %vm883_vm11 }
 0x6b3   : > { %v878_v4 = vmul.f32 %v1104_v1, %v877_v3 }
 0x6b5   : > { %v879_v5 = vmul.f32 0.5, %v878_v4 }
 0x6b7   : > { %v880_v6 = vsub.f32 1.5, %v879_v5 }
 0x6b9   : > { %v881_v7 = vmul.f32 %v1104_v1, %v880_v6 }
 0x6bb   : > { %v885_v9 = vsel %vm884_vm13, %v1104_v1, %v881_v7 }
 0x6bc   : > { %v886_v11 = vmul.f32 %v885_v9, %v869_v59 }
 0x6be   : > { %v890_v12 = vmul.f32 %v1085_v8, %v886_v11 }
 0x6c0   : > { %v894_v13 = vadd.f32 %v1086_v10, %v890_v12 }
 0x6c2   : > { %895 = vst.msk [vmem:[%s510_s23] sm:$0xff] %vm534_vm0, %v894_v13 }
 0x6c3 PF: > { %s24_s15 = sadd.s32 1, %s1127_s15   ;;  %s1347_s29 = smov %s1123_s30 }
 0x6c4   : > { %p21_p5 = scmp.ge.s32.totalorder %s24_s15, 4   ;;  %s1348_s30 = smov %s1350_s16 }
 0x6c6   :  { %23 = sbr.rel (!%p21_p5) target bundleno = 2 (0x2), region = 109 }

// kernel: forward.14
= control target key start
LH: loop header
LB: loop body
LE: loop exit
PB: predicated region body
PF: predicated region fallthrough
CT: control target
= control target key end

     0   :  { %s1845_s0 = inlined_call_operand.vmem [shape: f32[2,8,32], index: 0, kind: input, shape index: {}]   ;;  %s1846_s1 = inlined_call_operand.vmem [shape: bf16[2,8,64], index: 1, kind: input, shape index: {}]   ;;  %s1847_s2 = inlined_call_operand.vmem [shape: bf16[32,32], index: 2, kind: input, shape index: {}]   ;;  %s1848_s3 = inlined_call_operand.vmem [shape: f32[1,32], index: 3, kind: input, shape index: {}]   ;;  %s1849_s4 = inlined_call_operand.vmem [shape: bf16[32,32], index: 4, kind: input, shape index: {}]   ;;  %s1850_s5 = inlined_call_operand.vmem [shape: f32[1,32], index: 5, kind: input, shape index: {}]   ;;  %s1851_s6 = inlined_call_operand.vmem [shape: f32[1,32], index: 6, kind: input, shape index: {}]   ;;  %s1852_s7 = inlined_call_operand.vmem [shape: f32[1,32], index: 7, kind: input, shape index: {}]   ;;  %s1853_s8 = inlined_call_operand.vmem [shape: bf16[32,64], index: 8, kind: input, shape index: {}]   ;;  %s1854_s9 = inlined_call_operand.vmem [shape: f32[1,64], index: 9, kind: input, shape index: {}]   ;;  %s1855_s10 = inlined_call_operand.vmem [shape: bf16[64,32], index: 10, kind: input, shape index: {}]   ;;  %s1856_s11 = inlined_call_operand.hbm [shape: f32[1,32], index: 11, kind: input, shape index: {}]   ;;  %s1857_s12 = inlined_call_operand.hbm [shape: f32[1,32], index: 12, kind: input, shape index: {}]   ;;  %s1858_s13 = inlined_call_operand.hbm [shape: f32[1,32], index: 13, kind: input, shape index: {}]   ;;  %s1859_s14 = inlined_call_operand.hbm [shape: f32[1,32], index: 14, kind: input, shape index: {}]   ;;  %s1860_s15 = inlined_call_operand.hbm [shape: f32[1,32], index: 15, kind: input, shape index: {}]   ;;  %s1861_s16 = inlined_call_operand.vmem [shape: f32[2,8,32], index: 16, kind: output, shape index: {}]  }
   0x1   :  { %1863 = sst [smem:[#allocation15_spill]] %s1845_s0 }
   0x2   :  { %1864 = sst [smem:[#allocation16_spill]] %s1857_s12 }
   0x3   :  { %1865 = sst [smem:[#allocation17_spill]] %s1859_s14 }
   0x4   :  { %1866 = sst [smem:[#allocation18_spill]] %s1861_s16 }
   0x5   :  { %21 = vsyncpa [#allocation4], 0 }
   0x6   :  { %22 = vsyncpa [#allocation6], 0 }
   0x7   :  { %23 = vsyncpa [#allocation9], 0  ;;  %s1661_s21 = smov 0   ;;  %s1663_s22 = smov 0  }
   0x8   :  { %s1665_s23 = smov 0  }
   0x9 LB: > { %1867 = sst [smem:[#allocation14_spill]] %s1564_s23  ;;  %s1192_s27 = sadd.s32 4294967295, %s1564_s23   ;;  %s1564_s23 = sphi %s1665_s23, %s29_s23   ;;  %s1560_s22 = sphi %s1663_s22, %s1877_s22   ;;  %s1556_s21 = sphi %s1661_s21, %s1876_s21  }
   0xa   : > { %s1868_s12 = sld [smem:[#allocation16_spill]]  ;;  %p1194_p0 = scmp.ge.s32.totalorder %s1564_s23, 1 }
   0xb   : > { %p422_p1 = scmp.lt.s32.totalorder %s1564_s23, 3  ;;  %p1682_p2 = scmp.eq.s32.totalorder %s1192_s27, 0 }
   0xc   : > { %s1566_s30 = smov [#allocation5]   ;;  %s1871_s14 = sld [smem:[#allocation17_spill]] }
   0xd   : > { %p1686_p3 = pnand %p1194_p0, %p422_p1  ;;  %s475_s0 = sshll.u32 %s1566_s30, 4  ;;  %s476_s0 = int_to_ptr.vmem [resolvable:$true] %s475_s0 }
   0xe   : > { %s1567_s24 = smov [#allocation8]   ;;  %s41_s27 = sadd.s32 1, %s1560_s22 }
   0xf   : > { %p1290_p4 = pneg %p1686_p3  ;;  %s499_s25 = sshll.u32 %s1567_s24, 4  ;;  %s500_s25 = int_to_ptr.vmem [resolvable:$true] %s499_s25 }
  0x10   : > { %s473_s26 = sshll.u32 %s1868_s12, 4  ;;  %p43_p6 = scmp.ge.s32.totalorder %s41_s27, 2  ;;  %s474_s26 = int_to_ptr.hbm [resolvable:$true] %s473_s26 }
  0x11   : > { %p1697_p5 = pnand %p1682_p2, %p1290_p4  ;;  %s461_s18 = sshll.u32 %s1856_s11, 4  ;;  %s462_s18 = int_to_ptr.hbm [resolvable:$true] %s461_s18 }
  0x12   : > { %s497_s19 = sshll.u32 %s1871_s14, 4  ;;  %s1879_s27 = smov (%p43_p6, %s41_s27), 0  ;;  %s498_s19 = int_to_ptr.hbm [resolvable:$true] %s497_s19 }
  0x13   : > { %1296 = dma.hbm_to_vmem [thread:$0]  (!%p1697_p5), %s474_s26, 16, %s476_s0, [#allocation6]  }
  0x14   : > { %1302 = dma.hbm_to_vmem [thread:$0]  (!%p1697_p5), %s498_s19, 16, %s500_s25, [#allocation9]  }
  0x15   : > { %s1568_s12 = smov [#allocation3]   ;;  %s485_s16 = sshll.u32 %s1858_s13, 4  ;;  %s486_s16 = int_to_ptr.hbm [resolvable:$true] %s485_s16 }
  0x16   : > { %s463_s14 = sshll.u32 %s1568_s12, 4  ;;  %s509_s19 = sshll.u32 %s1860_s15, 4  ;;  %s464_s14 = int_to_ptr.vmem [resolvable:$true] %s463_s14  ;;  %s510_s19 = int_to_ptr.hbm [resolvable:$true] %s509_s19 }
  0x17   : > { %1293 = dma.hbm_to_vmem [thread:$0]  (!%p1697_p5), %s462_s18, 16, %s464_s14, [#allocation4]  }
  0x18   : > { %s1569_s25 = smov [#allocation7]   ;;  %s1570_s17 = smov [#allocation10]  }
  0x19   : > { %s487_s30 = sshll.u32 %s1569_s25, 4  ;;  %s511_s12 = sshll.u32 %s1570_s17, 4  ;;  %s488_s30 = int_to_ptr.vmem [resolvable:$true] %s487_s30  ;;  %s512_s12 = int_to_ptr.vmem [resolvable:$true] %s511_s12 }
  0x1a   : > { %1299 = dma.hbm_to_vmem [thread:$0]  (!%p1697_p5), %s486_s16, 16, %s488_s30, [#allocation6]  }
  0x1b   : > { %1305 = dma.hbm_to_vmem [thread:$0]  (!%p1697_p5), %s510_s19, 16, %s512_s12, [#allocation9]  }
  0x1c   : > { %541 = sbr.rel (%p1686_p3) target bundleno = 2027 (0x7eb), region = 84 }
  0x21   : > { %1543 = dma.done.wait (%p1682_p2), [#allocation4], 16  }
  0x22   : > { %1545 = vsyncadd (%p1682_p2), [#allocation4], 4294967280 }
  0x23   : > { %1547 = dma.done.wait (%p1682_p2), [#allocation6], 32  }
  0x24   : > { %1549 = vsyncadd (%p1682_p2), [#allocation6], 4294967264 }
  0x25   : > { %1551 = dma.done.wait (%p1682_p2), [#allocation9], 32  }
  0x26   : > { %1553 = vsyncadd (%p1682_p2), [#allocation9], 4294967264  ;;  %p620_p7 = scmp.lt.s32.totalorder %s1556_s21, 1  ;;  %s1873_s29 = sld [smem:[#allocation15_spill]]  ;;  %v1261_v0 = vld [vmem:[%s1847_s2 + $0x8] sm:$0xff]  ;;  %v1260_v1 = vld [vmem:[%s1847_s2] sm:$0xff] }
  0x27   : > { %671 = vmatpush.bf16.msra.mxu0 %v1261_v0  ;;  %vm661_vm0 = vcmask 261120   ;;  %vm681_vm1 = vcmask 130048   ;;  %s1571_s17 = smov 112   ;;  %v1350_v8 = vld [vmem:[%s1848_s3] ss:$0 sm:$0xff]  ;;  %vm701_vm2 = vcmask 64512  }
  0x28   : > { %s1881_s21 = smov (!%p620_p7, %s1556_s21), 1  ;;  %s1572_s23 = smov 96   ;;  %vm725_vm3 = vcmask 1043456   ;;  %vm809_vm4 = vcmask 125952   ;;  %vm818_vm5 = vcmask 257152   ;;  %vm972_vm10 = vcmask 523264  }
  0x29   : > { %s1207_s14 = sshll.u32 %s1881_s21, 3  ;;  %s1208_s0 = sshll.u32 %s1881_s21, 2 }
  0x2a   : > { %s630_s30 = scalar_lea.vmem %s1846_s1, %s1208_s0 }
  0x2b   : > { %672 = vmatpush.bf16.msra.mxu0 %v1260_v1  ;;  %v678_v4 = vld [vmem:[%s630_s30] sm:$0xf]  ;;  %v1263_v1 = vld [vmem:[%s1849_s4 + $0x8] sm:$0xff] }
  0x2c   : > { %s626_s20 = scalar_lea.vmem %s1873_s29, %s1207_s14  ;;  %v686_v5 = vsel %vm681_vm1, %v678_v4, 0  ;;  %v718_v6 = vunpack.c.l.b16 %v678_v4  ;;  %s1573_s29 = smov 80  }
  0x2d   : > { %v1753_v2 = vld [vmem:[%s626_s20] sm:$0xff]  ;;  %695 = vmatpush.bf16.xpose.msra.mxu1 %v686_v5  ;;  %s1574_s20 = smov 16  }
  0x2e   : > { %v645_v3 = vpack.c.bf16 %v1753_v2, %v1753_v2  ;;  %v719_v7 = vpack.c.b16 %v718_v6, %v718_v6  ;;  %v1351_v6 = vld [vmem:[%s1850_s5] ss:$0 sm:$0xff] }
  0x2f   : > { %850 = vmatpush.bf16.msrb.mxu0 %v1263_v1 }
  0x30   : > { %1218 = vmatmul.msk.bf16.vlgmr.msra.gmra.mxu0 %vm661_vm0, %v645_v3  ;;  %748 = vrot.lane.b32.xlu0 %v719_v7, %s1571_s17  ;;  %v1262_v3 = vld [vmem:[%s1849_s4] sm:$0xff] }
  0x33   : > { %851 = vmatpush.bf16.msrb.mxu0 %v1262_v3 }
  0xa2   : > { %v749_v16 = vpop.permute.xlu0 %748 }
  0xa3   : > { %v754_v17 = vsel %vm681_vm1, %v749_v16, 0 }
  0xa4   : > { %763 = vmatpush.bf16.xpose.msra.mxu3 %v754_v17 }
  0xad   : > { %v674_v9 = vpop.f32.mrf.mxu0 }
  0xae   : > { %v675_v10 = vadd.f32 %v1350_v8, %v674_v9 }
  0xb0   : > { %v679_v11 = vmul.f32 0.25, %v675_v10 }
  0xb2   : > { %v680_v12 = vpack.c.bf16 %v679_v11, %v679_v11 }
  0xb4   : > { %v744_v13 = vunpack.c.l.b16 %v680_v12  ;;  %1219 = vmatmul.msk.bf16.vlgmr.msra.gmra.mxu1 %vm681_vm1, %v680_v12  ;;  %v1575_v12 = vmov 32.0  }
  0xb5   : > { %v676_v14 = vpop.f32.mrf.mxu0 }
  0xb6   : > { %v745_v15 = vpack.c.b16 %v744_v13, %v744_v13 }
  0xb8   : > { %746 = vrot.lane.b32.xlu0 %v745_v15, %s1571_s17 }
 0x12a   : > { %v747_v18 = vpop.permute.xlu0 %746 }
 0x12b   : > { %1221 = vmatmul.msk.bf16.vlgmr.msra.gmra.mxu3 %vm681_vm1, %v747_v18 }
 0x131   : > { %v697_v19 = vpop.f32.mrf.mxu1 }
 0x132   : > { %v702_v20 = vsel %vm701_vm2, %v697_v19, -inf }
 0x133   : > { %703 = vmax.xlane.f32.xlu1 %v702_v20 }
 0x139   : > { %v699_v21 = vpop.f32.mrf.mxu1 }
 0x14c   : > { %720 = vrot.lane.b32.xlu1 %v719_v7, %s1572_s23 }
 0x1a6   : > { %v704_v22 = vpop.xlane.xlu1 %703 }
 0x1a7   : > { %v708_v25 = vsub.f32 %v697_v19, %v704_v22  ;;  %v705_v43 = vsub.f32 -inf, %v704_v22 }
 0x1a9   : > { %v709_v26 = vmul.f32 1.442695, %v708_v25  ;;  %v706_v44 = vmul.f32 1.442695, %v705_v43  ;;  %v1269_v25 = vld [vmem:[%s1855_s10 + $0x18] sm:$0xff]  ;;  %v1267_v43 = vld [vmem:[%s1855_s10 + $0x8] sm:$0xff] }
 0x1aa   : > { %980 = vmatpush.bf16.msrb.mxu3 %v1269_v25 }
 0x1ab   : > { %1360 = vpow2.f32 %v709_v26 }
 0x1ae   : > { %v765_v23 = vpop.f32.mrf.mxu3 }
 0x1af   : > { %v769_v24 = vsel %vm701_vm2, %v765_v23, -inf }
 0x1b0   : > { %770 = vmax.xlane.f32.xlu2 %v769_v24  ;;  %v1264_v24 = vld [vmem:[%s1853_s8] sm:$0xff] }
 0x1b1   : > { %v1361_v28 = vpop.eup %1360 }
 0x1b2   : > { %v716_v31 = vpack.c.bf16 %v1361_v28, %v1361_v28  ;;  %v712_v32 = vsel %vm701_vm2, %v1361_v28, 0.0  ;;  %v1268_v28 = vld [vmem:[%s1855_s10 + $0x10] sm:$0xff] }
 0x1b3   : > { %981 = vmatpush.bf16.msrb.mxu3 %v1268_v28 }
 0x1b6   : > { %v767_v27 = vpop.f32.mrf.mxu3 }
 0x1b7   : > { %982 = vmatpush.bf16.msrb.mxu3 %v1267_v43 }
 0x1be   : > { %v721_v29 = vpop.permute.xlu1 %720 }
 0x1bf   : > { %v727_v30 = vsel %vm725_vm3, %v721_v29, 0 }
 0x1c0   : > { %736 = vmatpush.bf16.msra.mxu2 %v727_v30 }
 0x1c3   : > { %1220 = vmatmul.msk.bf16.vlgmr.msra.gmra.mxu2 %vm701_vm2, %v716_v31 }
 0x1c8   : > { %784 = vrot.lane.b32.xlu2 %v719_v7, %s1573_s29  ;;  %s1874_s29 = sld [smem:[#allocation18_spill]] }
 0x1f1   : > { %713 = vadd.xlane.f32.xlu2 %v712_v32 }
 0x223   : > { %v771_v33 = vpop.xlane.xlu2 %770 }
 0x224   : > { %v775_v34 = vsub.f32 %v765_v23, %v771_v33  ;;  %v772_v53 = vsub.f32 -inf, %v771_v33  ;;  %v1265_v23 = vld [vmem:[%s1853_s8 + $0x8] sm:$0xff] }
 0x225   : > { %936 = vmatpush.bf16.msrb.mxu1 %v1265_v23 }
 0x226   : > { %v776_v35 = vmul.f32 1.442695, %v775_v34  ;;  %v773_v54 = vmul.f32 1.442695, %v772_v53 }
 0x228   : > { %1362 = vpow2.f32 %v776_v35 }
 0x229   : > { %1364 = vpow2.f32 %v706_v44  ;;  %937 = vmatpush.bf16.msrb.mxu1 %v1264_v24  ;;  %v1266_v44 = vld [vmem:[%s1855_s10] sm:$0xff] }
 0x22a   : > { %983 = vmatpush.bf16.msrb.mxu3 %v1266_v44 }
 0x22b   : > { %v785_v36 = vpop.permute.xlu2 %784 }
 0x22c   : > { %v790_v37 = vsel %vm725_vm3, %v785_v36, 0  ;;  %v1352_v36 = vld [vmem:[%s1851_s6] ss:$0 sm:$0xff] }
 0x22d   : > { %799 = vmatpush.bf16.msrb.mxu2 %v790_v37 }
 0x22e   : > { %v1363_v38 = vpop.eup %1362 }
 0x22f   : > { %v779_v39 = vsel %vm701_vm2, %v1363_v38, 0.0  ;;  %v783_v40 = vpack.c.bf16 %v1363_v38, %v1363_v38  ;;  %v1365_v45 = vpop.eup %1364 }
 0x230   : > { %780 = vadd.xlane.f32.xlu0 %v779_v39  ;;  %v711_v46 = vmul.f32 0.0, %v1365_v45  ;;  %v1353_v39 = vld [vmem:[%s1852_s7] ss:$0 sm:$0xff] }
 0x231   : > { %1222 = vmatmul.msk.bf16.vlgmr.msrb.gmra.mxu2 %vm701_vm2, %v783_v40  ;;  %v1354_v45 = vld [vmem:[%s1854_s9] ss:$0 sm:$0xff] }
 0x246   : > { %v738_v41 = vpop.f32.mrf.mxu2 }
 0x247   : > { %v742_v49 = vadd.f32 %v738_v41, %v711_v46 }
 0x24e   : > { %v740_v42 = vpop.f32.mrf.mxu2 }
 0x264   : > { %v714_v47 = vpop.xlane.xlu2 %713 }
 0x265   : > { %v715_v48 = vadd.f32 %v714_v47, %v711_v46 }
 0x267   : > { %1366 = vrcp.f32 %v715_v48 }
 0x268   : > { %1368 = vpow2.f32 %v773_v54 }
 0x26d   : > { %v1367_v50 = vpop.eup %1366 }
 0x26e   : > { %v807_v51 = vmul.f32 %v1367_v50, %v742_v49  ;;  %v1369_v55 = vpop.eup %1368 }
 0x26f   : > { %v778_v57 = vmul.f32 0.0, %v1369_v55 }
 0x270   : > { %v808_v52 = vpack.c.bf16 %v807_v51, %v807_v51  ;;  %v1355_v51 = vld [vmem:[#allocation3] ss:$0 sm:$0xff] }
 0x272   : > { %810 = vst.msk [vmem:[#allocation2] sm:$0xf] %vm809_vm4, %v808_v52 }
 0x2a3   : > { %v781_v56 = vpop.xlane.xlu0 %780 }
 0x2a4   : > { %v782_v58 = vadd.f32 %v781_v56, %v778_v57 }
 0x2a6   : > { %1370 = vrcp.f32 %v782_v58 }
 0x2a7   : > { %1372 = vrcp.f32 %v1575_v12 }
 0x2ac   : > { %v1371_v61 = vpop.eup %1370 }
 0x2ad   : > { %v1373_v13 = vpop.eup %1372 }
 0x2ae   : > { %v864_v14 = vmul.f32 32.0, %v1373_v13  ;;  %vm868_vm6 = vweird.f32 %v1373_v13 }
 0x2b0   : > { %v865_v15 = vsub.f32 1.0, %v864_v14 }
 0x2b2   : > { %v866_v16 = vmul.f32 %v1373_v13, %v865_v15 }
 0x2b4   : > { %v801_v59 = vpop.f32.mrf.mxu2  ;;  %v867_v17 = vadd.f32 %v1373_v13, %v866_v16 }
 0x2b5   : > { %v805_v60 = vadd.f32 %v801_v59, %v778_v57 }
 0x2b6   : > { %v1789_v18 = vsel %vm868_vm6, %v1373_v13, %v867_v17 }
 0x2b7   : > { %v812_v62 = vmul.f32 %v1371_v61, %v805_v60 }
 0x2b9   : > { %v813_v63 = vpack.c.bf16 %v812_v62, %v812_v62 }
 0x2bb   : > { %815 = vrot.lane.b32.xlu1 %v813_v63, %s1574_s20  ;;  %s637_s20 = scalar_lea.vmem %s1874_s29, %s1207_s14 }
 0x2bc   : > { %v803_v0 = vpop.f32.mrf.mxu2 }
 0x32d   : > { %v816_v4 = vpop.permute.xlu1 %815 }
 0x32e   : > { %819 = vst.msk [vmem:[#allocation2] sm:$0xf] %vm818_vm5, %v816_v4 }
 0x335   : > { %v820_v5 = vld [vmem:[#allocation2] sm:$0xf] }
 0x336   : > { %1231 = vmatmul.msk.bf16.vlgmr.msrb.gmra.mxu0 %vm661_vm0, %v820_v5 }
 0x3b3   : > { %v853_v7 = vpop.f32.mrf.mxu0 }
 0x3b4   : > { %v854_v8 = vadd.f32 %v1351_v6, %v853_v7 }
 0x3b6   : > { %v857_v9 = vadd.f32 %v854_v8, %v1753_v2  ;;  %v1356_v8 = vld [vmem:[#allocation5] ss:$0 sm:$0xff] }
 0x3b8   : > { %v860_v10 = vsel %vm661_vm0, %v857_v9, 0.0 }
 0x3b9   : > { %861 = vadd.xlane.f32.xlu1 %v860_v10 }
 0x3bb   : > { %v855_v11 = vpop.f32.mrf.mxu0 }
 0x3bc   : > { %v1357_v11 = vld [vmem:[#allocation7] ss:$0 sm:$0xff] }
 0x42c   : > { %v862_v19 = vpop.xlane.xlu1 %861 }
 0x42d   : > { %v870_v20 = vmul.f32 %v1789_v18, %v862_v19 }
 0x42f   : > { %v871_v21 = vsub.f32 %v857_v9, %v870_v20 }
 0x431   : > { %v872_v22 = vmul.f32 %v871_v21, %v871_v21 }
 0x433   : > { %v873_v2 = vsel %vm661_vm0, %v872_v22, 0.0 }
 0x434   : > { %874 = vadd.xlane.f32.xlu0 %v873_v2 }
 0x4a7   : > { %v875_v26 = vpop.xlane.xlu0 %874 }
 0x4a8   : > { %v876_v27 = vmul.f32 %v875_v26, %v1789_v18 }
 0x4aa   : > { %v877_v29 = vadd.f32 1e-05, %v876_v27 }
 0x4ac   : > { %1374 = vrsqrt.f32 %v877_v29  ;;  %vm884_vm8 = vweird.f32 %v877_v29 }
 0x4b2   : > { %v1375_v30 = vpop.eup %1374 }
 0x4b3   : > { %v879_v31 = vmul.f32 %v1375_v30, %v877_v29  ;;  %vm885_vm7 = vweird.f32 %v1375_v30  ;;  %v1358_v29 = vld [vmem:[#allocation8] ss:$0 sm:$0xff] }
 0x4b4   : > { %vm886_vm9 = vmor %vm884_vm8, %vm885_vm7 }
 0x4b5   : > { %v880_v32 = vmul.f32 %v1375_v30, %v879_v31  ;;  %v1359_v31 = vld [vmem:[#allocation10] ss:$0 sm:$0xff] }
 0x4b7   : > { %v881_v33 = vmul.f32 0.5, %v880_v32 }
 0x4b9   : > { %v882_v34 = vsub.f32 1.5, %v881_v33 }
 0x4bb   : > { %v883_v35 = vmul.f32 %v1375_v30, %v882_v34 }
 0x4bd   : > { %v887_v37 = vsel %vm886_vm9, %v1375_v30, %v883_v35 }
 0x4be   : > { %v888_v38 = vmul.f32 %v887_v37, %v871_v21 }
 0x4c0   : > { %v892_v40 = vmul.f32 %v1352_v36, %v888_v38 }
 0x4c2   : > { %v896_v41 = vadd.f32 %v1353_v39, %v892_v40 }
 0x4c4   : > { %v911_v42 = vpack.c.bf16 %v896_v41, %v896_v41 }
 0x4c6   : > { %1240 = vmatmul.msk.bf16.vlgmr.msrb.gmra.mxu1 %vm661_vm0, %v911_v42 }
 0x543   : > { %v939_v46 = vpop.f32.mrf.mxu1 }
 0x544   : > { %v940_v47 = vadd.f32 %v1354_v45, %v939_v46 }
 0x546   : > { %v943_v48 = vmax.f32 %v940_v47, 0.0 }
 0x548   : > { %v944_v49 = vpack.c.bf16 %v943_v48, %v943_v48 }
 0x54a   : > { %1257 = vmatmul.msk.bf16.vlgmr.msrb.gmra.mxu3 %vm972_vm10, %v944_v49 }
 0x54b   : > { %v941_v50 = vpop.f32.mrf.mxu1 }
 0x5cd   : > { %v985_v52 = vpop.f32.mrf.mxu3 }
 0x5ce   : > { %v986_v53 = vadd.f32 %v1355_v51, %v985_v52 }
 0x5d0   : > { %v989_v54 = vadd.f32 %v986_v53, %v896_v41 }
 0x5d2   : > { %v992_v55 = vsel %vm661_vm0, %v989_v54, 0.0 }
 0x5d3   : > { %993 = vadd.xlane.f32.xlu0 %v992_v55 }
 0x5d5   : > { %v987_v56 = vpop.f32.mrf.mxu3 }
 0x646   : > { %v994_v57 = vpop.xlane.xlu0 %993 }
 0x647   : > { %v995_v58 = vmul.f32 %v994_v57, %v1789_v18 }
 0x649   : > { %v996_v59 = vsub.f32 %v989_v54, %v995_v58 }
 0x64b   : > { %v997_v60 = vmul.f32 %v996_v59, %v996_v59 }
 0x64d   : > { %v998_v61 = vsel %vm661_vm0, %v997_v60, 0.0 }
 0x64e   : > { %999 = vadd.xlane.f32.xlu2 %v998_v61 }
 0x6c1   : > { %v1000_v62 = vpop.xlane.xlu2 %999 }
 0x6c2   : > { %v1001_v63 = vmul.f32 %v1000_v62, %v1789_v18 }
 0x6c4   : > { %v1002_v0 = vadd.f32 1e-05, %v1001_v63 }
 0x6c6   : > { %1376 = vrsqrt.f32 %v1002_v0  ;;  %vm1009_vm12 = vweird.f32 %v1002_v0 }
 0x6cc   : > { %v1377_v1 = vpop.eup %1376 }
 0x6cd   : > { %v1004_v3 = vmul.f32 %v1377_v1, %v1002_v0  ;;  %vm1010_vm11 = vweird.f32 %v1377_v1 }
 0x6ce   : > { %vm1011_vm13 = vmor %vm1009_vm12, %vm1010_vm11 }
 0x6cf   : > { %v1005_v4 = vmul.f32 %v1377_v1, %v1004_v3 }
 0x6d1   : > { %v1006_v5 = vmul.f32 0.5, %v1005_v4 }
 0x6d3   : > { %v1007_v6 = vsub.f32 1.5, %v1006_v5 }
 0x6d5   : > { %v1008_v7 = vmul.f32 %v1377_v1, %v1007_v6 }
 0x6d7   : > { %v1012_v9 = vsel %vm1011_vm13, %v1377_v1, %v1008_v7 }
 0x6d8   : > { %v1013_v10 = vmul.f32 %v1012_v9, %v996_v59 }
 0x6da   : > { %v1017_v12 = vmul.f32 %v1356_v8, %v1013_v10 }
 0x6dc   : > { %v1021_v13 = vadd.f32 %v1357_v11, %v1017_v12 }
 0x6de   : > { %v1024_v14 = vsel %vm661_vm0, %v1021_v13, 0.0 }
 0x6df   : > { %1025 = vadd.xlane.f32.xlu0 %v1024_v14 }
 0x752   : > { %v1026_v15 = vpop.xlane.xlu0 %1025 }
 0x753   : > { %v1027_v16 = vmul.f32 %v1026_v15, %v1789_v18 }
 0x755   : > { %v1028_v17 = vsub.f32 %v1021_v13, %v1027_v16 }
 0x757   : > { %v1029_v19 = vmul.f32 %v1028_v17, %v1028_v17 }
 0x759   : > { %v1030_v20 = vsel %vm661_vm0, %v1029_v19, 0.0 }
 0x75a   : > { %1031 = vadd.xlane.f32.xlu2 %v1030_v20 }
 0x7cd   : > { %v1032_v21 = vpop.xlane.xlu2 %1031 }
 0x7ce   : > { %v1033_v22 = vmul.f32 %v1032_v21, %v1789_v18 }
 0x7d0   : > { %v1034_v2 = vadd.f32 1e-05, %v1033_v22 }
 0x7d2   : > { %1378 = vrsqrt.f32 %v1034_v2  ;;  %vm1041_vm15 = vweird.f32 %v1034_v2 }
 0x7d8   : > { %v1379_v23 = vpop.eup %1378 }
 0x7d9   : > { %v1036_v24 = vmul.f32 %v1379_v23, %v1034_v2  ;;  %vm1042_vm14 = vweird.f32 %v1379_v23 }
 0x7da   : > { %vm1043_vm1 = vmor %vm1041_vm15, %vm1042_vm14 }
 0x7db   : > { %v1037_v25 = vmul.f32 %v1379_v23, %v1036_v24 }
 0x7dd   : > { %v1038_v26 = vmul.f32 0.5, %v1037_v25 }
 0x7df   : > { %v1039_v27 = vsub.f32 1.5, %v1038_v26 }
 0x7e1   : > { %v1040_v28 = vmul.f32 %v1379_v23, %v1039_v27 }
 0x7e3   : > { %v1044_v30 = vsel %vm1043_vm1, %v1379_v23, %v1040_v28 }
 0x7e4   : > { %v1045_v32 = vmul.f32 %v1044_v30, %v1028_v17 }
 0x7e6   : > { %v1049_v33 = vmul.f32 %v1358_v29, %v1045_v32 }
 0x7e8   : > { %v1053_v18 = vadd.f32 %v1359_v31, %v1049_v33 }
 0x7ea   : > { %1054 = vst.msk [vmem:[%s637_s20] sm:$0xff] %vm661_vm0, %v1053_v18 }
 0x7eb PF: > { %s1875_s18 = sld [smem:[#allocation14_spill]]  ;;  %s1876_s21 = smov %s1560_s22 }
 0x7ec   : > { %s1877_s22 = smov %s1879_s27 }
 0x7f1   : > { %s29_s23 = sadd.s32 1, %s1875_s18  }
 0x7f2   : > { %p26_p8 = scmp.ge.s32.totalorder %s29_s23, 4  }
 0x7f4   :  { %28 = sbr.rel (!%p26_p8) target bundleno = 9 (0x9), region = 138 }
 0x7f9   :  { %1080 = vsyncpa [#allocation4], 1 }
 0x7fa   :  { %1082 = vsyncpa [#allocation4 + $0x1], 1 }
 0x7fb   :  { %1083 = vsyncpa [#allocation6], 1 }
 0x7fc   :  { %1084 = vsyncpa [#allocation9], 1 }

// kernel: forward.21
= control target key start
LH: loop header
LB: loop body
LE: loop exit
PB: predicated region body
PF: predicated region fallthrough
CT: control target
= control target key end

     0   :  { %10 = vsyncpa [#allocation3], 0  ;;  %s301_s0 = inlined_call_operand.vmem [shape: f32[16,32], index: 0, kind: input, shape index: {}]   ;;  %s302_s1 = inlined_call_operand.vmem [shape: f32[1,32], index: 1, kind: input, shape index: {}]   ;;  %s303_s2 = inlined_call_operand.hbm [shape: f32[1,32], index: 2, kind: input, shape index: {}]   ;;  %s304_s3 = inlined_call_operand.vmem [shape: bf16[32,128], index: 3, kind: input, shape index: {}]   ;;  %s305_s4 = inlined_call_operand.hbm [shape: f32[1,128], index: 4, kind: input, shape index: {}]   ;;  %s306_s5 = inlined_call_operand.vmem [shape: f32[16,128], index: 5, kind: output, shape index: {}]  }
   0x1   :  { %s21_s20 = sshll.u32 %s303_s2, 4  ;;  %s22_s20 = int_to_ptr.hbm [resolvable:$true] %s21_s20 }
   0x2   :  { %11 = vsyncpa [#allocation5], 0  ;;  %s236_s21 = smov [#allocation2]   ;;  %s34_s25 = sshll.u32 %s305_s4, 4  ;;  %s35_s25 = int_to_ptr.hbm [resolvable:$true] %s34_s25 }
   0x3   :  { %s23_s22 = sshll.u32 %s236_s21, 4  ;;  %s237_s26 = smov [#allocation4]   ;;  %s24_s22 = int_to_ptr.vmem [resolvable:$true] %s23_s22 }
   0x4   :  { %26 = dma.hbm_to_vmem [thread:$0]  %s22_s20, 16, %s24_s22, [#allocation3]  }
   0x5   :  { %s36_s27 = sshll.u32 %s237_s26, 4  ;;  %s37_s27 = int_to_ptr.vmem [resolvable:$true] %s36_s27 }
   0x6   :  { %39 = dma.hbm_to_vmem [thread:$0]  %s35_s25, 16, %s37_s27, [#allocation5]  }
   0x7   :  { %232 = dma.done.wait [#allocation3], 16  }
   0x8   :  { %233 = vsyncadd [#allocation3], 4294967280 }
   0x9   :  { %234 = dma.done.wait [#allocation5], 16  }
   0xa   :  { %235 = vsyncadd [#allocation5], 4294967280  ;;  %vm53_vm0 = vcmask 261120   ;;  %v49_v0 = vld [vmem:[%s301_s0] sm:$0xff]  ;;  %v50_v2 = vld [vmem:[%s301_s0 + $0x8] sm:$0xff]  ;;  %v238_v4 = vmov 32.0  }
   0xb   :  { %v54_v1 = vsel %vm53_vm0, %v49_v0, 0.0  ;;  %v57_v3 = vsel %vm53_vm0, %v50_v2, 0.0  ;;  %178 = vrcp.f32 %v238_v4  ;;  %v171_v21 = vld [vmem:[%s304_s3 + $0x8] sm:$0xff]  ;;  %v170_v23 = vld [vmem:[%s304_s3] sm:$0xff] }
   0xc   :  { %55 = vadd.xlane.f32.xlu0 %v54_v1  ;;  %145 = vmatpush.bf16.msra.mxu0 %v171_v21  ;;  %v175_v42 = vld [vmem:[%s302_s1] ss:$0 sm:$0xff]  ;;  %v177_v52 = vld [vmem:[#allocation4] ss:$0 sm:$0xff] }
   0xd   :  { %v176_v47 = vld [vmem:[#allocation2] ss:$0 sm:$0xff] }
  0x10   :  { %146 = vmatpush.bf16.msra.mxu0 %v170_v23 }
  0x11   :  { %v179_v5 = vpop.eup %178 }
  0x12   :  { %v61_v6 = vmul.f32 32.0, %v179_v5  ;;  %vm65_vm1 = vweird.f32 %v179_v5 }
  0x14   :  { %58 = vadd.xlane.f32.xlu0 %v57_v3  ;;  %v62_v7 = vsub.f32 1.0, %v61_v6 }
  0x16   :  { %v63_v8 = vmul.f32 %v179_v5, %v62_v7 }
  0x18   :  { %v64_v9 = vadd.f32 %v179_v5, %v63_v8 }
  0x1a   :  { %v66_v10 = vsel %vm65_vm1, %v179_v5, %v64_v9 }
  0x7f   :  { %v56_v11 = vpop.xlane.xlu0 %55 }
  0x80   :  { %v67_v12 = vmul.f32 %v66_v10, %v56_v11 }
  0x82   :  { %v69_v13 = vsub.f32 %v49_v0, %v67_v12 }
  0x84   :  { %v71_v14 = vmul.f32 %v69_v13, %v69_v13 }
  0x86   :  { %v73_v15 = vsel %vm53_vm0, %v71_v14, 0.0 }
  0x87   :  { %74 = vadd.xlane.f32.xlu1 %v73_v15  ;;  %v59_v16 = vpop.xlane.xlu0 %58 }
  0x88   :  { %v68_v17 = vmul.f32 %v66_v10, %v59_v16 }
  0x8a   :  { %v70_v18 = vsub.f32 %v50_v2, %v68_v17 }
  0x8c   :  { %v72_v19 = vmul.f32 %v70_v18, %v70_v18 }
  0x8e   :  { %v76_v20 = vsel %vm53_vm0, %v72_v19, 0.0 }
  0x8f   :  { %77 = vadd.xlane.f32.xlu1 %v76_v20 }
  0xfa   :  { %v75_v22 = vpop.xlane.xlu1 %74 }
  0xfb   :  { %v79_v24 = vmul.f32 %v75_v22, %v66_v10 }
  0xfd   :  { %v81_v25 = vadd.f32 1e-05, %v79_v24 }
  0xff   :  { %180 = vrsqrt.f32 %v81_v25  ;;  %vm89_vm3 = vweird.f32 %v81_v25 }
 0x102   :  { %v78_v26 = vpop.xlane.xlu1 %77 }
 0x103   :  { %v80_v27 = vmul.f32 %v78_v26, %v66_v10 }
 0x105   :  { %v181_v28 = vpop.eup %180  ;;  %v82_v29 = vadd.f32 1e-05, %v80_v27 }
 0x106   :  { %v84_v30 = vmul.f32 %v181_v28, %v81_v25  ;;  %vm90_vm2 = vweird.f32 %v181_v28 }
 0x107   :  { %182 = vrsqrt.f32 %v82_v29  ;;  %vm91_vm4 = vmor %vm89_vm3, %vm90_vm2  ;;  %vm99_vm6 = vweird.f32 %v82_v29 }
 0x108   :  { %v85_v31 = vmul.f32 %v181_v28, %v84_v30 }
 0x10a   :  { %v86_v32 = vmul.f32 0.5, %v85_v31 }
 0x10c   :  { %v87_v33 = vsub.f32 1.5, %v86_v32 }
 0x10d   :  { %v183_v34 = vpop.eup %182 }
 0x10e   :  { %v88_v35 = vmul.f32 %v181_v28, %v87_v33  ;;  %v94_v36 = vmul.f32 %v183_v34, %v82_v29  ;;  %vm100_vm5 = vweird.f32 %v183_v34 }
 0x10f   :  { %vm101_vm7 = vmor %vm99_vm6, %vm100_vm5 }
 0x110   :  { %v95_v37 = vmul.f32 %v183_v34, %v94_v36  ;;  %v92_v38 = vsel %vm91_vm4, %v181_v28, %v88_v35 }
 0x111   :  { %v103_v41 = vmul.f32 %v92_v38, %v69_v13 }
 0x112   :  { %v96_v39 = vmul.f32 0.5, %v95_v37 }
 0x113   :  { %v108_v46 = vmul.f32 %v175_v42, %v103_v41 }
 0x114   :  { %v97_v40 = vsub.f32 1.5, %v96_v39 }
 0x115   :  { %v113_v49 = vadd.f32 %v176_v47, %v108_v46 }
 0x116   :  { %v98_v43 = vmul.f32 %v183_v34, %v97_v40 }
 0x118   :  { %v102_v44 = vsel %vm101_vm7, %v183_v34, %v98_v43 }
 0x119   :  { %v104_v45 = vmul.f32 %v102_v44, %v70_v18 }
 0x11b   :  { %v109_v48 = vmul.f32 %v175_v42, %v104_v45 }
 0x11d   :  { %v114_v50 = vadd.f32 %v176_v47, %v109_v48 }
 0x11f   :  { %v120_v51 = vpack.c.bf16 %v114_v50, %v113_v49 }
 0x121   :  { %169 = vmatmul.msk.bf16.vlgmr.msra.gmra.mxu0 %vm53_vm0, %v120_v51 }
 0x19e   :  { %v148_v53 = vpop.f32.mrf.mxu0 }
 0x19f   :  { %v149_v54 = vadd.f32 %v177_v52, %v148_v53 }
 0x1a1   :  { %153 = vst [vmem:[%s306_s5] sm:$0xff] %v149_v54 }
 0x1a6   :  { %v150_v55 = vpop.f32.mrf.mxu0 }
 0x1a7   :  { %v151_v56 = vadd.f32 %v177_v52, %v150_v55 }
 0x1a9   :  { %154 = vst [vmem:[%s306_s5 + $0x8] sm:$0xff] %v151_v56 }
 0x1aa   :  { %159 = vsyncpa [#allocation3], 1 }
 0x1ab   :  { %160 = vsyncpa [#allocation5], 1 }

// kernel: forward.20
= control target key start
LH: loop header
LB: loop body
LE: loop exit
PB: predicated region body
PF: predicated region fallthrough
CT: control target
= control target key end

     0   :  { %s2861_s0 = inlined_call_operand.vmem [shape: f32[2,8,32], index: 0, kind: input, shape index: {}]   ;;  %s2862_s1 = inlined_call_operand.vmem [shape: bf16[2,8,64], index: 1, kind: input, shape index: {}]   ;;  %s2863_s2 = inlined_call_operand.vmem [shape: bf16[2,8,64], index: 2, kind: input, shape index: {}]   ;;  %s2864_s3 = inlined_call_operand.vmem [shape: bf16[32,32], index: 3, kind: input, shape index: {}]   ;;  %s2865_s4 = inlined_call_operand.hbm [shape: f32[1,32], index: 4, kind: input, shape index: {}]   ;;  %s2866_s5 = inlined_call_operand.vmem [shape: bf16[32,32], index: 5, kind: input, shape index: {}]   ;;  %s2867_s6 = inlined_call_operand.hbm [shape: f32[1,32], index: 6, kind: input, shape index: {}]   ;;  %s2868_s7 = inlined_call_operand.hbm [shape: f32[1,32], index: 7, kind: input, shape index: {}]   ;;  %s2869_s8 = inlined_call_operand.hbm [shape: f32[1,32], index: 8, kind: input, shape index: {}]   ;;  %s2870_s9 = inlined_call_operand.vmem [shape: bf16[32,32], index: 9, kind: input, shape index: {}]   ;;  %s2871_s10 = inlined_call_operand.hbm [shape: f32[1,32], index: 10, kind: input, shape index: {}]   ;;  %s2872_s11 = inlined_call_operand.vmem [shape: bf16[32,32], index: 11, kind: input, shape index: {}]   ;;  %s2873_s12 = inlined_call_operand.hbm [shape: f32[1,32], index: 12, kind: input, shape index: {}]   ;;  %s2874_s13 = inlined_call_operand.hbm [shape: f32[1,32], index: 13, kind: input, shape index: {}]   ;;  %s2875_s14 = inlined_call_operand.hbm [shape: f32[1,32], index: 14, kind: input, shape index: {}]   ;;  %s2876_s15 = inlined_call_operand.vmem [shape: bf16[32,64], index: 15, kind: input, shape index: {}]   ;;  %s2877_s16 = inlined_call_operand.hbm [shape: f32[1,64], index: 16, kind: input, shape index: {}]   ;;  %s2878_s17 = inlined_call_operand.vmem [shape: bf16[64,32], index: 17, kind: input, shape index: {}]   ;;  %s2879_s18 = inlined_call_operand.hbm [shape: f32[1,32], index: 18, kind: input, shape index: {}]   ;;  %s2880_s19 = inlined_call_operand.hbm [shape: f32[1,32], index: 19, kind: input, shape index: {}]   ;;  %s2881_s20 = inlined_call_operand.hbm [shape: f32[1,32], index: 20, kind: input, shape index: {}]   ;;  %s2882_s21 = inlined_call_operand.vmem [shape: f32[2,8,32], index: 21, kind: output, shape index: {}]  }
   0x1   :  { %2886 = sst [smem:[#allocation30_spill]] %s2861_s0 }
   0x2   :  { %2887 = sst [smem:[#allocation31_spill]] %s2862_s1 }
   0x3   :  { %2888 = sst [smem:[#allocation32_spill]] %s2863_s2 }
   0x4   :  { %2889 = sst [smem:[#allocation33_spill]] %s2864_s3 }
   0x5   :  { %2890 = sst [smem:[#allocation34_spill]] %s2865_s4 }
   0x6   :  { %2891 = sst [smem:[#allocation35_spill]] %s2866_s5 }
   0x7   :  { %2892 = sst [smem:[#allocation36_spill]] %s2867_s6 }
   0x8   :  { %2893 = sst [smem:[#allocation37_spill]] %s2869_s8 }
   0x9   :  { %2894 = sst [smem:[#allocation38_spill]] %s2873_s12 }
   0xa   :  { %2895 = sst [smem:[#allocation39_spill]] %s2882_s21 }
   0xb   :  { %26 = vsyncpa [#allocation4], 0 }
   0xc   :  { %27 = vsyncpa [#allocation6], 0 }
   0xd   :  { %28 = vsyncpa [#allocation9], 0 }
   0xe   :  { %29 = vsyncpa [#allocation12], 0 }
   0xf   :  { %30 = vsyncpa [#allocation15], 0 }
  0x10   :  { %31 = vsyncpa [#allocation18], 0 }
  0x11   :  { %32 = vsyncpa [#allocation21], 0  ;;  %s2589_s2 = smov 0   ;;  %s2591_s25 = smov 0  }
  0x12   :  { %s2593_s26 = smov 0  }
  0x13 LB: > { %2896 = sst [smem:[#allocation29_spill]] %s2460_s26  ;;  %s1737_s29 = sadd.s32 4294967295, %s2460_s26   ;;  %s2460_s26 = sphi %s2593_s26, %s38_s26   ;;  %s2456_s25 = sphi %s2591_s25, %s2912_s25   ;;  %s2452_s2 = sphi %s2589_s2, %s2911_s2  }
  0x14   : > { %s2897_s6 = sld [smem:[#allocation36_spill]]  ;;  %p1739_p0 = scmp.ge.s32.totalorder %s2460_s26, 1 }
  0x15   : > { %p541_p1 = scmp.lt.s32.totalorder %s2460_s26, 3  ;;  %p2610_p2 = scmp.eq.s32.totalorder %s1737_s29, 0 }
  0x16   : > { %s2462_s30 = smov [#allocation5]   ;;  %s2900_s8 = sld [smem:[#allocation37_spill]] }
  0x17   : > { %p2614_p3 = pnand %p1739_p0, %p541_p1  ;;  %s573_s5 = sshll.u32 %s2462_s30, 4  ;;  %s574_s5 = int_to_ptr.vmem [resolvable:$true] %s573_s5 }
  0x18   : > { %s2901_s12 = sld [smem:[#allocation38_spill]]  ;;  %s2463_s30 = smov [#allocation8]  }
  0x19   : > { %p1904_p4 = pneg %p2614_p3  ;;  %s2464_s22 = smov [#allocation11]  }
  0x1a   : > { %s571_s28 = sshll.u32 %s2897_s6, 4  ;;  %s597_s6 = sshll.u32 %s2463_s30, 4  ;;  %s572_s28 = int_to_ptr.hbm [resolvable:$true] %s571_s28  ;;  %s598_s6 = int_to_ptr.vmem [resolvable:$true] %s597_s6 }
  0x1b   : > { %p2628_p5 = pnand %p2610_p2, %p1904_p4  ;;  %s627_s23 = sshll.u32 %s2464_s22, 4  ;;  %s628_s23 = int_to_ptr.vmem [resolvable:$true] %s627_s23 }
  0x1c   : > { %s595_s1 = sshll.u32 %s2900_s8, 4  ;;  %s649_s8 = sshll.u32 %s2875_s14, 4  ;;  %s596_s1 = int_to_ptr.hbm [resolvable:$true] %s595_s1  ;;  %s650_s8 = int_to_ptr.hbm [resolvable:$true] %s649_s8 }
  0x1d   : > { %1910 = dma.hbm_to_vmem [thread:$0]  (!%p2628_p5), %s572_s28, 16, %s574_s5, [#allocation6]  }
  0x1e   : > { %s625_s3 = sshll.u32 %s2901_s12, 4  ;;  %s679_s26 = sshll.u32 %s2879_s18, 4  ;;  %s626_s3 = int_to_ptr.hbm [resolvable:$true] %s625_s3  ;;  %s680_s26 = int_to_ptr.hbm [resolvable:$true] %s679_s26 }
  0x1f   : > { %1916 = dma.hbm_to_vmem [thread:$0]  (!%p2628_p5), %s596_s1, 16, %s598_s6, [#allocation9]  }
  0x20   : > { %1922 = dma.hbm_to_vmem [thread:$0]  (!%p2628_p5), %s626_s3, 16, %s628_s23, [#allocation12]  }
  0x21   : > { %s2465_s21 = smov [#allocation14]   ;;  %s2466_s6 = smov [#allocation17]  }
  0x22   : > { %s651_s28 = sshll.u32 %s2465_s21, 4  ;;  %s681_s5 = sshll.u32 %s2466_s6, 4  ;;  %s652_s28 = int_to_ptr.vmem [resolvable:$true] %s651_s28  ;;  %s682_s5 = int_to_ptr.vmem [resolvable:$true] %s681_s5 }
  0x23   : > { %1928 = dma.hbm_to_vmem [thread:$0]  (!%p2628_p5), %s650_s8, 16, %s652_s28, [#allocation15]  }
  0x24   : > { %1934 = dma.hbm_to_vmem [thread:$0]  (!%p2628_p5), %s680_s26, 16, %s682_s5, [#allocation18]  }
  0x25   : > { %s50_s1 = sadd.s32 1, %s2456_s25  ;;  %s2903_s3 = sld [smem:[#allocation34_spill]] }
  0x26   : > { %p52_p6 = scmp.ge.s32.totalorder %s50_s1, 2  ;;  %s583_s27 = sshll.u32 %s2868_s7, 4  ;;  %s584_s27 = int_to_ptr.hbm [resolvable:$true] %s583_s27 }
  0x27   : > { %s2467_s8 = smov [#allocation3]   ;;  %s2468_s26 = smov [#allocation7]  }
  0x28   : > { %s2914_s1 = smov (%p52_p6, %s50_s1), 0  ;;  %s558_s30 = sshll.u32 %s2467_s8, 4  ;;  %s559_s30 = int_to_ptr.vmem [resolvable:$true] %s558_s30 }
  0x29   : > { %s585_s28 = sshll.u32 %s2468_s26, 4  ;;  %s610_s22 = sshll.u32 %s2871_s10, 4  ;;  %s586_s28 = int_to_ptr.vmem [resolvable:$true] %s585_s28  ;;  %s611_s22 = int_to_ptr.hbm [resolvable:$true] %s610_s22 }
  0x2a   : > { %1913 = dma.hbm_to_vmem [thread:$0]  (!%p2628_p5), %s584_s27, 16, %s586_s28, [#allocation6]  }
  0x2b   : > { %s556_s23 = sshll.u32 %s2903_s3, 4  ;;  %s637_s12 = sshll.u32 %s2874_s13, 4  ;;  %s557_s23 = int_to_ptr.hbm [resolvable:$true] %s556_s23  ;;  %s638_s12 = int_to_ptr.hbm [resolvable:$true] %s637_s12 }
  0x2c   : > { %1907 = dma.hbm_to_vmem [thread:$0]  (!%p2628_p5), %s557_s23, 16, %s559_s30, [#allocation4]  }
  0x2d   : > { %s2469_s21 = smov [#allocation10]   ;;  %s2470_s23 = smov [#allocation13]  }
  0x2e   : > { %s612_s8 = sshll.u32 %s2469_s21, 4  ;;  %s639_s30 = sshll.u32 %s2470_s23, 4  ;;  %s613_s8 = int_to_ptr.vmem [resolvable:$true] %s612_s8  ;;  %s640_s30 = int_to_ptr.vmem [resolvable:$true] %s639_s30 }
  0x2f   : > { %1919 = dma.hbm_to_vmem [thread:$0]  (!%p2628_p5), %s611_s22, 16, %s613_s8, [#allocation9]  }
  0x30   : > { %s664_s5 = sshll.u32 %s2877_s16, 4  ;;  %s691_s24 = sshll.u32 %s2880_s19, 4  ;;  %s665_s5 = int_to_ptr.hbm [resolvable:$true] %s664_s5  ;;  %s692_s24 = int_to_ptr.hbm [resolvable:$true] %s691_s24 }
  0x31   : > { %1925 = dma.hbm_to_vmem [thread:$0]  (!%p2628_p5), %s638_s12, 16, %s640_s30, [#allocation12]  }
  0x32   : > { %s2471_s3 = smov [#allocation16]   ;;  %s2472_s22 = smov [#allocation19]  }
  0x33   : > { %s666_s21 = sshll.u32 %s2471_s3, 4  ;;  %s693_s8 = sshll.u32 %s2472_s22, 4  ;;  %s667_s21 = int_to_ptr.vmem [resolvable:$true] %s666_s21  ;;  %s694_s8 = int_to_ptr.vmem [resolvable:$true] %s693_s8 }
  0x34   : > { %1931 = dma.hbm_to_vmem [thread:$0]  (!%p2628_p5), %s665_s5, 16, %s667_s21, [#allocation15]  }
  0x35   : > { %s703_s6 = sshll.u32 %s2881_s20, 4  ;;  %s2473_s12 = smov [#allocation20]   ;;  %s704_s6 = int_to_ptr.hbm [resolvable:$true] %s703_s6 }
  0x36   : > { %1937 = dma.hbm_to_vmem [thread:$0]  (!%p2628_p5), %s692_s24, 16, %s694_s8, [#allocation18]  }
  0x37   : > { %s705_s30 = sshll.u32 %s2473_s12, 4  ;;  %742 = sbr.rel (%p2614_p3) target bundleno = 2943 (0xb7f), region = 104  ;;  %s706_s30 = int_to_ptr.vmem [resolvable:$true] %s705_s30 }
  0x38   : > { %1940 = dma.hbm_to_vmem [thread:$0]  (!%p2628_p5), %s704_s6, 16, %s706_s30, [#allocation21]  }
  0x3c   : > { %2423 = dma.done.wait (%p2610_p2), [#allocation4], 16  }
  0x3d   : > { %2425 = vsyncadd (%p2610_p2), [#allocation4], 4294967280 }
  0x3e   : > { %2427 = dma.done.wait (%p2610_p2), [#allocation6], 32  }
  0x3f   : > { %2429 = vsyncadd (%p2610_p2), [#allocation6], 4294967264 }
  0x40   : > { %2431 = dma.done.wait (%p2610_p2), [#allocation9], 32  }
  0x41   : > { %2433 = vsyncadd (%p2610_p2), [#allocation9], 4294967264 }
  0x42   : > { %2435 = dma.done.wait (%p2610_p2), [#allocation12], 32  }
  0x43   : > { %2437 = vsyncadd (%p2610_p2), [#allocation12], 4294967264 }
  0x44   : > { %2439 = dma.done.wait (%p2610_p2), [#allocation15], 32  }
  0x45   : > { %2441 = vsyncadd (%p2610_p2), [#allocation15], 4294967264 }
  0x46   : > { %2443 = dma.done.wait (%p2610_p2), [#allocation18], 32  }
  0x47   : > { %2445 = vsyncadd (%p2610_p2), [#allocation18], 4294967264 }
  0x48   : > { %2447 = dma.done.wait (%p2610_p2), [#allocation21], 16  }
  0x49   : > { %2449 = vsyncadd (%p2610_p2), [#allocation21], 4294967280  ;;  %p870_p7 = scmp.lt.s32.totalorder %s2452_s2, 1  ;;  %s2904_s27 = sld [smem:[#allocation30_spill]]  ;;  %vm915_vm0 = vcmask 261120   ;;  %vm935_vm1 = vcmask 130048  }
  0x4a   : > { %s2905_s21 = sld [smem:[#allocation33_spill]]  ;;  %s2474_s30 = smov 112   ;;  %v2006_v8 = vld [vmem:[#allocation3] ss:$0 sm:$0xff]  ;;  %vm955_vm2 = vcmask 64512   ;;  %vm979_vm3 = vcmask 1043456  }
  0x4b   : > { %s2916_s2 = smov (!%p870_p7, %s2452_s2), 1  ;;  %s2906_s6 = sld [smem:[#allocation31_spill]]  ;;  %vm1063_vm4 = vcmask 125952   ;;  %vm1072_vm5 = vcmask 257152   ;;  %vm1470_vm13 = vcmask 523264  }
  0x4c   : > { %s1766_s4 = sshll.u32 %s2916_s2, 3  ;;  %s1767_s8 = sshll.u32 %s2916_s2, 2 }
  0x4d   : > { %s2475_s29 = smov 96   ;;  %s2476_s5 = smov 80  }
  0x4e   : > { %s2907_s3 = sld [smem:[#allocation35_spill]] }
  0x4f   : > { %s876_s28 = scalar_lea.vmem %s2904_s27, %s1766_s4  ;;  %s2477_s27 = smov 16  }
  0x50   : > { %v1843_v0 = vld [vmem:[%s2905_s21 + $0x8] sm:$0xff]  ;;  %v1842_v1 = vld [vmem:[%s2905_s21] sm:$0xff]  ;;  %s2908_s0 = sld [smem:[#allocation32_spill]] }
  0x51   : > { %925 = vmatpush.bf16.msra.mxu0 %v1843_v0  ;;  %v2732_v2 = vld [vmem:[%s876_s28] sm:$0xff]  ;;  %s880_s12 = scalar_lea.vmem %s2906_s6, %s1767_s8  ;;  %s2909_s23 = sld [smem:[#allocation39_spill]] }
  0x52   : > { %v899_v3 = vpack.c.bf16 %v2732_v2, %v2732_v2  ;;  %v932_v4 = vld [vmem:[%s880_s12] sm:$0xf] }
  0x53   : > { %v940_v5 = vsel %vm935_vm1, %v932_v4, 0  ;;  %v972_v6 = vunpack.c.l.b16 %v932_v4 }
  0x54   : > { %949 = vmatpush.bf16.xpose.msra.mxu1 %v940_v5 }
  0x55   : > { %926 = vmatpush.bf16.msra.mxu0 %v1842_v1  ;;  %v973_v7 = vpack.c.b16 %v972_v6, %v972_v6  ;;  %v1845_v1 = vld [vmem:[%s2907_s3 + $0x8] sm:$0xff]  ;;  %v2007_v6 = vld [vmem:[#allocation5] ss:$0 sm:$0xff] }
  0x56   : > { %s884_s22 = scalar_lea.vmem %s2908_s0, %s1767_s8 }
  0x57   : > { %1002 = vrot.lane.b32.xlu0 %v973_v7, %s2474_s30  ;;  %s891_s26 = scalar_lea.vmem %s2909_s23, %s1766_s4 }
  0x58   : > { %1778 = vmatmul.msk.bf16.vlgmr.msra.gmra.mxu0 %vm915_vm0, %v899_v3  ;;  %v1844_v3 = vld [vmem:[%s2907_s3] sm:$0xff] }
  0x59   : > { %1104 = vmatpush.bf16.msrb.mxu0 %v1845_v1 }
  0x5d   : > { %1105 = vmatpush.bf16.msrb.mxu0 %v1844_v3 }
  0xc9   : > { %v1003_v16 = vpop.permute.xlu0 %1002 }
  0xca   : > { %v1008_v17 = vsel %vm935_vm1, %v1003_v16, 0 }
  0xcb   : > { %1017 = vmatpush.bf16.xpose.msra.mxu3 %v1008_v17 }
  0xd5   : > { %v928_v9 = vpop.f32.mrf.mxu0 }
  0xd6   : > { %v929_v10 = vadd.f32 %v2006_v8, %v928_v9 }
  0xd8   : > { %v933_v11 = vmul.f32 0.25, %v929_v10 }
  0xda   : > { %v934_v12 = vpack.c.bf16 %v933_v11, %v933_v11 }
  0xdc   : > { %v998_v13 = vunpack.c.l.b16 %v934_v12  ;;  %1779 = vmatmul.msk.bf16.vlgmr.msra.gmra.mxu1 %vm935_vm1, %v934_v12  ;;  %v2478_v12 = vmov 32.0  }
  0xdd   : > { %v930_v14 = vpop.f32.mrf.mxu0 }
  0xde   : > { %v999_v15 = vpack.c.b16 %v998_v13, %v998_v13 }
  0xe0   : > { %1000 = vrot.lane.b32.xlu0 %v999_v15, %s2474_s30 }
 0x152   : > { %v1001_v18 = vpop.permute.xlu0 %1000 }
 0x153   : > { %1781 = vmatmul.msk.bf16.vlgmr.msra.gmra.mxu3 %vm935_vm1, %v1001_v18 }
 0x159   : > { %v951_v19 = vpop.f32.mrf.mxu1 }
 0x15a   : > { %v956_v20 = vsel %vm955_vm2, %v951_v19, -inf }
 0x15b   : > { %957 = vmax.xlane.f32.xlu1 %v956_v20 }
 0x161   : > { %v953_v21 = vpop.f32.mrf.mxu1 }
 0x174   : > { %974 = vrot.lane.b32.xlu1 %v973_v7, %s2475_s29 }
 0x1ce   : > { %v958_v22 = vpop.xlane.xlu1 %957 }
 0x1cf   : > { %v962_v25 = vsub.f32 %v951_v19, %v958_v22  ;;  %v959_v43 = vsub.f32 -inf, %v958_v22 }
 0x1d1   : > { %v963_v26 = vmul.f32 1.442695, %v962_v25  ;;  %v960_v44 = vmul.f32 1.442695, %v959_v43  ;;  %v1188_v25 = vld [vmem:[%s884_s22] sm:$0xf] }
 0x1d3   : > { %2018 = vpow2.f32 %v963_v26  ;;  %v1226_v26 = vunpack.c.l.b16 %v1188_v25 }
 0x1d6   : > { %v1019_v23 = vpop.f32.mrf.mxu3 }
 0x1d7   : > { %v1023_v24 = vsel %vm955_vm2, %v1019_v23, -inf }
 0x1d8   : > { %1024 = vmax.xlane.f32.xlu2 %v1023_v24  ;;  %v1846_v24 = vld [vmem:[%s2870_s9] sm:$0xff] }
 0x1d9   : > { %v2019_v28 = vpop.eup %2018 }
 0x1da   : > { %v970_v31 = vpack.c.bf16 %v2019_v28, %v2019_v28  ;;  %v966_v32 = vsel %vm955_vm2, %v2019_v28, 0.0 }
 0x1de   : > { %v1021_v27 = vpop.f32.mrf.mxu3 }
 0x1e6   : > { %v975_v29 = vpop.permute.xlu1 %974 }
 0x1e7   : > { %v981_v30 = vsel %vm979_vm3, %v975_v29, 0  ;;  %v1227_v29 = vpack.c.b16 %v1226_v26, %v1226_v26 }
 0x1e8   : > { %990 = vmatpush.bf16.msra.mxu2 %v981_v30 }
 0x1eb   : > { %1780 = vmatmul.msk.bf16.vlgmr.msra.gmra.mxu2 %vm955_vm2, %v970_v31 }
 0x1f0   : > { %1038 = vrot.lane.b32.xlu2 %v973_v7, %s2476_s5 }
 0x219   : > { %967 = vadd.xlane.f32.xlu2 %v966_v32 }
 0x24b   : > { %v1025_v33 = vpop.xlane.xlu2 %1024 }
 0x24c   : > { %v1029_v34 = vsub.f32 %v1019_v23, %v1025_v33  ;;  %v1026_v53 = vsub.f32 -inf, %v1025_v33  ;;  %v1847_v23 = vld [vmem:[%s2870_s9 + $0x8] sm:$0xff] }
 0x24d   : > { %1181 = vmatpush.bf16.msrb.mxu1 %v1847_v23 }
 0x24e   : > { %v1030_v35 = vmul.f32 1.442695, %v1029_v34  ;;  %v1027_v54 = vmul.f32 1.442695, %v1026_v53 }
 0x250   : > { %2020 = vpow2.f32 %v1030_v35 }
 0x251   : > { %2022 = vpow2.f32 %v960_v44  ;;  %1182 = vmatpush.bf16.msrb.mxu1 %v1846_v24  ;;  %v1195_v44 = vsel %vm935_vm1, %v1188_v25, 0 }
 0x252   : > { %1204 = vmatpush.bf16.xpose.msrb.mxu3 %v1195_v44  ;;  %v2011_v44 = vld [vmem:[#allocation11] ss:$0 sm:$0xff] }
 0x253   : > { %v1039_v36 = vpop.permute.xlu2 %1038 }
 0x254   : > { %v1044_v37 = vsel %vm979_vm3, %v1039_v36, 0 }
 0x255   : > { %1053 = vmatpush.bf16.msrb.mxu2 %v1044_v37  ;;  %v2008_v37 = vld [vmem:[#allocation7] ss:$0 sm:$0xff] }
 0x256   : > { %v2021_v38 = vpop.eup %2020 }
 0x257   : > { %v1033_v39 = vsel %vm955_vm2, %v2021_v38, 0.0  ;;  %v1037_v40 = vpack.c.bf16 %v2021_v38, %v2021_v38  ;;  %v2023_v45 = vpop.eup %2022 }
 0x258   : > { %1034 = vadd.xlane.f32.xlu0 %v1033_v39  ;;  %v965_v46 = vmul.f32 0.0, %v2023_v45 }
 0x259   : > { %1782 = vmatmul.msk.bf16.vlgmr.msrb.gmra.mxu2 %vm955_vm2, %v1037_v40  ;;  %v2009_v40 = vld [vmem:[#allocation8] ss:$0 sm:$0xff] }
 0x26e   : > { %v992_v41 = vpop.f32.mrf.mxu2 }
 0x26f   : > { %v996_v49 = vadd.f32 %v992_v41, %v965_v46 }
 0x276   : > { %v994_v42 = vpop.f32.mrf.mxu2 }
 0x28c   : > { %v968_v47 = vpop.xlane.xlu2 %967 }
 0x28d   : > { %v969_v48 = vadd.f32 %v968_v47, %v965_v46  ;;  %v2010_v47 = vld [vmem:[#allocation10] ss:$0 sm:$0xff] }
 0x28f   : > { %2024 = vrcp.f32 %v969_v48 }
 0x290   : > { %2026 = vpow2.f32 %v1027_v54 }
 0x295   : > { %v2025_v50 = vpop.eup %2024 }
 0x296   : > { %v1061_v51 = vmul.f32 %v2025_v50, %v996_v49  ;;  %v2027_v55 = vpop.eup %2026 }
 0x297   : > { %v1032_v57 = vmul.f32 0.0, %v2027_v55 }
 0x298   : > { %v1062_v52 = vpack.c.bf16 %v1061_v51, %v1061_v51 }
 0x29a   : > { %1064 = vst.msk [vmem:[#allocation2] sm:$0xf] %vm1063_vm4, %v1062_v52 }
 0x2cb   : > { %v1035_v56 = vpop.xlane.xlu0 %1034 }
 0x2cc   : > { %v1036_v58 = vadd.f32 %v1035_v56, %v1032_v57 }
 0x2ce   : > { %2028 = vrcp.f32 %v1036_v58 }
 0x2cf   : > { %2030 = vrcp.f32 %v2478_v12 }
 0x2d4   : > { %v2029_v61 = vpop.eup %2028 }
 0x2d5   : > { %v2031_v13 = vpop.eup %2030 }
 0x2d6   : > { %v1118_v14 = vmul.f32 32.0, %v2031_v13  ;;  %vm1122_vm6 = vweird.f32 %v2031_v13 }
 0x2d8   : > { %v1119_v15 = vsub.f32 1.0, %v1118_v14 }
 0x2da   : > { %v1120_v16 = vmul.f32 %v2031_v13, %v1119_v15 }
 0x2dc   : > { %v1055_v59 = vpop.f32.mrf.mxu2  ;;  %v1121_v17 = vadd.f32 %v2031_v13, %v1120_v16 }
 0x2dd   : > { %v1059_v60 = vadd.f32 %v1055_v59, %v1032_v57 }
 0x2de   : > { %v2771_v18 = vsel %vm1122_vm6, %v2031_v13, %v1121_v17 }
 0x2df   : > { %v1066_v62 = vmul.f32 %v2029_v61, %v1059_v60 }
 0x2e1   : > { %v1067_v63 = vpack.c.bf16 %v1066_v62, %v1066_v62 }
 0x2e3   : > { %1069 = vrot.lane.b32.xlu1 %v1067_v63, %s2477_s27 }
 0x2e4   : > { %v1057_v0 = vpop.f32.mrf.mxu2 }
 0x355   : > { %v1070_v4 = vpop.permute.xlu1 %1069 }
 0x356   : > { %1073 = vst.msk [vmem:[#allocation2] sm:$0xf] %vm1072_vm5, %v1070_v4 }
 0x35d   : > { %v1074_v5 = vld [vmem:[#allocation2] sm:$0xf] }
 0x35e   : > { %1791 = vmatmul.msk.bf16.vlgmr.msrb.gmra.mxu0 %vm915_vm0, %v1074_v5 }
 0x3db   : > { %v1107_v7 = vpop.f32.mrf.mxu0 }
 0x3dc   : > { %v1108_v8 = vadd.f32 %v2007_v6, %v1107_v7 }
 0x3de   : > { %v1111_v9 = vadd.f32 %v1108_v8, %v2732_v2 }
 0x3e0   : > { %v1114_v10 = vsel %vm915_vm0, %v1111_v9, 0.0 }
 0x3e1   : > { %1115 = vadd.xlane.f32.xlu1 %v1114_v10 }
 0x3e3   : > { %v1109_v11 = vpop.f32.mrf.mxu0 }
 0x454   : > { %v1116_v19 = vpop.xlane.xlu1 %1115 }
 0x455   : > { %v1124_v20 = vmul.f32 %v2771_v18, %v1116_v19 }
 0x457   : > { %v1125_v21 = vsub.f32 %v1111_v9, %v1124_v20 }
 0x459   : > { %v1126_v2 = vmul.f32 %v1125_v21, %v1125_v21 }
 0x45b   : > { %v1127_v22 = vsel %vm915_vm0, %v1126_v2, 0.0 }
 0x45c   : > { %1128 = vadd.xlane.f32.xlu0 %v1127_v22 }
 0x470   : > { %1255 = vrot.lane.b32.xlu0 %v1227_v29, %s2474_s30 }
 0x478   : > { %1291 = vrot.lane.b32.xlu0 %v1227_v29, %s2476_s5 }
 0x480   : > { %1228 = vrot.lane.b32.xlu0 %v1227_v29, %s2475_s29 }
 0x4cf   : > { %v1129_v27 = vpop.xlane.xlu0 %1128 }
 0x4d0   : > { %v1130_v28 = vmul.f32 %v1129_v27, %v2771_v18 }
 0x4d2   : > { %v1131_v30 = vadd.f32 1e-05, %v1130_v28 }
 0x4d4   : > { %2032 = vrsqrt.f32 %v1131_v30  ;;  %vm1138_vm8 = vweird.f32 %v1131_v30 }
 0x4da   : > { %v2033_v31 = vpop.eup %2032 }
 0x4db   : > { %v1133_v32 = vmul.f32 %v2033_v31, %v1131_v30  ;;  %vm1139_vm7 = vweird.f32 %v2033_v31 }
 0x4dc   : > { %vm1140_vm9 = vmor %vm1138_vm8, %vm1139_vm7 }
 0x4dd   : > { %v1134_v33 = vmul.f32 %v2033_v31, %v1133_v32 }
 0x4df   : > { %v1135_v34 = vmul.f32 0.5, %v1134_v33 }
 0x4e1   : > { %v1136_v35 = vsub.f32 1.5, %v1135_v34 }
 0x4e2   : > { %v1256_v45 = vpop.permute.xlu0 %1255 }
 0x4e3   : > { %v1137_v36 = vmul.f32 %v2033_v31, %v1136_v35  ;;  %v1261_v46 = vsel %vm935_vm1, %v1256_v45, 0 }
 0x4e4   : > { %1270 = vmatpush.bf16.xpose.msra.mxu0 %v1261_v46 }
 0x4e5   : > { %v1141_v38 = vsel %vm1140_vm9, %v2033_v31, %v1137_v36 }
 0x4e6   : > { %v1142_v39 = vmul.f32 %v1141_v38, %v1125_v21 }
 0x4e8   : > { %v1146_v41 = vmul.f32 %v2008_v37, %v1142_v39  ;;  %v1849_v39 = vld [vmem:[%s2872_s11 + $0x8] sm:$0xff] }
 0x4e9   : > { %1355 = vmatpush.bf16.msra.mxu3 %v1849_v39  ;;  %v2016_v39 = vld [vmem:[#allocation19] ss:$0 sm:$0xff] }
 0x4ea   : > { %v2790_v42 = vadd.f32 %v2009_v40, %v1146_v41  ;;  %v1292_v62 = vpop.permute.xlu0 %1291  ;;  %v1848_v40 = vld [vmem:[%s2872_s11] sm:$0xff] }
 0x4eb   : > { %v1297_v63 = vsel %vm979_vm3, %v1292_v62, 0 }
 0x4ec   : > { %v1156_v43 = vpack.c.bf16 %v2790_v42, %v2790_v42  ;;  %1306 = vmatpush.bf16.msra.mxu1 %v1297_v63 }
 0x4ed   : > { %1356 = vmatpush.bf16.msra.mxu3 %v1848_v40 }
 0x4ee   : > { %1800 = vmatmul.msk.bf16.vlgmr.msrb.gmra.mxu1 %vm915_vm0, %v1156_v43 }
 0x4f2   : > { %v1229_v0 = vpop.permute.xlu0 %1228 }
 0x4f3   : > { %v1234_v1 = vsel %vm979_vm3, %v1229_v0, 0 }
 0x4f4   : > { %1243 = vmatpush.bf16.msra.mxu2 %v1234_v1 }
 0x56b   : > { %v1184_v48 = vpop.f32.mrf.mxu1 }
 0x56c   : > { %v1185_v49 = vadd.f32 %v2010_v47, %v1184_v48 }
 0x56e   : > { %v1189_v50 = vmul.f32 0.25, %v1185_v49 }
 0x570   : > { %v1190_v51 = vpack.c.bf16 %v1189_v50, %v1189_v50 }
 0x572   : > { %v1251_v52 = vunpack.c.l.b16 %v1190_v51  ;;  %1801 = vmatmul.msk.bf16.vlgmr.msrb.gmra.mxu3 %vm935_vm1, %v1190_v51 }
 0x573   : > { %v1186_v53 = vpop.f32.mrf.mxu1 }
 0x574   : > { %v1252_v54 = vpack.c.b16 %v1251_v52, %v1251_v52 }
 0x576   : > { %1253 = vrot.lane.b32.xlu2 %v1252_v54, %s2474_s30 }
 0x5d0   : > { %v1254_v55 = vpop.permute.xlu2 %1253 }
 0x5d1   : > { %1803 = vmatmul.msk.bf16.vlgmr.msra.gmra.mxu0 %vm935_vm1, %v1254_v55  ;;  %v1851_v55 = vld [vmem:[%s2876_s15 + $0x8] sm:$0xff] }
 0x5d2   : > { %1434 = vmatpush.bf16.msrb.mxu2 %v1851_v55 }
 0x5f5   : > { %v1206_v56 = vpop.f32.mrf.mxu3 }
 0x5f6   : > { %v1210_v61 = vsel %vm955_vm2, %v1206_v56, -inf }
 0x5fd   : > { %v1208_v57 = vpop.f32.mrf.mxu3 }
 0x64e   : > { %v1272_v58 = vpop.f32.mrf.mxu0 }
 0x64f   : > { %v1276_v59 = vsel %vm955_vm2, %v1272_v58, -inf }
 0x650   : > { %1277 = vmax.xlane.f32.xlu1 %v1276_v59  ;;  %v1854_v59 = vld [vmem:[%s2878_s17 + $0x10] sm:$0xff] }
 0x656   : > { %v1274_v60 = vpop.f32.mrf.mxu0 }
 0x658   : > { %1211 = vmax.xlane.f32.xlu1 %v1210_v61 }
 0x6c3   : > { %v1278_v3 = vpop.xlane.xlu1 %1277 }
 0x6c4   : > { %v1282_v4 = vsub.f32 %v1272_v58, %v1278_v3  ;;  %v1279_v15 = vsub.f32 -inf, %v1278_v3 }
 0x6c6   : > { %v1283_v5 = vmul.f32 1.442695, %v1282_v4  ;;  %v1280_v16 = vmul.f32 1.442695, %v1279_v15  ;;  %v2012_v4 = vld [vmem:[#allocation13] ss:$0 sm:$0xff] }
 0x6c8   : > { %2034 = vpow2.f32 %v1283_v5 }
 0x6cb   : > { %v1212_v6 = vpop.xlane.xlu1 %1211 }
 0x6cc   : > { %v1216_v7 = vsub.f32 %v1206_v56, %v1212_v6  ;;  %v1213_v19 = vsub.f32 -inf, %v1212_v6  ;;  %v1855_v56 = vld [vmem:[%s2878_s17 + $0x18] sm:$0xff]  ;;  %v2013_v6 = vld [vmem:[#allocation14] ss:$0 sm:$0xff] }
 0x6cd   : > { %1478 = vmatpush.bf16.msrb.mxu0 %v1855_v56 }
 0x6ce   : > { %v1217_v8 = vmul.f32 1.442695, %v1216_v7  ;;  %v2035_v9 = vpop.eup %2034  ;;  %v1214_v2 = vmul.f32 1.442695, %v1213_v19 }
 0x6cf   : > { %v1290_v10 = vpack.c.bf16 %v2035_v9, %v2035_v9  ;;  %v1286_v11 = vsel %vm955_vm2, %v2035_v9, 0.0 }
 0x6d0   : > { %2036 = vpow2.f32 %v1217_v8  ;;  %1287 = vadd.xlane.f32.xlu2 %v1286_v11  ;;  %v1853_v11 = vld [vmem:[%s2878_s17 + $0x8] sm:$0xff] }
 0x6d1   : > { %1804 = vmatmul.msk.bf16.vlgmr.msra.gmra.mxu1 %vm955_vm2, %v1290_v10  ;;  %2038 = vpow2.f32 %v1280_v16  ;;  %1479 = vmatpush.bf16.msrb.mxu0 %v1854_v59 }
 0x6d2   : > { %2040 = vpow2.f32 %v1214_v2 }
 0x6d5   : > { %1480 = vmatpush.bf16.msrb.mxu0 %v1853_v11 }
 0x6d6   : > { %v2037_v12 = vpop.eup %2036 }
 0x6d7   : > { %v1224_v13 = vpack.c.bf16 %v2037_v12, %v2037_v12  ;;  %v1220_v14 = vsel %vm955_vm2, %v2037_v12, 0.0  ;;  %v2039_v17 = vpop.eup %2038  ;;  %v1852_v12 = vld [vmem:[%s2878_s17] sm:$0xff] }
 0x6d8   : > { %1221 = vadd.xlane.f32.xlu1 %v1220_v14  ;;  %v1285_v21 = vmul.f32 0.0, %v2039_v17  ;;  %v2041_v24 = vpop.eup %2040 }
 0x6d9   : > { %1802 = vmatmul.msk.bf16.vlgmr.msra.gmra.mxu2 %vm955_vm2, %v1224_v13  ;;  %v1219_v29 = vmul.f32 0.0, %v2041_v24  ;;  %1481 = vmatpush.bf16.msrb.mxu0 %v1852_v12  ;;  %v2014_v13 = vld [vmem:[#allocation16] ss:$0 sm:$0xff] }
 0x743   : > { %v1288_v20 = vpop.xlane.xlu2 %1287 }
 0x744   : > { %v1289_v22 = vadd.f32 %v1288_v20, %v1285_v21  ;;  %v2015_v20 = vld [vmem:[#allocation17] ss:$0 sm:$0xff] }
 0x746   : > { %2042 = vrcp.f32 %v1289_v22 }
 0x74b   : > { %v1222_v27 = vpop.xlane.xlu1 %1221 }
 0x74c   : > { %v2043_v26 = vpop.eup %2042  ;;  %v1223_v31 = vadd.f32 %v1222_v27, %v1219_v29 }
 0x74e   : > { %v1308_v23 = vpop.f32.mrf.mxu1  ;;  %2044 = vrcp.f32 %v1223_v31 }
 0x74f   : > { %v1312_v25 = vadd.f32 %v1308_v23, %v1285_v21 }
 0x751   : > { %v1318_v28 = vmul.f32 %v2043_v26, %v1312_v25 }
 0x753   : > { %v1319_v30 = vpack.c.bf16 %v1318_v28, %v1318_v28 }
 0x754   : > { %v2045_v35 = vpop.eup %2044 }
 0x755   : > { %1321 = vrot.lane.b32.xlu0 %v1319_v30, %s2477_s27 }
 0x756   : > { %v1310_v32 = vpop.f32.mrf.mxu1 }
 0x75c   : > { %v1245_v33 = vpop.f32.mrf.mxu2 }
 0x75d   : > { %v1249_v34 = vadd.f32 %v1245_v33, %v1219_v29 }
 0x75f   : > { %v1314_v36 = vmul.f32 %v2045_v35, %v1249_v34 }
 0x761   : > { %v1315_v37 = vpack.c.bf16 %v1314_v36, %v1314_v36 }
 0x763   : > { %1316 = vst.msk [vmem:[#allocation2] sm:$0xf] %vm1063_vm4, %v1315_v37 }
 0x764   : > { %v1247_v38 = vpop.f32.mrf.mxu2 }
 0x7c7   : > { %v1322_v41 = vpop.permute.xlu0 %1321 }
 0x7c8   : > { %1324 = vst.msk [vmem:[#allocation2] sm:$0xf] %vm1072_vm5, %v1322_v41  ;;  %v2017_v41 = vld [vmem:[#allocation20] ss:$0 sm:$0xff] }
 0x7cf   : > { %v1325_v43 = vld [vmem:[#allocation2] sm:$0xf] }
 0x7d0   : > { %1813 = vmatmul.msk.bf16.vlgmr.msra.gmra.mxu3 %vm915_vm0, %v1325_v43 }
 0x853   : > { %v1358_v45 = vpop.f32.mrf.mxu3 }
 0x854   : > { %v1359_v46 = vadd.f32 %v2011_v44, %v1358_v45 }
 0x856   : > { %v1362_v47 = vadd.f32 %v1359_v46, %v2790_v42  ;;  %v1850_v42 = vld [vmem:[%s2876_s15] sm:$0xff] }
 0x857   : > { %1435 = vmatpush.bf16.msrb.mxu2 %v1850_v42 }
 0x858   : > { %v1365_v48 = vsel %vm915_vm0, %v1362_v47, 0.0 }
 0x859   : > { %1366 = vadd.xlane.f32.xlu1 %v1365_v48 }
 0x85b   : > { %v1360_v49 = vpop.f32.mrf.mxu3 }
 0x8cc   : > { %v1367_v50 = vpop.xlane.xlu1 %1366 }
 0x8cd   : > { %v1368_v51 = vmul.f32 %v1367_v50, %v2771_v18 }
 0x8cf   : > { %v1369_v52 = vsub.f32 %v1362_v47, %v1368_v51 }
 0x8d1   : > { %v1370_v53 = vmul.f32 %v1369_v52, %v1369_v52 }
 0x8d3   : > { %v1371_v54 = vsel %vm915_vm0, %v1370_v53, 0.0 }
 0x8d4   : > { %1372 = vadd.xlane.f32.xlu0 %v1371_v54 }
 0x947   : > { %v1373_v57 = vpop.xlane.xlu0 %1372 }
 0x948   : > { %v1374_v58 = vmul.f32 %v1373_v57, %v2771_v18 }
 0x94a   : > { %v1375_v60 = vadd.f32 1e-05, %v1374_v58 }
 0x94c   : > { %2046 = vrsqrt.f32 %v1375_v60  ;;  %vm1382_vm11 = vweird.f32 %v1375_v60 }
 0x952   : > { %v2047_v61 = vpop.eup %2046 }
 0x953   : > { %v1377_v62 = vmul.f32 %v2047_v61, %v1375_v60  ;;  %vm1383_vm10 = vweird.f32 %v2047_v61 }
 0x954   : > { %vm1384_vm12 = vmor %vm1382_vm11, %vm1383_vm10 }
 0x955   : > { %v1378_v63 = vmul.f32 %v2047_v61, %v1377_v62 }
 0x957   : > { %v1379_v0 = vmul.f32 0.5, %v1378_v63 }
 0x959   : > { %v1380_v1 = vsub.f32 1.5, %v1379_v0 }
 0x95b   : > { %v1381_v3 = vmul.f32 %v2047_v61, %v1380_v1 }
 0x95d   : > { %v1385_v5 = vsel %vm1384_vm12, %v2047_v61, %v1381_v3 }
 0x95e   : > { %v1386_v7 = vmul.f32 %v1385_v5, %v1369_v52 }
 0x960   : > { %v1390_v8 = vmul.f32 %v2012_v4, %v1386_v7 }
 0x962   : > { %v1394_v9 = vadd.f32 %v2013_v6, %v1390_v8 }
 0x964   : > { %v1409_v10 = vpack.c.bf16 %v1394_v9, %v1394_v9 }
 0x966   : > { %1822 = vmatmul.msk.bf16.vlgmr.msrb.gmra.mxu2 %vm915_vm0, %v1409_v10 }
 0x9e9   : > { %v1437_v14 = vpop.f32.mrf.mxu2 }
 0x9ea   : > { %v1438_v15 = vadd.f32 %v2014_v13, %v1437_v14 }
 0x9ec   : > { %v1441_v16 = vmax.f32 %v1438_v15, 0.0 }
 0x9ee   : > { %v1442_v17 = vpack.c.bf16 %v1441_v16, %v1441_v16 }
 0x9f0   : > { %1839 = vmatmul.msk.bf16.vlgmr.msrb.gmra.mxu0 %vm1470_vm13, %v1442_v17 }
 0x9f1   : > { %v1439_v19 = vpop.f32.mrf.mxu2 }
 0xa6d   : > { %v1483_v21 = vpop.f32.mrf.mxu0 }
 0xa6e   : > { %v1484_v2 = vadd.f32 %v2015_v20, %v1483_v21 }
 0xa70   : > { %v1487_v22 = vadd.f32 %v1484_v2, %v1394_v9 }
 0xa72   : > { %v1490_v23 = vsel %vm915_vm0, %v1487_v22, 0.0 }
 0xa73   : > { %1491 = vadd.xlane.f32.xlu1 %v1490_v23 }
 0xa75   : > { %v1485_v24 = vpop.f32.mrf.mxu0 }
 0xae6   : > { %v1492_v25 = vpop.xlane.xlu1 %1491 }
 0xae7   : > { %v1493_v26 = vmul.f32 %v1492_v25, %v2771_v18 }
 0xae9   : > { %v1494_v27 = vsub.f32 %v1487_v22, %v1493_v26 }
 0xaeb   : > { %v1495_v28 = vmul.f32 %v1494_v27, %v1494_v27 }
 0xaed   : > { %v1496_v29 = vsel %vm915_vm0, %v1495_v28, 0.0 }
 0xaee   : > { %1497 = vadd.xlane.f32.xlu1 %v1496_v29 }
 0xb61   : > { %v1498_v30 = vpop.xlane.xlu1 %1497 }
 0xb62   : > { %v1499_v31 = vmul.f32 %v1498_v30, %v2771_v18 }
 0xb64   : > { %v1500_v32 = vadd.f32 1e-05, %v1499_v31 }
 0xb66   : > { %2048 = vrsqrt.f32 %v1500_v32  ;;  %vm1507_vm15 = vweird.f32 %v1500_v32 }
 0xb6c   : > { %v2049_v33 = vpop.eup %2048 }
 0xb6d   : > { %v1502_v34 = vmul.f32 %v2049_v33, %v1500_v32  ;;  %vm1508_vm14 = vweird.f32 %v2049_v33 }
 0xb6e   : > { %vm1509_vm1 = vmor %vm1507_vm15, %vm1508_vm14 }
 0xb6f   : > { %v1503_v35 = vmul.f32 %v2049_v33, %v1502_v34 }
 0xb71   : > { %v1504_v36 = vmul.f32 0.5, %v1503_v35 }
 0xb73   : > { %v1505_v37 = vsub.f32 1.5, %v1504_v36 }
 0xb75   : > { %v1506_v38 = vmul.f32 %v2049_v33, %v1505_v37 }
 0xb77   : > { %v1510_v40 = vsel %vm1509_vm1, %v2049_v33, %v1506_v38 }
 0xb78   : > { %v1511_v43 = vmul.f32 %v1510_v40, %v1494_v27 }
 0xb7a   : > { %v1515_v44 = vmul.f32 %v2016_v39, %v1511_v43 }
 0xb7c   : > { %v1519_v18 = vadd.f32 %v2017_v41, %v1515_v44 }
 0xb7e   : > { %1520 = vst.msk [vmem:[%s891_s26] sm:$0xff] %vm915_vm0, %v1519_v18 }
 0xb7f PF: > { %s2910_s6 = sld [smem:[#allocation29_spill]]  ;;  %s2911_s2 = smov %s2456_s25 }
 0xb80   : > { %s2912_s25 = smov %s2914_s1 }
 0xb85   : > { %s38_s26 = sadd.s32 1, %s2910_s6  }
 0xb86   : > { %p35_p8 = scmp.ge.s32.totalorder %s38_s26, 4  }
 0xb88   :  { %37 = sbr.rel (!%p35_p8) target bundleno = 19 (0x13), region = 189 }
 0xb8d   :  { %1546 = vsyncpa [#allocation4], 1 }
 0xb8e   :  { %1548 = vsyncpa [#allocation4 + $0x1], 1 }
 0xb8f   :  { %1549 = vsyncpa [#allocation6], 1 }
 0xb90   :  { %1550 = vsyncpa [#allocation9], 1 }
 0xb91   :  { %1551 = vsyncpa [#allocation12], 1 }
 0xb92   :  { %1552 = vsyncpa [#allocation15], 1 }
 0xb93   :  { %1553 = vsyncpa [#allocation18], 1 }
 0xb94   :  { %1554 = vsyncpa [#allocation21], 1 }

// kernel: forward.17
= control target key start
LH: loop header
LB: loop body
LE: loop exit
PB: predicated region body
PF: predicated region fallthrough
CT: control target
= control target key end

     0   :  { %s2783_s0 = inlined_call_operand.vmem [shape: f32[2,8,32], index: 0, kind: input, shape index: {}]   ;;  %s2784_s1 = inlined_call_operand.vmem [shape: bf16[2,8,64], index: 1, kind: input, shape index: {}]   ;;  %s2785_s2 = inlined_call_operand.vmem [shape: bf16[2,8,64], index: 2, kind: input, shape index: {}]   ;;  %s2786_s3 = inlined_call_operand.vmem [shape: bf16[32,32], index: 3, kind: input, shape index: {}]   ;;  %s2787_s4 = inlined_call_operand.vmem [shape: f32[1,32], index: 4, kind: input, shape index: {}]   ;;  %s2788_s5 = inlined_call_operand.vmem [shape: bf16[32,32], index: 5, kind: input, shape index: {}]   ;;  %s2789_s6 = inlined_call_operand.hbm [shape: f32[1,32], index: 6, kind: input, shape index: {}]   ;;  %s2790_s7 = inlined_call_operand.hbm [shape: f32[1,32], index: 7, kind: input, shape index: {}]   ;;  %s2791_s8 = inlined_call_operand.hbm [shape: f32[1,32], index: 8, kind: input, shape index: {}]   ;;  %s2792_s9 = inlined_call_operand.vmem [shape: bf16[32,32], index: 9, kind: input, shape index: {}]   ;;  %s2793_s10 = inlined_call_operand.hbm [shape: f32[1,32], index: 10, kind: input, shape index: {}]   ;;  %s2794_s11 = inlined_call_operand.vmem [shape: bf16[32,32], index: 11, kind: input, shape index: {}]   ;;  %s2795_s12 = inlined_call_operand.hbm [shape: f32[1,32], index: 12, kind: input, shape index: {}]   ;;  %s2796_s13 = inlined_call_operand.hbm [shape: f32[1,32], index: 13, kind: input, shape index: {}]   ;;  %s2797_s14 = inlined_call_operand.hbm [shape: f32[1,32], index: 14, kind: input, shape index: {}]   ;;  %s2798_s15 = inlined_call_operand.vmem [shape: bf16[32,64], index: 15, kind: input, shape index: {}]   ;;  %s2799_s16 = inlined_call_operand.hbm [shape: f32[1,64], index: 16, kind: input, shape index: {}]   ;;  %s2800_s17 = inlined_call_operand.vmem [shape: bf16[64,32], index: 17, kind: input, shape index: {}]   ;;  %s2801_s18 = inlined_call_operand.hbm [shape: f32[1,32], index: 18, kind: input, shape index: {}]   ;;  %s2802_s19 = inlined_call_operand.hbm [shape: f32[1,32], index: 19, kind: input, shape index: {}]   ;;  %s2803_s20 = inlined_call_operand.hbm [shape: f32[1,32], index: 20, kind: input, shape index: {}]   ;;  %s2804_s21 = inlined_call_operand.vmem [shape: f32[2,8,32], index: 21, kind: output, shape index: {}]  }
   0x1   :  { %2808 = sst [smem:[#allocation27_spill]] %s2783_s0 }
   0x2   :  { %2809 = sst [smem:[#allocation28_spill]] %s2784_s1 }
   0x3   :  { %2810 = sst [smem:[#allocation29_spill]] %s2785_s2 }
   0x4   :  { %2811 = sst [smem:[#allocation30_spill]] %s2786_s3 }
   0x5   :  { %2812 = sst [smem:[#allocation31_spill]] %s2787_s4 }
   0x6   :  { %2813 = sst [smem:[#allocation32_spill]] %s2788_s5 }
   0x7   :  { %2814 = sst [smem:[#allocation33_spill]] %s2790_s7 }
   0x8   :  { %2815 = sst [smem:[#allocation34_spill]] %s2793_s10 }
   0x9   :  { %2816 = sst [smem:[#allocation35_spill]] %s2796_s13 }
   0xa   :  { %2817 = sst [smem:[#allocation36_spill]] %s2804_s21 }
   0xb   :  { %26 = vsyncpa [#allocation4], 0 }
   0xc   :  { %27 = vsyncpa [#allocation6], 0 }
   0xd   :  { %28 = vsyncpa [#allocation9], 0 }
   0xe   :  { %29 = vsyncpa [#allocation12], 0 }
   0xf   :  { %30 = vsyncpa [#allocation15], 0 }
  0x10   :  { %31 = vsyncpa [#allocation18], 0  ;;  %s2517_s2 = smov 0   ;;  %s2519_s25 = smov 0  }
  0x11   :  { %s2521_s26 = smov 0  }
  0x12 LB: > { %2818 = sst [smem:[#allocation26_spill]] %s2389_s26  ;;  %s1712_s29 = sadd.s32 4294967295, %s2389_s26   ;;  %s2389_s26 = sphi %s2521_s26, %s37_s26   ;;  %s2385_s25 = sphi %s2519_s25, %s2834_s25   ;;  %s2381_s2 = sphi %s2517_s2, %s2833_s2  }
  0x13   : > { %s2819_s7 = sld [smem:[#allocation33_spill]]  ;;  %p1714_p0 = scmp.ge.s32.totalorder %s2389_s26, 1 }
  0x14   : > { %p540_p1 = scmp.lt.s32.totalorder %s2389_s26, 3  ;;  %p2538_p2 = scmp.eq.s32.totalorder %s1712_s29, 0 }
  0x15   : > { %s2391_s30 = smov [#allocation5]   ;;  %s2822_s10 = sld [smem:[#allocation34_spill]] }
  0x16   : > { %p2542_p3 = pnand %p1714_p0, %p540_p1  ;;  %s575_s5 = sshll.u32 %s2391_s30, 4  ;;  %s576_s5 = int_to_ptr.vmem [resolvable:$true] %s575_s5 }
  0x17   : > { %s2823_s13 = sld [smem:[#allocation35_spill]]  ;;  %s2392_s30 = smov [#allocation8]  }
  0x18   : > { %p1873_p4 = pneg %p2542_p3  ;;  %s2393_s22 = smov [#allocation11]  }
  0x19   : > { %s573_s28 = sshll.u32 %s2819_s7, 4  ;;  %s602_s7 = sshll.u32 %s2392_s30, 4  ;;  %s574_s28 = int_to_ptr.hbm [resolvable:$true] %s573_s28  ;;  %s603_s7 = int_to_ptr.vmem [resolvable:$true] %s602_s7 }
  0x1a   : > { %p2556_p5 = pnand %p2538_p2, %p1873_p4  ;;  %s629_s23 = sshll.u32 %s2393_s22, 4  ;;  %s630_s23 = int_to_ptr.vmem [resolvable:$true] %s629_s23 }
  0x1b   : > { %s600_s1 = sshll.u32 %s2822_s10, 4  ;;  %s654_s10 = sshll.u32 %s2799_s16, 4  ;;  %s601_s1 = int_to_ptr.hbm [resolvable:$true] %s600_s1  ;;  %s655_s10 = int_to_ptr.hbm [resolvable:$true] %s654_s10 }
  0x1c   : > { %1879 = dma.hbm_to_vmem [thread:$0]  (!%p2556_p5), %s574_s28, 16, %s576_s5, [#allocation6]  }
  0x1d   : > { %s627_s3 = sshll.u32 %s2823_s13, 4  ;;  %s681_s26 = sshll.u32 %s2802_s19, 4  ;;  %s628_s3 = int_to_ptr.hbm [resolvable:$true] %s627_s3  ;;  %s682_s26 = int_to_ptr.hbm [resolvable:$true] %s681_s26 }
  0x1e   : > { %1885 = dma.hbm_to_vmem [thread:$0]  (!%p2556_p5), %s601_s1, 16, %s603_s7, [#allocation9]  }
  0x1f   : > { %1891 = dma.hbm_to_vmem [thread:$0]  (!%p2556_p5), %s628_s3, 16, %s630_s23, [#allocation12]  }
  0x20   : > { %s2394_s21 = smov [#allocation14]   ;;  %s2395_s7 = smov [#allocation17]  }
  0x21   : > { %s656_s28 = sshll.u32 %s2394_s21, 4  ;;  %s683_s5 = sshll.u32 %s2395_s7, 4  ;;  %s657_s28 = int_to_ptr.vmem [resolvable:$true] %s656_s28  ;;  %s684_s5 = int_to_ptr.vmem [resolvable:$true] %s683_s5 }
  0x22   : > { %1897 = dma.hbm_to_vmem [thread:$0]  (!%p2556_p5), %s655_s10, 16, %s657_s28, [#allocation15]  }
  0x23   : > { %1903 = dma.hbm_to_vmem [thread:$0]  (!%p2556_p5), %s682_s26, 16, %s684_s5, [#allocation18]  }
  0x24   : > { %s49_s1 = sadd.s32 1, %s2385_s25  ;;  %s561_s3 = sshll.u32 %s2789_s6, 4  ;;  %s562_s3 = int_to_ptr.hbm [resolvable:$true] %s561_s3 }
  0x25   : > { %p51_p6 = scmp.ge.s32.totalorder %s49_s1, 2  ;;  %s585_s23 = sshll.u32 %s2791_s8, 4  ;;  %s586_s23 = int_to_ptr.hbm [resolvable:$true] %s585_s23 }
  0x26   : > { %s2396_s10 = smov [#allocation3]   ;;  %s2397_s26 = smov [#allocation7]  }
  0x27   : > { %s2836_s1 = smov (%p51_p6, %s49_s1), 0  ;;  %s563_s27 = sshll.u32 %s2396_s10, 4  ;;  %s564_s27 = int_to_ptr.vmem [resolvable:$true] %s563_s27 }
  0x28   : > { %1876 = dma.hbm_to_vmem [thread:$0]  (!%p2556_p5), %s562_s3, 16, %s564_s27, [#allocation4]  }
  0x29   : > { %s587_s30 = sshll.u32 %s2397_s26, 4  ;;  %s615_s5 = sshll.u32 %s2795_s12, 4  ;;  %s588_s30 = int_to_ptr.vmem [resolvable:$true] %s587_s30  ;;  %s616_s5 = int_to_ptr.hbm [resolvable:$true] %s615_s5 }
  0x2a   : > { %1882 = dma.hbm_to_vmem [thread:$0]  (!%p2556_p5), %s586_s23, 16, %s588_s30, [#allocation6]  }
  0x2b   : > { %s639_s13 = sshll.u32 %s2797_s14, 4  ;;  %s2398_s21 = smov [#allocation10]   ;;  %s640_s13 = int_to_ptr.hbm [resolvable:$true] %s639_s13 }
  0x2c   : > { %s617_s10 = sshll.u32 %s2398_s21, 4  ;;  %s2399_s3 = smov [#allocation13]   ;;  %s618_s10 = int_to_ptr.vmem [resolvable:$true] %s617_s10 }
  0x2d   : > { %1888 = dma.hbm_to_vmem [thread:$0]  (!%p2556_p5), %s616_s5, 16, %s618_s10, [#allocation9]  }
  0x2e   : > { %s641_s27 = sshll.u32 %s2399_s3, 4  ;;  %s669_s7 = sshll.u32 %s2801_s18, 4  ;;  %s642_s27 = int_to_ptr.vmem [resolvable:$true] %s641_s27  ;;  %s670_s7 = int_to_ptr.hbm [resolvable:$true] %s669_s7 }
  0x2f   : > { %1894 = dma.hbm_to_vmem [thread:$0]  (!%p2556_p5), %s640_s13, 16, %s642_s27, [#allocation12]  }
  0x30   : > { %s693_s22 = sshll.u32 %s2803_s20, 4  ;;  %s2400_s24 = smov [#allocation16]   ;;  %s694_s22 = int_to_ptr.hbm [resolvable:$true] %s693_s22 }
  0x31   : > { %s671_s21 = sshll.u32 %s2400_s24, 4  ;;  %s2401_s5 = smov [#allocation19]   ;;  %s672_s21 = int_to_ptr.vmem [resolvable:$true] %s671_s21 }
  0x32   : > { %1900 = dma.hbm_to_vmem [thread:$0]  (!%p2556_p5), %s670_s7, 16, %s672_s21, [#allocation15]  }
  0x33   : > { %s695_s10 = sshll.u32 %s2401_s5, 4  ;;  %732 = sbr.rel (%p2542_p3) target bundleno = 2937 (0xb79), region = 104  ;;  %s696_s10 = int_to_ptr.vmem [resolvable:$true] %s695_s10 }
  0x34   : > { %1906 = dma.hbm_to_vmem [thread:$0]  (!%p2556_p5), %s694_s22, 16, %s696_s10, [#allocation18]  }
  0x38   : > { %2356 = dma.done.wait (%p2538_p2), [#allocation4], 16  }
  0x39   : > { %2358 = vsyncadd (%p2538_p2), [#allocation4], 4294967280 }
  0x3a   : > { %2360 = dma.done.wait (%p2538_p2), [#allocation6], 32  }
  0x3b   : > { %2362 = vsyncadd (%p2538_p2), [#allocation6], 4294967264 }
  0x3c   : > { %2364 = dma.done.wait (%p2538_p2), [#allocation9], 32  }
  0x3d   : > { %2366 = vsyncadd (%p2538_p2), [#allocation9], 4294967264 }
  0x3e   : > { %2368 = dma.done.wait (%p2538_p2), [#allocation12], 32  }
  0x3f   : > { %2370 = vsyncadd (%p2538_p2), [#allocation12], 4294967264 }
  0x40   : > { %2372 = dma.done.wait (%p2538_p2), [#allocation15], 32  }
  0x41   : > { %2374 = vsyncadd (%p2538_p2), [#allocation15], 4294967264 }
  0x42   : > { %2376 = dma.done.wait (%p2538_p2), [#allocation18], 32  }
  0x43   : > { %2378 = vsyncadd (%p2538_p2), [#allocation18], 4294967264  ;;  %p855_p7 = scmp.lt.s32.totalorder %s2381_s2, 1  ;;  %s2825_s3 = sld [smem:[#allocation27_spill]]  ;;  %vm900_vm0 = vcmask 261120   ;;  %vm920_vm1 = vcmask 130048  }
  0x44   : > { %s2826_s7 = sld [smem:[#allocation30_spill]]  ;;  %s2402_s10 = smov 112   ;;  %vm940_vm2 = vcmask 64512   ;;  %vm964_vm3 = vcmask 1043456   ;;  %vm1048_vm4 = vcmask 125952   ;;  %vm1057_vm5 = vcmask 257152  }
  0x45   : > { %s2838_s2 = smov (!%p855_p7, %s2381_s2), 1  ;;  %s2827_s21 = sld [smem:[#allocation28_spill]]  ;;  %vm1455_vm13 = vcmask 523264  }
  0x46   : > { %s1739_s4 = sshll.u32 %s2838_s2, 3  ;;  %s1740_s30 = sshll.u32 %s2838_s2, 2 }
  0x47   : > { %s2404_s26 = smov 80   ;;  %s2405_s28 = smov 16  }
  0x48   : > { %s2829_s22 = sld [smem:[#allocation32_spill]] }
  0x49   : > { %s861_s27 = scalar_lea.vmem %s2825_s3, %s1739_s4  ;;  %s2828_s3 = sld [smem:[#allocation31_spill]] }
  0x4a   : > { %v1816_v0 = vld [vmem:[%s2826_s7 + $0x8] sm:$0xff]  ;;  %v1815_v1 = vld [vmem:[%s2826_s7] sm:$0xff]  ;;  %s2830_s24 = sld [smem:[#allocation29_spill]] }
  0x4b   : > { %910 = vmatpush.bf16.msra.mxu0 %v1816_v0  ;;  %v2651_v2 = vld [vmem:[%s861_s27] sm:$0xff]  ;;  %s865_s5 = scalar_lea.vmem %s2827_s21, %s1740_s30  ;;  %s2403_s27 = smov 96  }
  0x4c   : > { %v884_v3 = vpack.c.bf16 %v2651_v2, %v2651_v2  ;;  %v917_v4 = vld [vmem:[%s865_s5] sm:$0xf]  ;;  %s2831_s5 = sld [smem:[#allocation36_spill]] }
  0x4d   : > { %v925_v5 = vsel %vm920_vm1, %v917_v4, 0  ;;  %v957_v6 = vunpack.c.l.b16 %v917_v4 }
  0x4e   : > { %934 = vmatpush.bf16.xpose.msra.mxu1 %v925_v5 }
  0x4f   : > { %911 = vmatpush.bf16.msra.mxu0 %v1815_v1  ;;  %v958_v7 = vpack.c.b16 %v957_v6, %v957_v6  ;;  %v1969_v8 = vld [vmem:[%s2828_s3] ss:$0 sm:$0xff]  ;;  %v1818_v1 = vld [vmem:[%s2829_s22 + $0x8] sm:$0xff]  ;;  %v1970_v6 = vld [vmem:[#allocation3] ss:$0 sm:$0xff] }
  0x50   : > { %s869_s21 = scalar_lea.vmem %s2830_s24, %s1740_s30 }
  0x51   : > { %987 = vrot.lane.b32.xlu0 %v958_v7, %s2402_s10 }
  0x52   : > { %1751 = vmatmul.msk.bf16.vlgmr.msra.gmra.mxu0 %vm900_vm0, %v884_v3  ;;  %v1817_v3 = vld [vmem:[%s2829_s22] sm:$0xff]  ;;  %s876_s29 = scalar_lea.vmem %s2831_s5, %s1739_s4 }
  0x53   : > { %1089 = vmatpush.bf16.msrb.mxu0 %v1818_v1 }
  0x57   : > { %1090 = vmatpush.bf16.msrb.mxu0 %v1817_v3 }
  0xc3   : > { %v988_v16 = vpop.permute.xlu0 %987 }
  0xc4   : > { %v993_v17 = vsel %vm920_vm1, %v988_v16, 0 }
  0xc5   : > { %1002 = vmatpush.bf16.xpose.msra.mxu3 %v993_v17 }
  0xcf   : > { %v913_v9 = vpop.f32.mrf.mxu0 }
  0xd0   : > { %v914_v10 = vadd.f32 %v1969_v8, %v913_v9 }
  0xd2   : > { %v918_v11 = vmul.f32 0.25, %v914_v10 }
  0xd4   : > { %v919_v12 = vpack.c.bf16 %v918_v11, %v918_v11 }
  0xd6   : > { %v983_v13 = vunpack.c.l.b16 %v919_v12  ;;  %1752 = vmatmul.msk.bf16.vlgmr.msra.gmra.mxu1 %vm920_vm1, %v919_v12  ;;  %v2406_v12 = vmov 32.0  }
  0xd7   : > { %v915_v14 = vpop.f32.mrf.mxu0 }
  0xd8   : > { %v984_v15 = vpack.c.b16 %v983_v13, %v983_v13 }
  0xda   : > { %985 = vrot.lane.b32.xlu0 %v984_v15, %s2402_s10 }
 0x14c   : > { %v986_v18 = vpop.permute.xlu0 %985 }
 0x14d   : > { %1754 = vmatmul.msk.bf16.vlgmr.msra.gmra.mxu3 %vm920_vm1, %v986_v18 }
 0x153   : > { %v936_v19 = vpop.f32.mrf.mxu1 }
 0x154   : > { %v941_v20 = vsel %vm940_vm2, %v936_v19, -inf }
 0x155   : > { %942 = vmax.xlane.f32.xlu1 %v941_v20 }
 0x15b   : > { %v938_v21 = vpop.f32.mrf.mxu1 }
 0x16e   : > { %959 = vrot.lane.b32.xlu1 %v958_v7, %s2403_s27 }
 0x1c8   : > { %v943_v22 = vpop.xlane.xlu1 %942 }
 0x1c9   : > { %v947_v25 = vsub.f32 %v936_v19, %v943_v22  ;;  %v944_v43 = vsub.f32 -inf, %v943_v22 }
 0x1cb   : > { %v948_v26 = vmul.f32 1.442695, %v947_v25  ;;  %v945_v44 = vmul.f32 1.442695, %v944_v43  ;;  %v1173_v25 = vld [vmem:[%s869_s21] sm:$0xf] }
 0x1cd   : > { %1981 = vpow2.f32 %v948_v26  ;;  %v1211_v26 = vunpack.c.l.b16 %v1173_v25 }
 0x1d0   : > { %v1004_v23 = vpop.f32.mrf.mxu3 }
 0x1d1   : > { %v1008_v24 = vsel %vm940_vm2, %v1004_v23, -inf }
 0x1d2   : > { %1009 = vmax.xlane.f32.xlu2 %v1008_v24  ;;  %v1819_v24 = vld [vmem:[%s2792_s9] sm:$0xff] }
 0x1d3   : > { %v1982_v28 = vpop.eup %1981 }
 0x1d4   : > { %v955_v31 = vpack.c.bf16 %v1982_v28, %v1982_v28  ;;  %v951_v32 = vsel %vm940_vm2, %v1982_v28, 0.0 }
 0x1d8   : > { %v1006_v27 = vpop.f32.mrf.mxu3 }
 0x1e0   : > { %v960_v29 = vpop.permute.xlu1 %959 }
 0x1e1   : > { %v966_v30 = vsel %vm964_vm3, %v960_v29, 0  ;;  %v1212_v29 = vpack.c.b16 %v1211_v26, %v1211_v26 }
 0x1e2   : > { %975 = vmatpush.bf16.msra.mxu2 %v966_v30 }
 0x1e5   : > { %1753 = vmatmul.msk.bf16.vlgmr.msra.gmra.mxu2 %vm940_vm2, %v955_v31 }
 0x1ea   : > { %1023 = vrot.lane.b32.xlu2 %v958_v7, %s2404_s26 }
 0x213   : > { %952 = vadd.xlane.f32.xlu2 %v951_v32 }
 0x245   : > { %v1010_v33 = vpop.xlane.xlu2 %1009 }
 0x246   : > { %v1014_v34 = vsub.f32 %v1004_v23, %v1010_v33  ;;  %v1011_v53 = vsub.f32 -inf, %v1010_v33  ;;  %v1820_v23 = vld [vmem:[%s2792_s9 + $0x8] sm:$0xff] }
 0x247   : > { %1166 = vmatpush.bf16.msrb.mxu1 %v1820_v23 }
 0x248   : > { %v1015_v35 = vmul.f32 1.442695, %v1014_v34  ;;  %v1012_v54 = vmul.f32 1.442695, %v1011_v53 }
 0x24a   : > { %1983 = vpow2.f32 %v1015_v35 }
 0x24b   : > { %1985 = vpow2.f32 %v945_v44  ;;  %1167 = vmatpush.bf16.msrb.mxu1 %v1819_v24  ;;  %v1180_v44 = vsel %vm920_vm1, %v1173_v25, 0 }
 0x24c   : > { %1189 = vmatpush.bf16.xpose.msrb.mxu3 %v1180_v44  ;;  %v1974_v44 = vld [vmem:[#allocation10] ss:$0 sm:$0xff] }
 0x24d   : > { %v1024_v36 = vpop.permute.xlu2 %1023 }
 0x24e   : > { %v1029_v37 = vsel %vm964_vm3, %v1024_v36, 0 }
 0x24f   : > { %1038 = vmatpush.bf16.msrb.mxu2 %v1029_v37  ;;  %v1971_v37 = vld [vmem:[#allocation5] ss:$0 sm:$0xff] }
 0x250   : > { %v1984_v38 = vpop.eup %1983 }
 0x251   : > { %v1018_v39 = vsel %vm940_vm2, %v1984_v38, 0.0  ;;  %v1022_v40 = vpack.c.bf16 %v1984_v38, %v1984_v38  ;;  %v1986_v45 = vpop.eup %1985 }
 0x252   : > { %1019 = vadd.xlane.f32.xlu0 %v1018_v39  ;;  %v950_v46 = vmul.f32 0.0, %v1986_v45 }
 0x253   : > { %1755 = vmatmul.msk.bf16.vlgmr.msrb.gmra.mxu2 %vm940_vm2, %v1022_v40  ;;  %v1972_v40 = vld [vmem:[#allocation7] ss:$0 sm:$0xff] }
 0x268   : > { %v977_v41 = vpop.f32.mrf.mxu2 }
 0x269   : > { %v981_v49 = vadd.f32 %v977_v41, %v950_v46 }
 0x270   : > { %v979_v42 = vpop.f32.mrf.mxu2 }
 0x286   : > { %v953_v47 = vpop.xlane.xlu2 %952 }
 0x287   : > { %v954_v48 = vadd.f32 %v953_v47, %v950_v46  ;;  %v1973_v47 = vld [vmem:[#allocation8] ss:$0 sm:$0xff] }
 0x289   : > { %1987 = vrcp.f32 %v954_v48 }
 0x28a   : > { %1989 = vpow2.f32 %v1012_v54 }
 0x28f   : > { %v1988_v50 = vpop.eup %1987 }
 0x290   : > { %v1046_v51 = vmul.f32 %v1988_v50, %v981_v49  ;;  %v1990_v55 = vpop.eup %1989 }
 0x291   : > { %v1017_v57 = vmul.f32 0.0, %v1990_v55 }
 0x292   : > { %v1047_v52 = vpack.c.bf16 %v1046_v51, %v1046_v51 }
 0x294   : > { %1049 = vst.msk [vmem:[#allocation2] sm:$0xf] %vm1048_vm4, %v1047_v52 }
 0x2c5   : > { %v1020_v56 = vpop.xlane.xlu0 %1019 }
 0x2c6   : > { %v1021_v58 = vadd.f32 %v1020_v56, %v1017_v57 }
 0x2c8   : > { %1991 = vrcp.f32 %v1021_v58 }
 0x2c9   : > { %1993 = vrcp.f32 %v2406_v12 }
 0x2ce   : > { %v1992_v61 = vpop.eup %1991 }
 0x2cf   : > { %v1994_v13 = vpop.eup %1993 }
 0x2d0   : > { %v1103_v14 = vmul.f32 32.0, %v1994_v13  ;;  %vm1107_vm6 = vweird.f32 %v1994_v13 }
 0x2d2   : > { %v1104_v15 = vsub.f32 1.0, %v1103_v14 }
 0x2d4   : > { %v1105_v16 = vmul.f32 %v1994_v13, %v1104_v15 }
 0x2d6   : > { %v1040_v59 = vpop.f32.mrf.mxu2  ;;  %v1106_v17 = vadd.f32 %v1994_v13, %v1105_v16 }
 0x2d7   : > { %v1044_v60 = vadd.f32 %v1040_v59, %v1017_v57 }
 0x2d8   : > { %v2693_v18 = vsel %vm1107_vm6, %v1994_v13, %v1106_v17 }
 0x2d9   : > { %v1051_v62 = vmul.f32 %v1992_v61, %v1044_v60 }
 0x2db   : > { %v1052_v63 = vpack.c.bf16 %v1051_v62, %v1051_v62 }
 0x2dd   : > { %1054 = vrot.lane.b32.xlu1 %v1052_v63, %s2405_s28 }
 0x2de   : > { %v1042_v0 = vpop.f32.mrf.mxu2 }
 0x34f   : > { %v1055_v4 = vpop.permute.xlu1 %1054 }
 0x350   : > { %1058 = vst.msk [vmem:[#allocation2] sm:$0xf] %vm1057_vm5, %v1055_v4 }
 0x357   : > { %v1059_v5 = vld [vmem:[#allocation2] sm:$0xf] }
 0x358   : > { %1764 = vmatmul.msk.bf16.vlgmr.msrb.gmra.mxu0 %vm900_vm0, %v1059_v5 }
 0x3d5   : > { %v1092_v7 = vpop.f32.mrf.mxu0 }
 0x3d6   : > { %v1093_v8 = vadd.f32 %v1970_v6, %v1092_v7 }
 0x3d8   : > { %v1096_v9 = vadd.f32 %v1093_v8, %v2651_v2 }
 0x3da   : > { %v1099_v10 = vsel %vm900_vm0, %v1096_v9, 0.0 }
 0x3db   : > { %1100 = vadd.xlane.f32.xlu1 %v1099_v10 }
 0x3dd   : > { %v1094_v11 = vpop.f32.mrf.mxu0 }
 0x44e   : > { %v1101_v19 = vpop.xlane.xlu1 %1100 }
 0x44f   : > { %v1109_v20 = vmul.f32 %v2693_v18, %v1101_v19 }
 0x451   : > { %v1110_v21 = vsub.f32 %v1096_v9, %v1109_v20 }
 0x453   : > { %v1111_v2 = vmul.f32 %v1110_v21, %v1110_v21 }
 0x455   : > { %v1112_v22 = vsel %vm900_vm0, %v1111_v2, 0.0 }
 0x456   : > { %1113 = vadd.xlane.f32.xlu0 %v1112_v22 }
 0x46a   : > { %1240 = vrot.lane.b32.xlu0 %v1212_v29, %s2402_s10 }
 0x472   : > { %1276 = vrot.lane.b32.xlu0 %v1212_v29, %s2404_s26 }
 0x47a   : > { %1213 = vrot.lane.b32.xlu0 %v1212_v29, %s2403_s27 }
 0x4c9   : > { %v1114_v27 = vpop.xlane.xlu0 %1113 }
 0x4ca   : > { %v1115_v28 = vmul.f32 %v1114_v27, %v2693_v18 }
 0x4cc   : > { %v1116_v30 = vadd.f32 1e-05, %v1115_v28 }
 0x4ce   : > { %1995 = vrsqrt.f32 %v1116_v30  ;;  %vm1123_vm8 = vweird.f32 %v1116_v30 }
 0x4d4   : > { %v1996_v31 = vpop.eup %1995 }
 0x4d5   : > { %v1118_v32 = vmul.f32 %v1996_v31, %v1116_v30  ;;  %vm1124_vm7 = vweird.f32 %v1996_v31 }
 0x4d6   : > { %vm1125_vm9 = vmor %vm1123_vm8, %vm1124_vm7 }
 0x4d7   : > { %v1119_v33 = vmul.f32 %v1996_v31, %v1118_v32 }
 0x4d9   : > { %v1120_v34 = vmul.f32 0.5, %v1119_v33 }
 0x4db   : > { %v1121_v35 = vsub.f32 1.5, %v1120_v34 }
 0x4dc   : > { %v1241_v45 = vpop.permute.xlu0 %1240 }
 0x4dd   : > { %v1122_v36 = vmul.f32 %v1996_v31, %v1121_v35  ;;  %v1246_v46 = vsel %vm920_vm1, %v1241_v45, 0 }
 0x4de   : > { %1255 = vmatpush.bf16.xpose.msra.mxu0 %v1246_v46 }
 0x4df   : > { %v1126_v38 = vsel %vm1125_vm9, %v1996_v31, %v1122_v36 }
 0x4e0   : > { %v1127_v39 = vmul.f32 %v1126_v38, %v1110_v21 }
 0x4e2   : > { %v1131_v41 = vmul.f32 %v1971_v37, %v1127_v39  ;;  %v1822_v39 = vld [vmem:[%s2794_s11 + $0x8] sm:$0xff] }
 0x4e3   : > { %1340 = vmatpush.bf16.msra.mxu3 %v1822_v39  ;;  %v1979_v39 = vld [vmem:[#allocation17] ss:$0 sm:$0xff] }
 0x4e4   : > { %v2712_v42 = vadd.f32 %v1972_v40, %v1131_v41  ;;  %v1277_v62 = vpop.permute.xlu0 %1276  ;;  %v1821_v40 = vld [vmem:[%s2794_s11] sm:$0xff] }
 0x4e5   : > { %v1282_v63 = vsel %vm964_vm3, %v1277_v62, 0 }
 0x4e6   : > { %v1141_v43 = vpack.c.bf16 %v2712_v42, %v2712_v42  ;;  %1291 = vmatpush.bf16.msra.mxu1 %v1282_v63 }
 0x4e7   : > { %1341 = vmatpush.bf16.msra.mxu3 %v1821_v40 }
 0x4e8   : > { %1773 = vmatmul.msk.bf16.vlgmr.msrb.gmra.mxu1 %vm900_vm0, %v1141_v43 }
 0x4ec   : > { %v1214_v0 = vpop.permute.xlu0 %1213 }
 0x4ed   : > { %v1219_v1 = vsel %vm964_vm3, %v1214_v0, 0 }
 0x4ee   : > { %1228 = vmatpush.bf16.msra.mxu2 %v1219_v1 }
 0x565   : > { %v1169_v48 = vpop.f32.mrf.mxu1 }
 0x566   : > { %v1170_v49 = vadd.f32 %v1973_v47, %v1169_v48 }
 0x568   : > { %v1174_v50 = vmul.f32 0.25, %v1170_v49 }
 0x56a   : > { %v1175_v51 = vpack.c.bf16 %v1174_v50, %v1174_v50 }
 0x56c   : > { %v1236_v52 = vunpack.c.l.b16 %v1175_v51  ;;  %1774 = vmatmul.msk.bf16.vlgmr.msrb.gmra.mxu3 %vm920_vm1, %v1175_v51 }
 0x56d   : > { %v1171_v53 = vpop.f32.mrf.mxu1 }
 0x56e   : > { %v1237_v54 = vpack.c.b16 %v1236_v52, %v1236_v52 }
 0x570   : > { %1238 = vrot.lane.b32.xlu2 %v1237_v54, %s2402_s10 }
 0x5ca   : > { %v1239_v55 = vpop.permute.xlu2 %1238 }
 0x5cb   : > { %1776 = vmatmul.msk.bf16.vlgmr.msra.gmra.mxu0 %vm920_vm1, %v1239_v55  ;;  %v1824_v55 = vld [vmem:[%s2798_s15 + $0x8] sm:$0xff] }
 0x5cc   : > { %1419 = vmatpush.bf16.msrb.mxu2 %v1824_v55 }
 0x5ef   : > { %v1191_v56 = vpop.f32.mrf.mxu3 }
 0x5f0   : > { %v1195_v61 = vsel %vm940_vm2, %v1191_v56, -inf }
 0x5f7   : > { %v1193_v57 = vpop.f32.mrf.mxu3 }
 0x648   : > { %v1257_v58 = vpop.f32.mrf.mxu0 }
 0x649   : > { %v1261_v59 = vsel %vm940_vm2, %v1257_v58, -inf }
 0x64a   : > { %1262 = vmax.xlane.f32.xlu1 %v1261_v59  ;;  %v1827_v59 = vld [vmem:[%s2800_s17 + $0x10] sm:$0xff] }
 0x650   : > { %v1259_v60 = vpop.f32.mrf.mxu0 }
 0x652   : > { %1196 = vmax.xlane.f32.xlu1 %v1195_v61 }
 0x6bd   : > { %v1263_v3 = vpop.xlane.xlu1 %1262 }
 0x6be   : > { %v1267_v4 = vsub.f32 %v1257_v58, %v1263_v3  ;;  %v1264_v15 = vsub.f32 -inf, %v1263_v3 }
 0x6c0   : > { %v1268_v5 = vmul.f32 1.442695, %v1267_v4  ;;  %v1265_v16 = vmul.f32 1.442695, %v1264_v15  ;;  %v1975_v4 = vld [vmem:[#allocation11] ss:$0 sm:$0xff] }
 0x6c2   : > { %1997 = vpow2.f32 %v1268_v5 }
 0x6c5   : > { %v1197_v6 = vpop.xlane.xlu1 %1196 }
 0x6c6   : > { %v1201_v7 = vsub.f32 %v1191_v56, %v1197_v6  ;;  %v1198_v19 = vsub.f32 -inf, %v1197_v6  ;;  %v1828_v56 = vld [vmem:[%s2800_s17 + $0x18] sm:$0xff]  ;;  %v1976_v6 = vld [vmem:[#allocation13] ss:$0 sm:$0xff] }
 0x6c7   : > { %1463 = vmatpush.bf16.msrb.mxu0 %v1828_v56 }
 0x6c8   : > { %v1202_v8 = vmul.f32 1.442695, %v1201_v7  ;;  %v1998_v9 = vpop.eup %1997  ;;  %v1199_v2 = vmul.f32 1.442695, %v1198_v19 }
 0x6c9   : > { %v1275_v10 = vpack.c.bf16 %v1998_v9, %v1998_v9  ;;  %v1271_v11 = vsel %vm940_vm2, %v1998_v9, 0.0 }
 0x6ca   : > { %1999 = vpow2.f32 %v1202_v8  ;;  %1272 = vadd.xlane.f32.xlu2 %v1271_v11  ;;  %v1826_v11 = vld [vmem:[%s2800_s17 + $0x8] sm:$0xff] }
 0x6cb   : > { %1777 = vmatmul.msk.bf16.vlgmr.msra.gmra.mxu1 %vm940_vm2, %v1275_v10  ;;  %2001 = vpow2.f32 %v1265_v16  ;;  %1464 = vmatpush.bf16.msrb.mxu0 %v1827_v59 }
 0x6cc   : > { %2003 = vpow2.f32 %v1199_v2 }
 0x6cf   : > { %1465 = vmatpush.bf16.msrb.mxu0 %v1826_v11 }
 0x6d0   : > { %v2000_v12 = vpop.eup %1999 }
 0x6d1   : > { %v1209_v13 = vpack.c.bf16 %v2000_v12, %v2000_v12  ;;  %v1205_v14 = vsel %vm940_vm2, %v2000_v12, 0.0  ;;  %v2002_v17 = vpop.eup %2001  ;;  %v1825_v12 = vld [vmem:[%s2800_s17] sm:$0xff] }
 0x6d2   : > { %1206 = vadd.xlane.f32.xlu1 %v1205_v14  ;;  %v1270_v21 = vmul.f32 0.0, %v2002_v17  ;;  %v2004_v24 = vpop.eup %2003 }
 0x6d3   : > { %1775 = vmatmul.msk.bf16.vlgmr.msra.gmra.mxu2 %vm940_vm2, %v1209_v13  ;;  %v1204_v29 = vmul.f32 0.0, %v2004_v24  ;;  %1466 = vmatpush.bf16.msrb.mxu0 %v1825_v12  ;;  %v1977_v13 = vld [vmem:[#allocation14] ss:$0 sm:$0xff] }
 0x73d   : > { %v1273_v20 = vpop.xlane.xlu2 %1272 }
 0x73e   : > { %v1274_v22 = vadd.f32 %v1273_v20, %v1270_v21  ;;  %v1978_v20 = vld [vmem:[#allocation16] ss:$0 sm:$0xff] }
 0x740   : > { %2005 = vrcp.f32 %v1274_v22 }
 0x745   : > { %v1207_v27 = vpop.xlane.xlu1 %1206 }
 0x746   : > { %v2006_v26 = vpop.eup %2005  ;;  %v1208_v31 = vadd.f32 %v1207_v27, %v1204_v29 }
 0x748   : > { %v1293_v23 = vpop.f32.mrf.mxu1  ;;  %2007 = vrcp.f32 %v1208_v31 }
 0x749   : > { %v1297_v25 = vadd.f32 %v1293_v23, %v1270_v21 }
 0x74b   : > { %v1303_v28 = vmul.f32 %v2006_v26, %v1297_v25 }
 0x74d   : > { %v1304_v30 = vpack.c.bf16 %v1303_v28, %v1303_v28 }
 0x74e   : > { %v2008_v35 = vpop.eup %2007 }
 0x74f   : > { %1306 = vrot.lane.b32.xlu0 %v1304_v30, %s2405_s28 }
 0x750   : > { %v1295_v32 = vpop.f32.mrf.mxu1 }
 0x756   : > { %v1230_v33 = vpop.f32.mrf.mxu2 }
 0x757   : > { %v1234_v34 = vadd.f32 %v1230_v33, %v1204_v29 }
 0x759   : > { %v1299_v36 = vmul.f32 %v2008_v35, %v1234_v34 }
 0x75b   : > { %v1300_v37 = vpack.c.bf16 %v1299_v36, %v1299_v36 }
 0x75d   : > { %1301 = vst.msk [vmem:[#allocation2] sm:$0xf] %vm1048_vm4, %v1300_v37 }
 0x75e   : > { %v1232_v38 = vpop.f32.mrf.mxu2 }
 0x7c1   : > { %v1307_v41 = vpop.permute.xlu0 %1306 }
 0x7c2   : > { %1309 = vst.msk [vmem:[#allocation2] sm:$0xf] %vm1057_vm5, %v1307_v41  ;;  %v1980_v41 = vld [vmem:[#allocation19] ss:$0 sm:$0xff] }
 0x7c9   : > { %v1310_v43 = vld [vmem:[#allocation2] sm:$0xf] }
 0x7ca   : > { %1786 = vmatmul.msk.bf16.vlgmr.msra.gmra.mxu3 %vm900_vm0, %v1310_v43 }
 0x84d   : > { %v1343_v45 = vpop.f32.mrf.mxu3 }
 0x84e   : > { %v1344_v46 = vadd.f32 %v1974_v44, %v1343_v45 }
 0x850   : > { %v1347_v47 = vadd.f32 %v1344_v46, %v2712_v42  ;;  %v1823_v42 = vld [vmem:[%s2798_s15] sm:$0xff] }
 0x851   : > { %1420 = vmatpush.bf16.msrb.mxu2 %v1823_v42 }
 0x852   : > { %v1350_v48 = vsel %vm900_vm0, %v1347_v47, 0.0 }
 0x853   : > { %1351 = vadd.xlane.f32.xlu1 %v1350_v48 }
 0x855   : > { %v1345_v49 = vpop.f32.mrf.mxu3 }
 0x8c6   : > { %v1352_v50 = vpop.xlane.xlu1 %1351 }
 0x8c7   : > { %v1353_v51 = vmul.f32 %v1352_v50, %v2693_v18 }
 0x8c9   : > { %v1354_v52 = vsub.f32 %v1347_v47, %v1353_v51 }
 0x8cb   : > { %v1355_v53 = vmul.f32 %v1354_v52, %v1354_v52 }
 0x8cd   : > { %v1356_v54 = vsel %vm900_vm0, %v1355_v53, 0.0 }
 0x8ce   : > { %1357 = vadd.xlane.f32.xlu0 %v1356_v54 }
 0x941   : > { %v1358_v57 = vpop.xlane.xlu0 %1357 }
 0x942   : > { %v1359_v58 = vmul.f32 %v1358_v57, %v2693_v18 }
 0x944   : > { %v1360_v60 = vadd.f32 1e-05, %v1359_v58 }
 0x946   : > { %2009 = vrsqrt.f32 %v1360_v60  ;;  %vm1367_vm11 = vweird.f32 %v1360_v60 }
 0x94c   : > { %v2010_v61 = vpop.eup %2009 }
 0x94d   : > { %v1362_v62 = vmul.f32 %v2010_v61, %v1360_v60  ;;  %vm1368_vm10 = vweird.f32 %v2010_v61 }
 0x94e   : > { %vm1369_vm12 = vmor %vm1367_vm11, %vm1368_vm10 }
 0x94f   : > { %v1363_v63 = vmul.f32 %v2010_v61, %v1362_v62 }
 0x951   : > { %v1364_v0 = vmul.f32 0.5, %v1363_v63 }
 0x953   : > { %v1365_v1 = vsub.f32 1.5, %v1364_v0 }
 0x955   : > { %v1366_v3 = vmul.f32 %v2010_v61, %v1365_v1 }
 0x957   : > { %v1370_v5 = vsel %vm1369_vm12, %v2010_v61, %v1366_v3 }
 0x958   : > { %v1371_v7 = vmul.f32 %v1370_v5, %v1354_v52 }
 0x95a   : > { %v1375_v8 = vmul.f32 %v1975_v4, %v1371_v7 }
 0x95c   : > { %v1379_v9 = vadd.f32 %v1976_v6, %v1375_v8 }
 0x95e   : > { %v1394_v10 = vpack.c.bf16 %v1379_v9, %v1379_v9 }
 0x960   : > { %1795 = vmatmul.msk.bf16.vlgmr.msrb.gmra.mxu2 %vm900_vm0, %v1394_v10 }
 0x9e3   : > { %v1422_v14 = vpop.f32.mrf.mxu2 }
 0x9e4   : > { %v1423_v15 = vadd.f32 %v1977_v13, %v1422_v14 }
 0x9e6   : > { %v1426_v16 = vmax.f32 %v1423_v15, 0.0 }
 0x9e8   : > { %v1427_v17 = vpack.c.bf16 %v1426_v16, %v1426_v16 }
 0x9ea   : > { %1812 = vmatmul.msk.bf16.vlgmr.msrb.gmra.mxu0 %vm1455_vm13, %v1427_v17 }
 0x9eb   : > { %v1424_v19 = vpop.f32.mrf.mxu2 }
 0xa67   : > { %v1468_v21 = vpop.f32.mrf.mxu0 }
 0xa68   : > { %v1469_v2 = vadd.f32 %v1978_v20, %v1468_v21 }
 0xa6a   : > { %v1472_v22 = vadd.f32 %v1469_v2, %v1379_v9 }
 0xa6c   : > { %v1475_v23 = vsel %vm900_vm0, %v1472_v22, 0.0 }
 0xa6d   : > { %1476 = vadd.xlane.f32.xlu1 %v1475_v23 }
 0xa6f   : > { %v1470_v24 = vpop.f32.mrf.mxu0 }
 0xae0   : > { %v1477_v25 = vpop.xlane.xlu1 %1476 }
 0xae1   : > { %v1478_v26 = vmul.f32 %v1477_v25, %v2693_v18 }
 0xae3   : > { %v1479_v27 = vsub.f32 %v1472_v22, %v1478_v26 }
 0xae5   : > { %v1480_v28 = vmul.f32 %v1479_v27, %v1479_v27 }
 0xae7   : > { %v1481_v29 = vsel %vm900_vm0, %v1480_v28, 0.0 }
 0xae8   : > { %1482 = vadd.xlane.f32.xlu1 %v1481_v29 }
 0xb5b   : > { %v1483_v30 = vpop.xlane.xlu1 %1482 }
 0xb5c   : > { %v1484_v31 = vmul.f32 %v1483_v30, %v2693_v18 }
 0xb5e   : > { %v1485_v32 = vadd.f32 1e-05, %v1484_v31 }
 0xb60   : > { %2011 = vrsqrt.f32 %v1485_v32  ;;  %vm1492_vm15 = vweird.f32 %v1485_v32 }
 0xb66   : > { %v2012_v33 = vpop.eup %2011 }
 0xb67   : > { %v1487_v34 = vmul.f32 %v2012_v33, %v1485_v32  ;;  %vm1493_vm14 = vweird.f32 %v2012_v33 }
 0xb68   : > { %vm1494_vm1 = vmor %vm1492_vm15, %vm1493_vm14 }
 0xb69   : > { %v1488_v35 = vmul.f32 %v2012_v33, %v1487_v34 }
 0xb6b   : > { %v1489_v36 = vmul.f32 0.5, %v1488_v35 }
 0xb6d   : > { %v1490_v37 = vsub.f32 1.5, %v1489_v36 }
 0xb6f   : > { %v1491_v38 = vmul.f32 %v2012_v33, %v1490_v37 }
 0xb71   : > { %v1495_v40 = vsel %vm1494_vm1, %v2012_v33, %v1491_v38 }
 0xb72   : > { %v1496_v43 = vmul.f32 %v1495_v40, %v1479_v27 }
 0xb74   : > { %v1500_v44 = vmul.f32 %v1979_v39, %v1496_v43 }
 0xb76   : > { %v1504_v18 = vadd.f32 %v1980_v41, %v1500_v44 }
 0xb78   : > { %1505 = vst.msk [vmem:[%s876_s29] sm:$0xff] %vm900_vm0, %v1504_v18 }
 0xb79 PF: > { %s2832_s13 = sld [smem:[#allocation26_spill]]  ;;  %s2833_s2 = smov %s2385_s25 }
 0xb7a   : > { %s2834_s25 = smov %s2836_s1 }
 0xb7f   : > { %s37_s26 = sadd.s32 1, %s2832_s13  }
 0xb80   : > { %p34_p8 = scmp.ge.s32.totalorder %s37_s26, 4  }
 0xb82   :  { %36 = sbr.rel (!%p34_p8) target bundleno = 18 (0x12), region = 185 }
 0xb87   :  { %1531 = vsyncpa [#allocation4], 1 }
 0xb88   :  { %1533 = vsyncpa [#allocation4 + $0x1], 1 }
 0xb89   :  { %1534 = vsyncpa [#allocation6], 1 }
 0xb8a   :  { %1535 = vsyncpa [#allocation9], 1 }
 0xb8b   :  { %1536 = vsyncpa [#allocation12], 1 }
 0xb8c   :  { %1537 = vsyncpa [#allocation15], 1 }
 0xb8d   :  { %1538 = vsyncpa [#allocation18], 1 }

</bundles_post_ra>
